<compile_context>
chip_gen: v7x
topology: tpu7x:2x2x1
jax: 0.10.0
libtpu: 0.0.40
codegen_flags: <defaults>
</compile_context>

<pallas_src>
import functools

import jax
import jax.numpy as jnp
from jax.experimental import pallas as pl
from jax.experimental.pallas import tpu as pltpu

C_IN_DEFAULT = 3
H1, H2, H3 = 64, 128, 512
_VPU_LAYER1_MAX_C = 8   # below this, layer 1 runs on the VPU instead of the MXU


def pointnet_kernel(x_ref, w1_ref, b1_ref, w2_ref, b2_ref, w3_ref, b3_ref,
                    o_ref, *, cw):
    # x_ref : (1, C, TN) f32  — native BCN layout: channels on sublanes,
    #                           points on lanes (lane-dense DMA).
    # w1_ref: (64, C)   f32   (VPU layer-1 path)
    # w2_ref: (128, 64) bf16 ; w3_ref: (512, 128) bf16
    # b*_ref: (H, 1)    f32 column biases
    # o_ref : (1, 1, 512, 1) f32 — running max, resident across the point-tile
    #                              axis (its index map ignores that axis).
    x = x_ref[0]                                  # (C, TN) f32
    c_in, tn = x.shape

    # ---- layer 1 (C -> 64), computed as W1^T @ x ----
    if c_in <= _VPU_LAYER1_MAX_C:
        # K == C is tiny; C outer-product FMAs on the VPU.  x[c] is a
        # sublane-broadcast row (cheap); only the small (64, 1) weight columns
        # need a lane broadcast.  This hides under the MXU work below.
        h1 = w1_ref[:, 0:1] * x[0:1, :]
        for c in range(1, c_in):
            h1 = h1 + w1_ref[:, c:c + 1] * x[c:c + 1, :]
    else:
        h1 = jnp.dot(w1_ref[...].astype(jnp.bfloat16), x.astype(jnp.bfloat16),
                     preferred_element_type=jnp.float32)
    h1 = jnp.maximum(h1 + b1_ref[...], 0.0).astype(jnp.bfloat16)     # (64, TN)

    # ---- layer 2 (64 -> 128): bf16 MXU, f32 accumulate ----
    h2 = jnp.dot(w2_ref[...], h1, preferred_element_type=jnp.float32) + b2_ref[...]
    h2 = jnp.maximum(h2, 0.0).astype(jnp.bfloat16)                    # (128, TN)

    n = pl.program_id(2)

    @pl.when(n == 0)
    def _():
        o_ref[...] = jnp.full(o_ref.shape, -jnp.inf, o_ref.dtype)

    # ---- layer 3 (128 -> 512) + max over points, chunked over columns ----
    # Never materialize a full (512, TN) f32 h3: per chunk, one MXU dot and a
    # lane reduce folded straight into the resident output block.
    for j in range(tn // cw):
        h2c = h2[:, j * cw:(j + 1) * cw]                              # (128, cw) bf16
        c3 = jnp.dot(w3_ref[...], h2c, preferred_element_type=jnp.float32)
        cmax = jnp.max(c3, axis=1, keepdims=True)                     # (512, 1)
        o_ref[0, 0] = jnp.maximum(o_ref[0, 0], cmax)

    # Bias once after the max (exact), only at the final point tile.
    @pl.when(n == pl.num_programs(2) - 1)
    def _():
        o_ref[0, 0] = o_ref[0, 0] + b3_ref[...]


def pointnet_encoder(x_bcn, params, *, tn=8192, cw=512, n_split=1):
    """x_bcn: (B, C, N) float32 (native PyTorch layout). Returns (B, 512) f32.

    n_split: number of point-axis splits mapped to a leading 'parallel' grid
    axis (set to 2 on v7x when B < 2 so both TensorCores are used); partial
    maxima are combined with one tiny jnp.max in the wrapper.
    """
    w1, b1, w2, b2, w3, b3 = params
    B, C, N = x_bcn.shape

    tn = min(tn, N)
    # If N ever needs padding upstream, padded points must be masked to -inf
    # before the max — zero-padded fake points could otherwise win it.
    assert N % tn == 0, "N must be a multiple of the point tile size"
    assert tn % 128 == 0 or tn == N, "point tile must be lane-aligned (x128) or full N"
    cw = min(cw, tn)
    assert tn % cw == 0, "chunk width must divide the point tile"

    n_tiles = N // tn
    assert n_tiles % n_split == 0, "n_split must divide the number of point tiles"
    tiles_per_split = n_tiles // n_split

    x = x_bcn.astype(jnp.float32)            # no layout transpose: (B, C, N) stays put

    # One-time weight transposes/casts; the kernel runs the chain as h = W^T @ h.
    w1t = w1.T.astype(jnp.float32)           # (64, C)   f32 (VPU layer-1 path)
    w2t = w2.T.astype(jnp.bfloat16)          # (128, 64)
    w3t = w3.T.astype(jnp.bfloat16)          # (512, 128)
    b1c = b1.reshape(H1, 1).astype(jnp.float32)
    b2c = b2.reshape(H2, 1).astype(jnp.float32)
    b3c = b3.reshape(H3, 1).astype(jnp.float32)

    const = lambda s, b, n: (0, 0)
    grid = (n_split, B, tiles_per_split)

    raw = pl.pallas_call(
        functools.partial(pointnet_kernel, cw=cw),
        out_shape=jax.ShapeDtypeStruct((n_split, B, H3, 1), jnp.float32),
        grid_spec=pltpu.PrefetchScalarGridSpec(
            num_scalar_prefetch=0,
            grid=grid,
            in_specs=[
                pl.BlockSpec((1, C, tn),
                             lambda s, b, n: (b, 0, s * tiles_per_split + n)),
                pl.BlockSpec((H1, C), const),      # w1^T (f32)
                pl.BlockSpec((H1, 1), const),      # b1
                pl.BlockSpec((H2, H1), const),     # w2^T (bf16)
                pl.BlockSpec((H2, 1), const),      # b2
                pl.BlockSpec((H3, H2), const),     # w3^T (bf16)
                pl.BlockSpec((H3, 1), const),      # b3
            ],
            out_specs=pl.BlockSpec((1, 1, H3, 1), lambda s, b, n: (s, b, 0, 0)),
        ),
        compiler_params=pltpu.CompilerParams(
            dimension_semantics=("parallel", "parallel", "arbitrary"),
            # Estimated peak ~13 MiB at tn=8192 after the chunked-max change
            # (h1/h2 slabs + one (512, cw) chunk + double-buffered x/weights);
            # 48 MiB gives headroom on v5e/v6e and stays under v7x's 64 MiB.
            vmem_limit_bytes=48 * 1024 * 1024,
        ),
    )(x, w1t, b1c, w2t, b2c, w3t, b3c)

    # Combine per-split partial maxima (free copy when n_split == 1) and drop
    # the trailing singleton that kept the in-kernel store layout trivial.
    return jnp.max(raw, axis=0).reshape(B, H3)


def init_params(key, c_in=C_IN_DEFAULT):
    """Deterministic synthetic params matching Conv1d(k=1) shapes.

    PyTorch conv weights are (Cout, Cin, 1); we store the equivalent
    (Cin, Cout) matrices directly."""
    ks = jax.random.split(key, 6)

    def u(k, shape, fan_in):
        bound = 1.0 / jnp.sqrt(fan_in)
        return jax.random.uniform(k, shape, jnp.float32, -bound, bound)

    w1 = u(ks[0], (c_in, H1), c_in)
    b1 = u(ks[1], (1, H1), c_in)
    w2 = u(ks[2], (H1, H2), H1)
    b2 = u(ks[3], (1, H2), H1)
    w3 = u(ks[4], (H2, H3), H2)
    b3 = u(ks[5], (1, H3), H2)
    return (w1, b1, w2, b2, w3, b3)


def pointnet_ref(x_bcn, params):
    """Pure-JAX f32 reference mirroring the PyTorch forward (global_feat=True)."""
    w1, b1, w2, b2, w3, b3 = params
    x = jnp.transpose(x_bcn, (0, 2, 1))                # (B, N, C)
    h = jax.nn.relu(x @ w1 + b1)
    h = jax.nn.relu(h @ w2 + b2)
    h = h @ w3 + b3
    return jnp.max(h, axis=1)                          # (B, 512)


if __name__ == "__main__":
    key = jax.random.PRNGKey(0)
    kx, kp = jax.random.split(key)

    B, C, N = 2, 3, 512                                # small PointNet-style shapes
    x = jax.random.normal(kx, (B, C, N), jnp.float32)  # PyTorch layout (B, C, N)
    params = init_params(kp, c_in=C)

    ref = pointnet_ref(x, params)

    # Default config (tn clamps to N -> a single point tile per batch element).
    out = pointnet_encoder(x, params)
    out = jax.block_until_ready(out)
    assert out.shape == (B, 512)
    # bf16 MXU inputs with f32 accumulation -> loosen tolerance vs. f32 ref.
    assert jnp.allclose(out, ref, atol=2e-2, rtol=2e-2)

    # Multi-tile config: exercises the running max in o_ref across point tiles.
    out_tiled = pointnet_encoder(x, params, tn=128)
    out_tiled = jax.block_until_ready(out_tiled)
    assert jnp.allclose(out_tiled, ref, atol=2e-2, rtol=2e-2)
    assert jnp.allclose(out_tiled, out, atol=1e-4, rtol=1e-4)

    # Split config: exercises the v7x dual-TensorCore style N-split with the
    # per-split partial maxima combined in the wrapper.
    out_split = pointnet_encoder(x, params, tn=128, n_split=2)
    out_split = jax.block_until_ready(out_split)
    assert jnp.allclose(out_split, out, atol=1e-4, rtol=1e-4)

    print("KERNEL_OK")
</pallas_src>

<mosaic_0001>
module attributes {stable_mosaic.version = 11 : i64} {
  func.func @pointnet_kernel(%arg0: i32, %arg1: i32, %arg2: i32, %arg3: memref<1x3x512xf32, #tpu.memory_space<vmem>>, %arg4: memref<64x3xf32, #tpu.memory_space<vmem>>, %arg5: memref<64x1xf32, #tpu.memory_space<vmem>>, %arg6: memref<128x64xbf16, #tpu.memory_space<vmem>>, %arg7: memref<128x1xf32, #tpu.memory_space<vmem>>, %arg8: memref<512x128xbf16, #tpu.memory_space<vmem>>, %arg9: memref<512x1xf32, #tpu.memory_space<vmem>>, %arg10: memref<1x1x512x1xf32, #tpu.memory_space<vmem>>) attributes {dimension_semantics = [#tpu.dimension_semantics<parallel>, #tpu.dimension_semantics<parallel>, #tpu.dimension_semantics<arbitrary>], iteration_bounds = array<i64: 1, 2, 1>, scalar_prefetch = 0 : i64, scratch_operands = 0 : i64, tpu.core_type = #tpu.core_type<tc>, window_params = [{transform_indices = @transform_0, window_bounds = array<i64: 1, 3, 512>}, {pipeline_mode = #tpu.pipeline_mode<synchronous>, transform_indices = @transform_1, window_bounds = array<i64: 64, 3>}, {pipeline_mode = #tpu.pipeline_mode<synchronous>, transform_indices = @transform_2, window_bounds = array<i64: 64, 1>}, {pipeline_mode = #tpu.pipeline_mode<synchronous>, transform_indices = @transform_3, window_bounds = array<i64: 128, 64>}, {pipeline_mode = #tpu.pipeline_mode<synchronous>, transform_indices = @transform_4, window_bounds = array<i64: 128, 1>}, {pipeline_mode = #tpu.pipeline_mode<synchronous>, transform_indices = @transform_5, window_bounds = array<i64: 512, 128>}, {pipeline_mode = #tpu.pipeline_mode<synchronous>, transform_indices = @transform_6, window_bounds = array<i64: 512, 1>}, {transform_indices = @transform_7, window_bounds = array<i64: 1, 1, 512, 1>}]} {
    %c0 = arith.constant 0 : index
    %c0_0 = arith.constant 0 : index
    %c0_1 = arith.constant 0 : index
    %0 = vector.load %arg3[%c0, %c0_0, %c0_1] : memref<1x3x512xf32, #tpu.memory_space<vmem>>, vector<1x3x512xf32>
    %1 = vector.shape_cast %0 : vector<1x3x512xf32> to vector<3x512xf32>
    %c0_2 = arith.constant 0 : index
    %c0_3 = arith.constant 0 : index
    %2 = vector.load %arg4[%c0_2, %c0_3] : memref<64x3xf32, #tpu.memory_space<vmem>>, vector<64x1xf32>
    %3 = vector.extract_strided_slice %1 {offsets = [0, 0], sizes = [1, 512], strides = [1, 1]} : vector<3x512xf32> to vector<1x512xf32>
    %4 = vector.broadcast %2 : vector<64x1xf32> to vector<64x512xf32>
    %5 = vector.broadcast %3 : vector<1x512xf32> to vector<64x512xf32>
    %6 = arith.mulf %4, %5 : vector<64x512xf32>
    %c0_4 = arith.constant 0 : index
    %c1 = arith.constant 1 : index
    %7 = vector.load %arg4[%c0_4, %c1] : memref<64x3xf32, #tpu.memory_space<vmem>>, vector<64x1xf32>
    %8 = vector.extract_strided_slice %1 {offsets = [1, 0], sizes = [1, 512], strides = [1, 1]} : vector<3x512xf32> to vector<1x512xf32>
    %9 = vector.broadcast %7 : vector<64x1xf32> to vector<64x512xf32>
    %10 = vector.broadcast %8 : vector<1x512xf32> to vector<64x512xf32>
    %11 = arith.mulf %9, %10 : vector<64x512xf32>
    %12 = arith.addf %6, %11 : vector<64x512xf32>
    %c0_5 = arith.constant 0 : index
    %c2 = arith.constant 2 : index
    %13 = vector.load %arg4[%c0_5, %c2] : memref<64x3xf32, #tpu.memory_space<vmem>>, vector<64x1xf32>
    %14 = vector.extract_strided_slice %1 {offsets = [2, 0], sizes = [1, 512], strides = [1, 1]} : vector<3x512xf32> to vector<1x512xf32>
    %15 = vector.broadcast %13 : vector<64x1xf32> to vector<64x512xf32>
    %16 = vector.broadcast %14 : vector<1x512xf32> to vector<64x512xf32>
    %17 = arith.mulf %15, %16 : vector<64x512xf32>
    %18 = arith.addf %12, %17 : vector<64x512xf32>
    %c0_6 = arith.constant 0 : index
    %c0_7 = arith.constant 0 : index
    %19 = vector.load %arg5[%c0_6, %c0_7] : memref<64x1xf32, #tpu.memory_space<vmem>>, vector<64x1xf32>
    %20 = vector.broadcast %19 : vector<64x1xf32> to vector<64x512xf32>
    %21 = arith.addf %18, %20 : vector<64x512xf32>
    %cst = arith.constant 0.000000e+00 : f32
    %22 = vector.broadcast %cst : f32 to vector<64x512xf32>
    %23 = arith.maximumf %21, %22 : vector<64x512xf32>
    %24 = arith.truncf %23 : vector<64x512xf32> to vector<64x512xbf16>
    %c0_8 = arith.constant 0 : index
    %c0_9 = arith.constant 0 : index
    %25 = vector.load %arg6[%c0_8, %c0_9] : memref<128x64xbf16, #tpu.memory_space<vmem>>, vector<128x64xbf16>
    %cst_10 = arith.constant dense<0.000000e+00> : vector<128x512xf32>
    %26 = tpu.matmul %25, %24, %cst_10 {dimension_numbers = #tpu.dot_dimension_numbers<[1], [0], [0], [1], [0, 0, 1, 1], [], []>} : vector<128x64xbf16>, vector<64x512xbf16>, vector<128x512xf32> -> vector<128x512xf32>
    %c0_11 = arith.constant 0 : index
    %c0_12 = arith.constant 0 : index
    %27 = vector.load %arg7[%c0_11, %c0_12] : memref<128x1xf32, #tpu.memory_space<vmem>>, vector<128x1xf32>
    %28 = vector.broadcast %27 : vector<128x1xf32> to vector<128x512xf32>
    %29 = arith.addf %26, %28 : vector<128x512xf32>
    %cst_13 = arith.constant 0.000000e+00 : f32
    %30 = vector.broadcast %cst_13 : f32 to vector<128x512xf32>
    %31 = arith.maximumf %29, %30 : vector<128x512xf32>
    %32 = arith.truncf %31 : vector<128x512xf32> to vector<128x512xbf16>
    %c0_i32 = arith.constant 0 : i32
    %33 = arith.cmpi eq, %arg2, %c0_i32 : i32
    %34 = arith.extui %33 : i1 to i32
    %c0_i32_14 = arith.constant 0 : i32
    %35 = arith.cmpi ne, %34, %c0_i32_14 : i32
    scf.if %35 {
      %cst_29 = arith.constant 0xFF800000 : f32
      %49 = vector.broadcast %cst_29 : f32 to vector<1x1x512x1xf32>
      %c0_30 = arith.constant 0 : index
      %c0_31 = arith.constant 0 : index
      %c0_32 = arith.constant 0 : index
      %c0_33 = arith.constant 0 : index
      %50 = vector.load %arg10[%c0_30, %c0_31, %c0_32, %c0_33] : memref<1x1x512x1xf32, #tpu.memory_space<vmem>>, vector<1x1x512x1xf32>
      tpu.vector_store %arg10[%c0_30, %c0_31, %c0_32, %c0_33], %49 {strides = array<i32>} : memref<1x1x512x1xf32, #tpu.memory_space<vmem>>, vector<1x1x512x1xf32>,
    } else {
    }
    %c0_15 = arith.constant 0 : index
    %c0_16 = arith.constant 0 : index
    %36 = vector.load %arg8[%c0_15, %c0_16] : memref<512x128xbf16, #tpu.memory_space<vmem>>, vector<512x128xbf16>
    %cst_17 = arith.constant dense<0.000000e+00> : vector<512x512xf32>
    %37 = tpu.matmul %36, %32, %cst_17 {dimension_numbers = #tpu.dot_dimension_numbers<[1], [0], [0], [1], [0, 0, 1, 1], [], []>} : vector<512x128xbf16>, vector<128x512xbf16>, vector<512x512xf32> -> vector<512x512xf32>
    %cst_18 = arith.constant dense<0xFF800000> : vector<512xf32>
    %38 = vector.multi_reduction <maximumf>, %37, %cst_18 [1] : vector<512x512xf32> to vector<512xf32>
    %39 = vector.shape_cast %38 : vector<512xf32> to vector<512x1xf32>
    %c0_19 = arith.constant 0 : index
    %c0_20 = arith.constant 0 : index
    %c0_21 = arith.constant 0 : index
    %c0_22 = arith.constant 0 : index
    %40 = vector.load %arg10[%c0_19, %c0_20, %c0_21, %c0_22] : memref<1x1x512x1xf32, #tpu.memory_space<vmem>>, vector<1x1x512x1xf32>
    %41 = vector.shape_cast %40 : vector<1x1x512x1xf32> to vector<512x1xf32>
    %42 = arith.maximumf %41, %39 : vector<512x1xf32>
    %c0_23 = arith.constant 0 : index
    %c0_24 = arith.constant 0 : index
    %c0_25 = arith.constant 0 : index
    %c0_26 = arith.constant 0 : index
    %43 = vector.load %arg10[%c0_23, %c0_24, %c0_25, %c0_26] : memref<1x1x512x1xf32, #tpu.memory_space<vmem>>, vector<1x1x512x1xf32>
    %44 = vector.shape_cast %43 : vector<1x1x512x1xf32> to vector<512x1xf32>
    %45 = vector.shape_cast %42 : vector<512x1xf32> to vector<1x1x512x1xf32>
    tpu.vector_store %arg10[%c0_23, %c0_24, %c0_25, %c0_26], %45 {strides = array<i32>} : memref<1x1x512x1xf32, #tpu.memory_space<vmem>>, vector<1x1x512x1xf32>,
    %c0_i32_27 = arith.constant 0 : i32
    %46 = arith.cmpi eq, %arg2, %c0_i32_27 : i32
    %47 = arith.extui %46 : i1 to i32
    %c0_i32_28 = arith.constant 0 : i32
    %48 = arith.cmpi ne, %47, %c0_i32_28 : i32
    scf.if %48 {
      %c0_29 = arith.constant 0 : index
      %c0_30 = arith.constant 0 : index
      %c0_31 = arith.constant 0 : index
      %c0_32 = arith.constant 0 : index
      %49 = vector.load %arg10[%c0_29, %c0_30, %c0_31, %c0_32] : memref<1x1x512x1xf32, #tpu.memory_space<vmem>>, vector<1x1x512x1xf32>
      %50 = vector.shape_cast %49 : vector<1x1x512x1xf32> to vector<512x1xf32>
      %c0_33 = arith.constant 0 : index
      %c0_34 = arith.constant 0 : index
      %51 = vector.load %arg9[%c0_33, %c0_34] : memref<512x1xf32, #tpu.memory_space<vmem>>, vector<512x1xf32>
      %52 = arith.addf %50, %51 : vector<512x1xf32>
      %c0_35 = arith.constant 0 : index
      %c0_36 = arith.constant 0 : index
      %c0_37 = arith.constant 0 : index
      %c0_38 = arith.constant 0 : index
      %53 = vector.load %arg10[%c0_35, %c0_36, %c0_37, %c0_38] : memref<1x1x512x1xf32, #tpu.memory_space<vmem>>, vector<1x1x512x1xf32>
      %54 = vector.shape_cast %53 : vector<1x1x512x1xf32> to vector<512x1xf32>
      %55 = vector.shape_cast %52 : vector<512x1xf32> to vector<1x1x512x1xf32>
      tpu.vector_store %arg10[%c0_35, %c0_36, %c0_37, %c0_38], %55 {strides = array<i32>} : memref<1x1x512x1xf32, #tpu.memory_space<vmem>>, vector<1x1x512x1xf32>,
    } else {
    }
    return
  }
  func.func @transform_0(%arg0: i32, %arg1: i32, %arg2: i32) -> (i32, i32, i32) {
    %c1_i32 = arith.constant 1 : i32
    %0 = arith.muli %arg0, %c1_i32 : i32
    %1 = arith.addi %0, %arg2 : i32
    %c0_i32 = arith.constant 0 : i32
    %c0_i32_0 = arith.constant 0 : i32
    return %arg1, %c0_i32, %1 : i32, i32, i32
  }
  func.func @transform_1(%arg0: i32, %arg1: i32, %arg2: i32) -> (i32, i32) {
    %c0_i32 = arith.constant 0 : i32
    %c0_i32_0 = arith.constant 0 : i32
    %c0_i32_1 = arith.constant 0 : i32
    return %c0_i32, %c0_i32_0 : i32, i32
  }
  func.func @transform_2(%arg0: i32, %arg1: i32, %arg2: i32) -> (i32, i32) {
    %c0_i32 = arith.constant 0 : i32
    %c0_i32_0 = arith.constant 0 : i32
    %c0_i32_1 = arith.constant 0 : i32
    return %c0_i32, %c0_i32_0 : i32, i32
  }
  func.func @transform_3(%arg0: i32, %arg1: i32, %arg2: i32) -> (i32, i32) {
    %c0_i32 = arith.constant 0 : i32
    %c0_i32_0 = arith.constant 0 : i32
    %c0_i32_1 = arith.constant 0 : i32
    return %c0_i32, %c0_i32_0 : i32, i32
  }
  func.func @transform_4(%arg0: i32, %arg1: i32, %arg2: i32) -> (i32, i32) {
    %c0_i32 = arith.constant 0 : i32
    %c0_i32_0 = arith.constant 0 : i32
    %c0_i32_1 = arith.constant 0 : i32
    return %c0_i32, %c0_i32_0 : i32, i32
  }
  func.func @transform_5(%arg0: i32, %arg1: i32, %arg2: i32) -> (i32, i32) {
    %c0_i32 = arith.constant 0 : i32
    %c0_i32_0 = arith.constant 0 : i32
    %c0_i32_1 = arith.constant 0 : i32
    return %c0_i32, %c0_i32_0 : i32, i32
  }
  func.func @transform_6(%arg0: i32, %arg1: i32, %arg2: i32) -> (i32, i32) {
    %c0_i32 = arith.constant 0 : i32
    %c0_i32_0 = arith.constant 0 : i32
    %c0_i32_1 = arith.constant 0 : i32
    return %c0_i32, %c0_i32_0 : i32, i32
  }
  func.func @transform_7(%arg0: i32, %arg1: i32, %arg2: i32) -> (i32, i32, i32, i32) {
    %c0_i32 = arith.constant 0 : i32
    %c0_i32_0 = arith.constant 0 : i32
    %c0_i32_1 = arith.constant 0 : i32
    return %arg0, %arg1, %c0_i32, %c0_i32_0 : i32, i32, i32, i32
  }
}

</mosaic_0001>

<bundles_post_ra>
// kernel: tpu_custom_call.1
= control target key start
LH: loop header
LB: loop body
LE: loop exit
PB: predicated region body
PF: predicated region fallthrough
CT: control target
= control target key end

     0   :  { %s3458_s24 = smov 0   ;;  %s3460_s25 = smov 0   ;;  %s4830_s0 = inlined_call_operand.vmem [shape: f32[2,3,512], index: 0, kind: input, shape index: {}]   ;;  %s4831_s1 = inlined_call_operand.vmem [shape: f32[64,3], index: 1, kind: input, shape index: {}]   ;;  %s4832_s2 = inlined_call_operand.vmem [shape: f32[64,1], index: 2, kind: input, shape index: {}]   ;;  %s4833_s3 = inlined_call_operand.vmem [shape: bf16[128,64], index: 3, kind: input, shape index: {}]   ;;  %s4834_s4 = inlined_call_operand.vmem [shape: f32[128,1], index: 4, kind: input, shape index: {}]   ;;  %s4835_s5 = inlined_call_operand.vmem [shape: bf16[512,128], index: 5, kind: input, shape index: {}]   ;;  %s4836_s6 = inlined_call_operand.vmem [shape: f32[512,1], index: 6, kind: input, shape index: {}]   ;;  %s4837_s7 = inlined_call_operand.vmem [shape: f32[1,2,512,1], index: 7, kind: output, shape index: {}]  }
   0x1   :  { %s3462_s26 = smov 0  }
   0x2 LB: > { %s32_s27 = sadd.s32 1, %s3408_s25  ;;  %p3242_p0 = scmp.ge.s32.totalorder %s3412_s26, 1  ;;  %s3412_s26 = sphi %s3462_s26, %s17_s26   ;;  %s3408_s25 = sphi %s3460_s25, %s4839_s25   ;;  %s3404_s24 = sphi %s3458_s24, %s4838_s24  }
   0x3   : > { %p34_p1 = scmp.ge.s32.totalorder %s32_s27, 2  ;;  %p269_p2 = scmp.lt.s32.totalorder %s3412_s26, 3 }
   0x5   : > { %s4841_s27 = smov (%p34_p1, %s32_s27), 0  ;;  %p270_p3 = pnand %p3242_p0, %p269_p2 }
   0x6   : > { %v334_v0 = vld [vmem:[%s4831_s1] sm:$0xff] (!%p270_p3)  ;;  %v3414_v1 = vmov (!%p270_p3), 2   ;;  %v3415_v2 = vmov (!%p270_p3), 1   ;;  %v336_v3 = vld [vmem:[%s4831_s1 + $0x10] sm:$0xff] (!%p270_p3)  ;;  %v335_v4 = vld [vmem:[%s4831_s1 + $0x8] sm:$0xff] (!%p270_p3)  ;;  %v3416_v5 = vmov (!%p270_p3), 0   ;;  %v384_v37 = vlaneseq (!%p270_p3) }
   0x7   : > { %273 = sbr.rel (%p270_p3) target bundleno = 1139 (0x473), region = 48  ;;  %3336 = vset.pattern.permute.xlu0 (!%p270_p3), %v3414_v1  ;;  %3335 = vset.pattern.permute.xlu1 (!%p270_p3), %v3415_v2  ;;  %v339_v6 = vld [vmem:[%s4831_s1 + $0x28] sm:$0xff] (!%p270_p3)  ;;  %v338_v7 = vld [vmem:[%s4831_s1 + $0x20] sm:$0xff] (!%p270_p3)  ;;  %v341_v8 = vld [vmem:[%s4831_s1 + $0x38] sm:$0xff] (!%p270_p3)  ;;  %p312_p4 = scmp.lt.s32.totalorder (!%p270_p3), %s3404_s24, 1  ;;  %vm996_vm0 = vcmask (!%p270_p3), 523264  }
   0x8   : > { %585 = vperm.xlu0 (!%p270_p3), %3336, %v334_v0   ;;  %453 = vperm.xlu1 (!%p270_p3), %3335, %v334_v0   ;;  %v337_v9 = vld [vmem:[%s4831_s1 + $0x18] sm:$0xff] (!%p270_p3)  ;;  %v716_v10 = vld [vmem:[%s4832_s2] sm:$0xff] (!%p270_p3)  ;;  %v717_v11 = vld [vmem:[%s4832_s2 + $0x8] sm:$0xff] (!%p270_p3)  ;;  %v385_v40 = vshrl.u32 (!%p270_p3), %v384_v37, 7  ;;  %vm1347_vm1 = vcmask (!%p270_p3), 7168  }
   0x9   : > { %1053 = vmatprep.mubr.bf16.mxu0 (!%p270_p3), %v3416_v5  ;;  %1166 = vmatprep.mubr.bf16.mxu1 (!%p270_p3), %v3416_v5  ;;  %v340_v12 = vld [vmem:[%s4831_s1 + $0x30] sm:$0xff] (!%p270_p3)  ;;  %v720_v13 = vld [vmem:[%s4832_s2 + $0x20] sm:$0xff] (!%p270_p3)  ;;  %v723_v14 = vld [vmem:[%s4832_s2 + $0x38] sm:$0xff] (!%p270_p3) }
   0xa   : > { %v861_v15 = vld [vmem:[%s4834_s4 + $0x8] sm:$0xff] (!%p270_p3)  ;;  %v863_v16 = vld [vmem:[%s4834_s4 + $0x18] sm:$0xff] (!%p270_p3)  ;;  %v718_v17 = vld [vmem:[%s4832_s2 + $0x10] sm:$0xff] (!%p270_p3)  ;;  %v486_v43 = vsub.s32 (!%p270_p3), 1, %v385_v40  ;;  %v490_v44 = vsub.s32 (!%p270_p3), 5, %v385_v40  ;;  %v618_v47 = vsub.s32 (!%p270_p3), 2, %v385_v40 }
   0xb   : > { %v865_v18 = vld [vmem:[%s4834_s4 + $0x28] sm:$0xff] (!%p270_p3)  ;;  %v719_v19 = vld [vmem:[%s4832_s2 + $0x18] sm:$0xff] (!%p270_p3)  ;;  %v722_v26 = vld [vmem:[%s4832_s2 + $0x30] sm:$0xff] (!%p270_p3)  ;;  %v622_v48 = vsub.s32 (!%p270_p3), 6, %v385_v40  ;;  %v386_v50 = vsub.s32 (!%p270_p3), 0, %v385_v40  ;;  %v390_v51 = vsub.s32 (!%p270_p3), 4, %v385_v40 }
   0xc   : > { %593 = vperm.xlu0 (!%p270_p3), %3336, %v336_v3   ;;  %457 = vperm.xlu1 (!%p270_p3), %3335, %v335_v4   ;;  %v867_v20 = vld [vmem:[%s4834_s4 + $0x38] sm:$0xff] (!%p270_p3)  ;;  %v869_v21 = vld [vmem:[%s4834_s4 + $0x48] sm:$0xff] (!%p270_p3)  ;;  %v860_v27 = vld [vmem:[%s4834_s4] sm:$0xff] (!%p270_p3) }
   0xd   : > { %v871_v22 = vld [vmem:[%s4834_s4 + $0x58] sm:$0xff] (!%p270_p3)  ;;  %v873_v23 = vld [vmem:[%s4834_s4 + $0x68] sm:$0xff] (!%p270_p3)  ;;  %v862_v28 = vld [vmem:[%s4834_s4 + $0x10] sm:$0xff] (!%p270_p3) }
   0xe   : > { %v875_v24 = vld [vmem:[%s4834_s4 + $0x78] sm:$0xff]  ;;  %v721_v25 = vld [vmem:[%s4832_s2 + $0x28] sm:$0xff]  ;;  %v864_v29 = vld [vmem:[%s4834_s4 + $0x20] sm:$0xff]  ;;  %s4843_s24 = smov (!%p312_p4, %s3404_s24), 1 }
   0xf   : > { %v866_v30 = vld [vmem:[%s4834_s4 + $0x30] sm:$0xff]  ;;  %v868_v31 = vld [vmem:[%s4834_s4 + $0x40] sm:$0xff]  ;;  %s3305_s12 = sshll.u32 %s4843_s24, 4  ;;  %s3306_s14 = sshll.u32 %s4843_s24, 9 }
  0x10   : > { %605 = vperm.xlu0 %3336, %v339_v6   ;;  %3337 = vset.pattern.permute.xlu1 %v3414_v1  ;;  %v870_v32 = vld [vmem:[%s4834_s4 + $0x50] sm:$0xff]  ;;  %v872_v33 = vld [vmem:[%s4834_s4 + $0x60] sm:$0xff]  ;;  %s319_s15 = scalar_lea.vmem %s4830_s0, %s3305_s12  ;;  %s4028_s19 = scalar_lea.vmem %s4837_s7, %s3306_s14 }
  0x11   : > { %589 = vperm.xlu1 %3337, %v335_v4   ;;  %v874_v34 = vld [vmem:[%s4834_s4 + $0x70] sm:$0xff]  ;;  %v332_v45 = vld [vmem:[%s319_s15] sm:$0x77]  ;;  %v333_v46 = vld [vmem:[%s319_s15 + $0x8] sm:$0x77] }
  0x12   : > { %v487_v53 = vrot.slane %v332_v45, %v486_v43  ;;  %v495_v54 = vrot.slane %v333_v46, %v486_v43  ;;  %v491_v55 = vrot.slane %v332_v45, %v490_v44  ;;  %v619_v56 = vrot.slane %v332_v45, %v618_v47 }
  0x13   : > { %v623_v57 = vrot.slane %v332_v45, %v622_v48  ;;  %v627_v58 = vrot.slane %v333_v46, %v618_v47  ;;  %v631_v59 = vrot.slane %v333_v46, %v622_v48  ;;  %v499_v60 = vrot.slane %v333_v46, %v490_v44 }
  0x14   : > { %3344 = vset.pattern.permute.xlu0 %v3415_v2  ;;  %v387_v62 = vrot.slane %v332_v45, %v386_v50  ;;  %v391_v63 = vrot.slane %v332_v45, %v390_v51 }
  0x15   : > { %469 = vperm.xlu0 %3344, %v338_v7   ;;  %3338 = vset.pattern.permute.xlu1 %v3416_v5 }
  0x16   : > { %354 = vperm.xlu1 %3338, %v336_v3  }
  0x19   : > { %481 = vperm.xlu0 %3344, %v341_v8  }
  0x1a   : > { %3339 = vset.pattern.permute.xlu1 %v3415_v2 }
  0x1b   : > { %461 = vperm.xlu1 %3339, %v336_v3   ;;  %v3613_v3 = vrot.slane %v495_v54, %v486_v43 }
  0x1d   : > { %3347 = vset.pattern.permute.xlu0 %v3416_v5 }
  0x1e   : > { %344 = vperm.xlu0 %3347, %v334_v0   ;;  %v395_v0 = vrot.slane %v333_v46, %v386_v50 }
  0x1f   : > { %465 = vperm.xlu1 %3339, %v337_v9  }
  0x22   : > { %349 = vperm.xlu0 %3347, %v335_v4   ;;  %v3615_v4 = vrot.slane %v491_v55, %v486_v43 }
  0x23   : > { %3340 = vset.pattern.permute.xlu1 %v3414_v1 }
  0x24   : > { %597 = vperm.xlu1 %3340, %v337_v9  }
  0x26   : > { %359 = vperm.xlu0 %3347, %v337_v9   ;;  %v3623_v9 = vrot.slane %v627_v58, %v618_v47 }
  0x28   : > { %3341 = vset.pattern.permute.xlu1 %v3416_v5 }
  0x29   : > { %726 = vperm.xlu1 %3341, %v716_v10   ;;  %v3625_v10 = vrot.slane %v631_v59, %v618_v47 }
  0x2a   : > { %731 = vperm.xlu0 %3347, %v717_v11   ;;  %v3627_v11 = vrot.slane %v499_v60, %v486_v43 }
  0x2d   : > { %364 = vperm.xlu1 %3341, %v338_v7  }
  0x2e   : > { %374 = vperm.xlu0 %3347, %v340_v12  }
  0x31   : > { %369 = vperm.xlu1 %3341, %v339_v6  }
  0x32   : > { %746 = vperm.xlu0 %3347, %v720_v13   ;;  %v3631_v13 = vrot.slane %v391_v63, %v386_v50 }
  0x35   : > { %3342 = vset.pattern.permute.xlu1 %v3415_v2 }
  0x36   : > { %761 = vperm.xlu0 %3347, %v723_v14   ;;  %473 = vperm.xlu1 %3342, %v339_v6   ;;  %v3633_v14 = vrot.slane %v395_v0, %v386_v50 }
  0x3a   : > { %883 = vperm.xlu0 %3347, %v861_v15   ;;  %3343 = vset.pattern.permute.xlu1 %v3414_v1 }
  0x3b   : > { %601 = vperm.xlu1 %3343, %v338_v7   ;;  %v3619_v7 = vrot.slane %v619_v56, %v618_v47 }
  0x3e   : > { %893 = vperm.xlu0 %3347, %v863_v16  }
  0x3f   : > { %3345 = vset.pattern.permute.xlu1 %v3416_v5 }
  0x40   : > { %736 = vperm.xlu1 %3345, %v718_v17  }
  0x42   : > { %903 = vperm.xlu0 %3347, %v865_v18  }
  0x44   : > { %741 = vperm.xlu1 %3345, %v719_v19  }
  0x46   : > { %913 = vperm.xlu0 %3347, %v867_v20  }
  0x48   : > { %379 = vperm.xlu1 %3345, %v341_v8  }
  0x4a   : > { %923 = vperm.xlu0 %3347, %v869_v21  }
  0x4c   : > { %3346 = vset.pattern.permute.xlu1 %v3415_v2  ;;  %v3611_v2 = vrot.slane %v487_v53, %v486_v43 }
  0x4d   : > { %477 = vperm.xlu1 %3346, %v340_v12  }
  0x4e   : > { %933 = vperm.xlu0 %3347, %v871_v22  }
  0x51   : > { %3348 = vset.pattern.permute.xlu1 %v3414_v1  ;;  %v399_v1 = vrot.slane %v333_v46, %v390_v51 }
  0x52   : > { %943 = vperm.xlu0 %3347, %v873_v23   ;;  %609 = vperm.xlu1 %3348, %v340_v12   ;;  %v3629_v12 = vrot.slane %v387_v62, %v386_v50 }
  0x53   : > { %v3635_v15 = vrot.slane %v399_v1, %v386_v50 }
  0x56   : > { %953 = vperm.xlu0 %3347, %v875_v24   ;;  %613 = vperm.xlu1 %3348, %v341_v8   ;;  %v3621_v8 = vrot.slane %v623_v57, %v618_v47 }
  0x5a   : > { %3349 = vset.pattern.permute.xlu1 %v3416_v5 }
  0x5b   : > { %751 = vperm.xlu1 %3349, %v721_v25  }
  0x5f   : > { %756 = vperm.xlu1 %3349, %v722_v26  }
  0x63   : > { %878 = vperm.xlu1 %3349, %v860_v27  }
  0x67   : > { %888 = vperm.xlu1 %3349, %v862_v28  }
  0x6b   : > { %898 = vperm.xlu1 %3349, %v864_v29  }
  0x6f   : > { %908 = vperm.xlu1 %3349, %v866_v30  }
  0x73   : > { %918 = vperm.xlu1 %3349, %v868_v31  }
  0x77   : > { %928 = vperm.xlu1 %3349, %v870_v32  }
  0x7b   : > { %938 = vperm.xlu1 %3349, %v872_v33  }
  0x7f   : > { %948 = vperm.xlu1 %3349, %v874_v34  }
  0x87   : > { %v454_v35 = vpop.permute.xlu1 %453  ;;  %v586_v36 = vpop.permute.xlu0 %585 }
  0x88   : > { %v520_v17 = vmul.f32 %v3611_v2, %v454_v35  ;;  %v522_v18 = vmul.f32 %v3613_v3, %v454_v35  ;;  %v521_v20 = vmul.f32 %v3615_v4, %v454_v35  ;;  %v653_v21 = vmul.f32 %v3621_v8, %v586_v36 }
  0x89   : > { %v523_v26 = vmul.f32 %v3627_v11, %v454_v35  ;;  %v655_v27 = vmul.f32 %v3625_v10, %v586_v36  ;;  %v652_v28 = vmul.f32 %v3619_v7, %v586_v36  ;;  %v654_v29 = vmul.f32 %v3623_v9, %v586_v36 }
  0x8b   : > { %v458_v38 = vpop.permute.xlu1 %457  ;;  %v3595_v39 = vpop.permute.xlu0 %593 }
  0x8c   : > { %v524_v30 = vmul.f32 %v3611_v2, %v458_v38  ;;  %v526_v31 = vmul.f32 %v3613_v3, %v458_v38  ;;  %v525_v33 = vmul.f32 %v3615_v4, %v458_v38  ;;  %v527_v34 = vmul.f32 %v3627_v11, %v458_v38 }
  0x8f   : > { %v3598_v41 = vpop.permute.xlu0 %605 }
  0x90   : > { %v3603_v42 = vpop.permute.xlu1 %589 }
  0x91   : > { %v657_v54 = vmul.f32 %v3621_v8, %v3603_v42  ;;  %v659_v55 = vmul.f32 %v3625_v10, %v3603_v42  ;;  %v656_v56 = vmul.f32 %v3619_v7, %v3603_v42  ;;  %v658_v57 = vmul.f32 %v3623_v9, %v3603_v42 }
  0x94   : > { %v3605_v49 = vpop.permute.xlu0 %469 }
  0x95   : > { %v3607_v52 = vpop.permute.xlu1 %354 }
  0x98   : > { %v3609_v61 = vpop.permute.xlu0 %481 }
  0x9a   : > { %v3617_v6 = vpop.permute.xlu1 %461 }
  0x9d   : > { %v345_v16 = vpop.permute.xlu0 %344 }
  0x9e   : > { %v3639_v19 = vpop.permute.xlu1 %465  ;;  %v420_v22 = vmul.f32 %v3629_v12, %v345_v16  ;;  %v421_v23 = vmul.f32 %v3631_v13, %v345_v16  ;;  %v422_v24 = vmul.f32 %v3633_v14, %v345_v16  ;;  %v423_v25 = vmul.f32 %v3635_v15, %v345_v16 }
  0xa0   : > { %v552_v44 = vadd.f32 %v520_v17, %v420_v22  ;;  %v554_v45 = vadd.f32 %v522_v18, %v422_v24  ;;  %v553_v46 = vadd.f32 %v521_v20, %v421_v23  ;;  %v555_v47 = vadd.f32 %v523_v26, %v423_v25 }
  0xa1   : > { %v350_v32 = vpop.permute.xlu0 %349 }
  0xa2   : > { %v424_v37 = vmul.f32 %v3629_v12, %v350_v32  ;;  %v425_v40 = vmul.f32 %v3631_v13, %v350_v32  ;;  %v426_v35 = vmul.f32 %v3633_v14, %v350_v32  ;;  %v427_v43 = vmul.f32 %v3635_v15, %v350_v32 }
  0xa3   : > { %v3659_v36 = vpop.permute.xlu1 %597  ;;  %v685_v58 = vadd.f32 %v653_v21, %v553_v46  ;;  %v687_v59 = vadd.f32 %v655_v27, %v555_v47  ;;  %v684_v60 = vadd.f32 %v652_v28, %v552_v44  ;;  %v686_v62 = vadd.f32 %v654_v29, %v554_v45 }
  0xa4   : > { %v556_v48 = vadd.f32 %v524_v30, %v424_v37  ;;  %v558_v50 = vadd.f32 %v526_v31, %v426_v35  ;;  %v557_v53 = vadd.f32 %v525_v33, %v425_v40  ;;  %v559_v38 = vadd.f32 %v527_v34, %v427_v43 }
  0xa5   : > { %v3661_v51 = vpop.permute.xlu0 %359  ;;  %v660_v46 = vmul.f32 %v3619_v7, %v3595_v39 }
  0xa6   : > { %v689_v0 = vadd.f32 %v657_v54, %v557_v53  ;;  %v691_v1 = vadd.f32 %v659_v55, %v559_v38  ;;  %v688_v16 = vadd.f32 %v656_v56, %v556_v48  ;;  %v690_v17 = vadd.f32 %v658_v57, %v558_v50 }
  0xa7   : > { %v661_v48 = vmul.f32 %v3621_v8, %v3595_v39  ;;  %v662_v50 = vmul.f32 %v3623_v9, %v3595_v39  ;;  %v663_v53 = vmul.f32 %v3625_v10, %v3595_v39  ;;  %v3687_v38 = vmul.f32 %v3619_v7, %v3598_v41 }
  0xa8   : > { %v727_v63 = vpop.permute.xlu1 %726  ;;  %v528_v54 = vmul.f32 %v3611_v2, %v3617_v6  ;;  %v529_v55 = vmul.f32 %v3615_v4, %v3617_v6  ;;  %v530_v56 = vmul.f32 %v3613_v3, %v3617_v6  ;;  %v531_v57 = vmul.f32 %v3627_v11, %v3617_v6 }
  0xa9   : > { %v732_v18 = vpop.permute.xlu0 %731  ;;  %v765_v20 = vadd.f32 %v727_v63, %v685_v58  ;;  %v767_v22 = vadd.f32 %v727_v63, %v687_v59  ;;  %v764_v23 = vadd.f32 %v727_v63, %v684_v60  ;;  %v766_v24 = vadd.f32 %v727_v63, %v686_v62 }
  0xaa   : > { %v769_v25 = vadd.f32 %v732_v18, %v689_v0  ;;  %v771_v26 = vadd.f32 %v732_v18, %v691_v1  ;;  %v768_v30 = vadd.f32 %v732_v18, %v688_v16  ;;  %v770_v31 = vadd.f32 %v732_v18, %v690_v17 }
  0xab   : > { %v797_v32 = vmax.f32 %v765_v20, 0.0  ;;  %v799_v42 = vmax.f32 %v767_v22, 0.0  ;;  %v796_v21 = vmax.f32 %v764_v23, 0.0  ;;  %v798_v27 = vmax.f32 %v766_v24, 0.0 }
  0xac   : > { %v3671_v28 = vpop.permute.xlu1 %364  ;;  %v801_v29 = vmax.f32 %v769_v25, 0.0  ;;  %v803_v33 = vmax.f32 %v771_v26, 0.0  ;;  %v800_v34 = vmax.f32 %v768_v30, 0.0  ;;  %v802_v37 = vmax.f32 %v770_v31, 0.0 }
  0xad   : > { %v3699_v58 = vmul.f32 %v3621_v8, %v3598_v41  ;;  %v3703_v39 = vmul.f32 %v3623_v9, %v3598_v41  ;;  %v536_v59 = vmul.f32 %v3611_v2, %v3605_v49  ;;  %v537_v60 = vmul.f32 %v3615_v4, %v3605_v49 }
  0xae   : > { %v829_v40 = vpack.c.bf16 %v801_v29, %v797_v32  ;;  %v831_v35 = vpack.c.bf16 %v803_v33, %v799_v42  ;;  %v828_v43 = vpack.c.bf16 %v800_v34, %v796_v21  ;;  %v830_v44 = vpack.c.bf16 %v802_v37, %v798_v27 }
  0xaf   : > { %v428_v62 = vmul.f32 %v3629_v12, %v3607_v52  ;;  %v429_v6 = vmul.f32 %v3631_v13, %v3607_v52  ;;  %v430_v63 = vmul.f32 %v3633_v14, %v3607_v52  ;;  %v431_v0 = vmul.f32 %v3635_v15, %v3607_v52 }
  0xb0   : > { %v3673_v45 = vpop.permute.xlu1 %369  ;;  %1021 = vmatprep.subr.bf16.mxu0 %v829_v40  ;;  %1134 = vmatprep.subr.bf16.mxu1 %v831_v35  ;;  %v432_v1 = vmul.f32 %v3629_v12, %v3661_v51  ;;  %v433_v16 = vmul.f32 %v3631_v13, %v3661_v51  ;;  %v434_v17 = vmul.f32 %v3633_v14, %v3661_v51 }
  0xb1   : > { %1022 = vmatpush1.bf16.msra.mxu0 %v828_v43  ;;  %1135 = vmatpush1.bf16.msra.mxu1 %v830_v44  ;;  %v435_v18 = vmul.f32 %v3635_v15, %v3661_v51  ;;  %v560_v22 = vadd.f32 %v528_v54, %v428_v62  ;;  %v561_v23 = vadd.f32 %v529_v55, %v429_v6 }
  0xb2   : > { %v562_v24 = vadd.f32 %v530_v56, %v430_v63  ;;  %v563_v25 = vadd.f32 %v531_v57, %v431_v0  ;;  %v532_v52 = vmul.f32 %v3611_v2, %v3639_v19  ;;  %v533_v26 = vmul.f32 %v3615_v4, %v3639_v19 }
  0xb3   : > { %v534_v30 = vmul.f32 %v3613_v3, %v3639_v19  ;;  %v535_v31 = vmul.f32 %v3627_v11, %v3639_v19  ;;  %v538_v51 = vmul.f32 %v3613_v3, %v3605_v49  ;;  %v539_v32 = vmul.f32 %v3627_v11, %v3605_v49 }
  0xb4   : > { %v436_v42 = vmul.f32 %v3629_v12, %v3671_v28  ;;  %v437_v21 = vmul.f32 %v3631_v13, %v3671_v28  ;;  %v564_v27 = vadd.f32 %v532_v52, %v432_v1  ;;  %v565_v29 = vadd.f32 %v533_v26, %v433_v16 }
  0xb5   : > { %v3677_v47 = vpop.permute.xlu1 %473  ;;  %v566_v33 = vadd.f32 %v534_v30, %v434_v17  ;;  %v567_v34 = vadd.f32 %v535_v31, %v435_v18  ;;  %v692_v40 = vadd.f32 %v660_v46, %v560_v22  ;;  %v693_v35 = vadd.f32 %v661_v48, %v561_v23 }
  0xb6   : > { %v694_v19 = vadd.f32 %v662_v50, %v562_v24  ;;  %v695_v43 = vadd.f32 %v663_v53, %v563_v25  ;;  %v664_v44 = vmul.f32 %v3619_v7, %v3659_v36  ;;  %v665_v49 = vmul.f32 %v3621_v8, %v3659_v36 }
  0xb7   : > { %v666_v54 = vmul.f32 %v3623_v9, %v3659_v36  ;;  %v667_v55 = vmul.f32 %v3625_v10, %v3659_v36  ;;  %v438_v56 = vmul.f32 %v3633_v14, %v3671_v28  ;;  %v439_v46 = vmul.f32 %v3635_v15, %v3671_v28 }
  0xb8   : > { %v568_v48 = vadd.f32 %v536_v59, %v436_v42  ;;  %v569_v50 = vadd.f32 %v537_v60, %v437_v21  ;;  %v696_v53 = vadd.f32 %v664_v44, %v564_v27  ;;  %v697_v57 = vadd.f32 %v665_v49, %v565_v29 }
  0xb9   : > { %v698_v62 = vadd.f32 %v666_v54, %v566_v33  ;;  %v699_v6 = vadd.f32 %v667_v55, %v567_v34  ;;  %v570_v24 = vadd.f32 %v538_v51, %v438_v56  ;;  %v375_v33 = vpop.permute.xlu0 %374  ;;  %v440_v34 = vmul.f32 %v3629_v12, %v3673_v45 }
  0xba   : > { %v602_v20 = vpop.permute.xlu1 %601  ;;  %v441_v51 = vmul.f32 %v3631_v13, %v3673_v45  ;;  %v540_v49 = vmul.f32 %v3611_v2, %v3677_v47  ;;  %v541_v54 = vmul.f32 %v3615_v4, %v3677_v47  ;;  %v542_v55 = vmul.f32 %v3613_v3, %v3677_v47 }
  0xbb   : > { %v668_v25 = vmul.f32 %v3619_v7, %v602_v20  ;;  %v669_v28 = vmul.f32 %v3621_v8, %v602_v20  ;;  %v671_v59 = vmul.f32 %v3625_v10, %v602_v20  ;;  %v543_v56 = vmul.f32 %v3627_v11, %v3677_v47 }
  0xbc   : > { %v548_v47 = vmul.f32 %v3611_v2, %v3609_v61 }
  0xbf   : > { %v737_v37 = vpop.permute.xlu1 %736 }
  0xc0   : > { %v772_v63 = vadd.f32 %v737_v37, %v692_v40  ;;  %v773_v0 = vadd.f32 %v737_v37, %v693_v35  ;;  %v774_v1 = vadd.f32 %v737_v37, %v694_v19  ;;  %v775_v16 = vadd.f32 %v737_v37, %v695_v43 }
  0xc1   : > { %v571_v37 = vadd.f32 %v539_v32, %v439_v46  ;;  %v670_v40 = vmul.f32 %v3623_v9, %v602_v20  ;;  %v701_v32 = vadd.f32 %v669_v28, %v569_v50  ;;  %v442_v20 = vmul.f32 %v3633_v14, %v3673_v45 }
  0xc2   : > { %v805_v42 = vmax.f32 %v773_v0, 0.0  ;;  %v807_v21 = vmax.f32 %v775_v16, 0.0  ;;  %v804_v27 = vmax.f32 %v772_v63, 0.0  ;;  %v806_v29 = vmax.f32 %v774_v1, 0.0  ;;  %v747_v0 = vpop.permute.xlu0 %746 }
  0xc3   : > { %v742_v17 = vpop.permute.xlu1 %741  ;;  %v703_v46 = vadd.f32 %v671_v59, %v571_v37  ;;  %v675_v63 = vmul.f32 %v3625_v10, %v3598_v41  ;;  %v550_v50 = vmul.f32 %v3613_v3, %v3609_v61  ;;  %v572_v1 = vadd.f32 %v540_v49, %v440_v34 }
  0xc4   : > { %v776_v18 = vadd.f32 %v742_v17, %v696_v53  ;;  %v777_v22 = vadd.f32 %v742_v17, %v697_v57  ;;  %v778_v36 = vadd.f32 %v742_v17, %v698_v62  ;;  %v779_v23 = vadd.f32 %v742_v17, %v699_v6 }
  0xc5   : > { %v700_v53 = vadd.f32 %v668_v25, %v568_v48  ;;  %v443_v57 = vmul.f32 %v3635_v15, %v3673_v45  ;;  %v702_v62 = vadd.f32 %v670_v40, %v570_v24  ;;  %v549_v48 = vmul.f32 %v3615_v4, %v3609_v61 }
  0xc6   : > { %v809_v60 = vmax.f32 %v777_v22, 0.0  ;;  %v811_v52 = vmax.f32 %v779_v23, 0.0  ;;  %v808_v26 = vmax.f32 %v776_v18, 0.0  ;;  %v810_v30 = vmax.f32 %v778_v36, 0.0 }
  0xc7   : > { %v380_v31 = vpop.permute.xlu1 %379  ;;  %v573_v16 = vadd.f32 %v541_v54, %v441_v51  ;;  %v574_v45 = vadd.f32 %v542_v55, %v442_v20  ;;  %v575_v17 = vadd.f32 %v543_v56, %v443_v57  ;;  %v551_v18 = vmul.f32 %v3627_v11, %v3609_v61  ;;  %v762_v56 = vpop.permute.xlu0 %761 }
  0xc8   : > { %v833_v35 = vpack.c.bf16 %v809_v60, %v805_v42  ;;  %v835_v19 = vpack.c.bf16 %v811_v52, %v807_v21  ;;  %v832_v43 = vpack.c.bf16 %v808_v26, %v804_v27  ;;  %v834_v44 = vpack.c.bf16 %v810_v30, %v806_v29 }
  0xc9   : > { %v3783_v22 = vadd.f32 %v747_v0, %v701_v32  ;;  %v3785_v41 = vadd.f32 %v747_v0, %v703_v46  ;;  %v3787_v36 = vadd.f32 %v747_v0, %v700_v53  ;;  %v448_v23 = vmul.f32 %v3629_v12, %v380_v31 }
  0xca   : > { %1023 = vmatprep.subr.bf16.mxu0 %v833_v35  ;;  %1136 = vmatprep.subr.bf16.mxu1 %v835_v19  ;;  %v449_v24 = vmul.f32 %v3631_v13, %v380_v31  ;;  %v451_v25 = vmul.f32 %v3635_v15, %v380_v31  ;;  %v3792_v28 = vadd.f32 %v747_v0, %v702_v62 }
  0xcb   : > { %1024 = vmatpush1.bf16.msra.mxu0 %v832_v43  ;;  %1137 = vmatpush1.bf16.msra.mxu1 %v834_v44  ;;  %v444_v59 = vmul.f32 %v3629_v12, %v375_v33  ;;  %v445_v60 = vmul.f32 %v3631_v13, %v375_v33  ;;  %v446_v61 = vmul.f32 %v3633_v14, %v375_v33  ;;  %v813_v34 = vmax.f32 %v3783_v22, 0.0 }
  0xcc   : > { %v478_v6 = vpop.permute.xlu1 %477  ;;  %v447_v52 = vmul.f32 %v3635_v15, %v375_v33  ;;  %v704_v30 = vadd.f32 %v3687_v38, %v572_v1  ;;  %v705_v42 = vadd.f32 %v3699_v58, %v573_v16  ;;  %v706_v21 = vadd.f32 %v3703_v39, %v574_v45 }
  0xcd   : > { %v707_v27 = vadd.f32 %v675_v63, %v575_v17  ;;  %v450_v29 = vmul.f32 %v3633_v14, %v380_v31  ;;  %v815_v12 = vmax.f32 %v3785_v41, 0.0  ;;  %v812_v13 = vmax.f32 %v3787_v36, 0.0 }
  0xce   : > { %v580_v51 = vadd.f32 %v548_v47, %v448_v23  ;;  %v581_v37 = vadd.f32 %v549_v48, %v449_v24  ;;  %v583_v40 = vadd.f32 %v551_v18, %v451_v25  ;;  %v814_v15 = vmax.f32 %v3792_v28, 0.0 }
  0xcf   : > { %v544_v38 = vmul.f32 %v3611_v2, %v478_v6  ;;  %v545_v58 = vmul.f32 %v3615_v4, %v478_v6  ;;  %v546_v39 = vmul.f32 %v3613_v3, %v478_v6  ;;  %v547_v33 = vmul.f32 %v3627_v11, %v478_v6 }
  0xd0   : > { %v582_v44 = vadd.f32 %v550_v50, %v450_v29 }
  0xd1   : > { %v610_v26 = vpop.permute.xlu1 %609  ;;  %v576_v53 = vadd.f32 %v544_v38, %v444_v59  ;;  %v577_v32 = vadd.f32 %v545_v58, %v445_v60  ;;  %v578_v46 = vadd.f32 %v546_v39, %v446_v61  ;;  %v579_v20 = vadd.f32 %v547_v33, %v447_v52  ;;  %v3354_v39 = vld [vmem:[%s4833_s3 + $0x20] sm:$0xff]   ;;  %v3355_v33 = vld [vmem:[%s4833_s3 + $0x28] sm:$0xff]  }
  0xd2   : > { %v676_v49 = vmul.f32 %v3619_v7, %v610_v26  ;;  %v677_v2 = vmul.f32 %v3621_v8, %v610_v26  ;;  %v678_v4 = vmul.f32 %v3623_v9, %v610_v26  ;;  %v679_v3 = vmul.f32 %v3625_v10, %v610_v26 }
  0xd4   : > { %v709_v0 = vadd.f32 %v677_v2, %v577_v32  ;;  %v711_v1 = vadd.f32 %v679_v3, %v579_v20 }
  0xd5   : > { %v614_v14 = vpop.permute.xlu1 %613 }
  0xd6   : > { %v680_v31 = vmul.f32 %v3619_v7, %v614_v14  ;;  %v681_v35 = vmul.f32 %v3621_v8, %v614_v14  ;;  %v682_v19 = vmul.f32 %v3623_v9, %v614_v14  ;;  %v683_v43 = vmul.f32 %v3625_v10, %v614_v14  ;;  %v3356_v14 = vld [vmem:[%s4833_s3 + $0x30] sm:$0xff]  }
  0xd7   : > { %v708_v9 = vadd.f32 %v676_v49, %v576_v53  ;;  %v710_v10 = vadd.f32 %v678_v4, %v578_v46 }
  0xd8   : > { %v712_v54 = vadd.f32 %v680_v31, %v580_v51  ;;  %v713_v11 = vadd.f32 %v681_v35, %v581_v37  ;;  %v715_v55 = vadd.f32 %v683_v43, %v583_v40  ;;  %v714_v57 = vadd.f32 %v682_v19, %v582_v44  ;;  %v3357_v31 = vld [vmem:[%s4833_s3 + $0x38] sm:$0xff]   ;;  %v884_v35 = vpop.permute.xlu0 %883 }
  0xda   : > { %v752_v62 = vpop.permute.xlu1 %751  ;;  %v793_v6 = vadd.f32 %v762_v56, %v713_v11  ;;  %v795_v63 = vadd.f32 %v762_v56, %v715_v55  ;;  %v792_v47 = vadd.f32 %v762_v56, %v712_v54  ;;  %v794_v24 = vadd.f32 %v762_v56, %v714_v57 }
  0xdb   : > { %v784_v7 = vadd.f32 %v752_v62, %v704_v30  ;;  %v785_v48 = vadd.f32 %v752_v62, %v705_v42  ;;  %v786_v8 = vadd.f32 %v752_v62, %v706_v21  ;;  %v787_v50 = vadd.f32 %v752_v62, %v707_v27 }
  0xdc   : > { %v825_v41 = vmax.f32 %v793_v6, 0.0  ;;  %v827_v36 = vmax.f32 %v795_v63, 0.0  ;;  %v824_v23 = vmax.f32 %v792_v47, 0.0  ;;  %v826_v51 = vmax.f32 %v794_v24, 0.0 }
  0xdd   : > { %v817_v16 = vmax.f32 %v785_v48, 0.0  ;;  %v819_v45 = vmax.f32 %v787_v50, 0.0  ;;  %v816_v17 = vmax.f32 %v784_v7, 0.0  ;;  %v818_v18 = vmax.f32 %v786_v8, 0.0 }
  0xde   : > { %v757_v22 = vpop.permute.xlu1 %756 }
  0xdf   : > { %v788_v25 = vadd.f32 %v757_v22, %v708_v9  ;;  %v789_v28 = vadd.f32 %v757_v22, %v709_v0  ;;  %v790_v59 = vadd.f32 %v757_v22, %v710_v10  ;;  %v791_v60 = vadd.f32 %v757_v22, %v711_v1  ;;  %v894_v0 = vpop.permute.xlu0 %893 }
  0xe0   : > { %v837_v61 = vpack.c.bf16 %v817_v16, %v813_v34  ;;  %v839_v52 = vpack.c.bf16 %v819_v45, %v815_v12  ;;  %v836_v26 = vpack.c.bf16 %v816_v17, %v812_v13  ;;  %v838_v30 = vpack.c.bf16 %v818_v18, %v814_v15  ;;  %v3350_v34 = vld [vmem:[%s4833_s3] sm:$0xff]   ;;  %v3351_v12 = vld [vmem:[%s4833_s3 + $0x8] sm:$0xff]   ;;  %v3352_v13 = vld [vmem:[%s4833_s3 + $0x10] sm:$0xff]  }
  0xe1   : > { %v821_v42 = vmax.f32 %v789_v28, 0.0  ;;  %v823_v21 = vmax.f32 %v791_v60, 0.0  ;;  %v820_v27 = vmax.f32 %v788_v25, 0.0  ;;  %v822_v29 = vmax.f32 %v790_v59, 0.0  ;;  %v3353_v15 = vld [vmem:[%s4833_s3 + $0x18] sm:$0xff]  }
  0xe2   : > { %1025 = vmatprep.subr.bf16.mxu0 %v837_v61  ;;  %1138 = vmatprep.subr.bf16.mxu1 %v839_v52  ;;  %v879_v19 = vpop.permute.xlu1 %878 }
  0xe3   : > { %1026 = vmatpush1.bf16.msra.mxu0 %v836_v26  ;;  %1139 = vmatpush1.bf16.msra.mxu1 %v838_v30  ;;  %v841_v37 = vpack.c.bf16 %v825_v41, %v821_v42  ;;  %v843_v40 = vpack.c.bf16 %v827_v36, %v823_v21  ;;  %v840_v38 = vpack.c.bf16 %v824_v23, %v820_v27 }
  0xe4   : > { %v842_v58 = vpack.c.bf16 %v826_v51, %v822_v29 }
  0xe5   : > { %1027 = vmatprep.subr.bf16.mxu0 %v841_v37  ;;  %1140 = vmatprep.subr.bf16.mxu1 %v843_v40 }
  0xe6   : > { %v889_v10 = vpop.permute.xlu1 %888 }
  0xe7   : > { %1028 = vmatpush1.bf16.msra.mxu0 %v840_v38  ;;  %1141 = vmatpush1.bf16.msra.mxu1 %v842_v58 }
  0xea   : > { %3255 = vmatmul.mubr.msk.bf16.vlgmr.msra.gmra.mrb[0].mxu0 %vm996_vm0, %v3350_v34  ;;  %3263 = vmatmul.mubr.msk.bf16.vlgmr.msra.gmra.mrb[0].mxu1 %vm996_vm0, %v3350_v34 }
  0xeb   : > { %1063 = vmatprep.mubr.bf16.mxu0 %v3416_v5  ;;  %1176 = vmatprep.mubr.bf16.mxu1 %v3416_v5 }
  0xf2   : > { %3256 = vmatmul.mubr.msk.bf16.gmra.mrb[4].mxu0 %vm996_vm0, %v3351_v12  ;;  %3264 = vmatmul.mubr.msk.bf16.gmra.mrb[4].mxu1 %vm996_vm0, %v3351_v12  ;;  %v904_v12 = vpop.permute.xlu0 %903 }
  0xf3   : > { %1073 = vmatprep.mubr.bf16.mxu0 %v3416_v5  ;;  %1186 = vmatprep.mubr.bf16.mxu1 %v3416_v5 }
  0xfa   : > { %3257 = vmatmul.mubr.msk.bf16.gmra.mrb[8].mxu0 %vm996_vm0, %v3352_v13  ;;  %3265 = vmatmul.mubr.msk.bf16.gmra.mrb[8].mxu1 %vm996_vm0, %v3352_v13  ;;  %v899_v13 = vpop.permute.xlu1 %898 }
  0xfb   : > { %1083 = vmatprep.mubr.bf16.mxu0 %v3416_v5  ;;  %1196 = vmatprep.mubr.bf16.mxu1 %v3416_v5 }
 0x102   : > { %3258 = vmatmul.mubr.msk.bf16.gmra.mrb[12].mxu0 %vm996_vm0, %v3353_v15  ;;  %3266 = vmatmul.mubr.msk.bf16.gmra.mrb[12].mxu1 %vm996_vm0, %v3353_v15 }
 0x103   : > { %1093 = vmatprep.mubr.bf16.mxu0 %v3416_v5  ;;  %1206 = vmatprep.mubr.bf16.mxu1 %v3416_v5 }
 0x10a   : > { %3259 = vmatmul.mubr.msk.bf16.gmra.mrb[16].mxu0 %vm996_vm0, %v3354_v39  ;;  %3267 = vmatmul.mubr.msk.bf16.gmra.mrb[16].mxu1 %vm996_vm0, %v3354_v39 }
 0x10b   : > { %1103 = vmatprep.mubr.bf16.mxu0 %v3416_v5  ;;  %1216 = vmatprep.mubr.bf16.mxu1 %v3416_v5 }
 0x112   : > { %3260 = vmatmul.mubr.msk.bf16.gmra.mrb[20].mxu0 %vm996_vm0, %v3355_v33  ;;  %3268 = vmatmul.mubr.msk.bf16.gmra.mrb[20].mxu1 %vm996_vm0, %v3355_v33 }
 0x113   : > { %1113 = vmatprep.mubr.bf16.mxu0 %v3416_v5  ;;  %1226 = vmatprep.mubr.bf16.mxu1 %v3416_v5 }
 0x11a   : > { %3261 = vmatmul.mubr.msk.bf16.gmra.mrb[24].mxu0 %vm996_vm0, %v3356_v14  ;;  %3269 = vmatmul.mubr.msk.bf16.gmra.mrb[24].mxu1 %vm996_vm0, %v3356_v14 }
 0x11b   : > { %1123 = vmatprep.mubr.bf16.mxu0 %v3416_v5  ;;  %1236 = vmatprep.mubr.bf16.mxu1 %v3416_v5 }
 0x122   : > { %3262 = vmatmul.mubr.msk.bf16.gmra.mrb[28].mxu0 %vm996_vm0, %v3357_v31  ;;  %3270 = vmatmul.mubr.msk.bf16.gmra.mrb[28].mxu1 %vm996_vm0, %v3357_v31 }
 0x123   : > { %1700 = vmatprep.mubr.bf16.mxu0 %v3416_v5  ;;  %2053 = vmatprep.mubr.bf16.mxu1 %v3416_v5 }
 0x1bd   : > { %v1055_v43 = vpop.f32.mrb[0].mxu0  ;;  %v1168_v44 = vpop.f32.mrb[0].mxu1 }
 0x1be   : > { %v1056_v49 = vadd.f32 %v1055_v43, %v879_v19  ;;  %v1169_v2 = vadd.f32 %v1168_v44, %v879_v19  ;;  %v1057_v4 = vpop.f32.mrb[1].mxu0  ;;  %v1170_v3 = vpop.f32.mrb[1].mxu1 }
 0x1bf   : > { %v1058_v54 = vadd.f32 %v1057_v4, %v879_v19  ;;  %v1171_v11 = vadd.f32 %v1170_v3, %v879_v19  ;;  %v1059_v55 = vpop.f32.mrb[2].mxu0  ;;  %v1172_v56 = vpop.f32.mrb[2].mxu1 }
 0x1c0   : > { %v1060_v53 = vadd.f32 %v1059_v55, %v884_v35  ;;  %v1173_v32 = vadd.f32 %v1172_v56, %v884_v35  ;;  %v1061_v46 = vpop.f32.mrb[3].mxu0  ;;  %v1174_v20 = vpop.f32.mrb[3].mxu1  ;;  %v1247_v6 = vmax.f32 %v1056_v49, 0.0  ;;  %v1249_v63 = vmax.f32 %v1169_v2, 0.0 }
 0x1c1   : > { %v1062_v57 = vadd.f32 %v1061_v46, %v884_v35  ;;  %v1175_v62 = vadd.f32 %v1174_v20, %v884_v35  ;;  %v1248_v48 = vmax.f32 %v1058_v54, 0.0  ;;  %v1250_v8 = vmax.f32 %v1171_v11, 0.0 }
 0x1c2   : > { %v1251_v47 = vmax.f32 %v1060_v53, 0.0  ;;  %v1253_v7 = vmax.f32 %v1173_v32, 0.0 }
 0x1c3   : > { %v1252_v50 = vmax.f32 %v1062_v57, 0.0  ;;  %v1254_v9 = vmax.f32 %v1175_v62, 0.0 }
 0x1c4   : > { %v1311_v1 = vpack.c.bf16 %v1251_v47, %v1247_v6  ;;  %v1313_v16 = vpack.c.bf16 %v1253_v7, %v1249_v63 }
 0x1c5   : > { %v1312_v45 = vpack.c.bf16 %v1252_v50, %v1248_v48  ;;  %v1314_v17 = vpack.c.bf16 %v1254_v9, %v1250_v8  ;;  %v1065_v18 = vpop.f32.mrb[4].mxu0  ;;  %v1178_v22 = vpop.f32.mrb[4].mxu1 }
 0x1c6   : > { %v1066_v41 = vadd.f32 %v1065_v18, %v889_v10  ;;  %v1179_v36 = vadd.f32 %v1178_v22, %v889_v10  ;;  %v1067_v23 = vpop.f32.mrb[5].mxu0  ;;  %v1180_v24 = vpop.f32.mrb[5].mxu1 }
 0x1c7   : > { %v1068_v25 = vadd.f32 %v1067_v23, %v889_v10  ;;  %v1181_v28 = vadd.f32 %v1180_v24, %v889_v10  ;;  %v1069_v59 = vpop.f32.mrb[6].mxu0  ;;  %v1182_v60 = vpop.f32.mrb[6].mxu1  ;;  %1668 = vmatprep.subr.bf16.mxu0 %v1312_v45  ;;  %2021 = vmatprep.subr.bf16.mxu1 %v1314_v17 }
 0x1c8   : > { %v1070_v61 = vadd.f32 %v1069_v59, %v894_v0  ;;  %v1183_v52 = vadd.f32 %v1182_v60, %v894_v0  ;;  %v1071_v26 = vpop.f32.mrb[7].mxu0  ;;  %v1184_v30 = vpop.f32.mrb[7].mxu1  ;;  %1669 = vmatpush1.bf16.msra.mxu0 %v1311_v1  ;;  %2022 = vmatpush1.bf16.msra.mxu1 %v1313_v16  ;;  %v1255_v27 = vmax.f32 %v1066_v41, 0.0  ;;  %v1257_v29 = vmax.f32 %v1179_v36, 0.0 }
 0x1c9   : > { %v1072_v42 = vadd.f32 %v1071_v26, %v894_v0  ;;  %v1185_v21 = vadd.f32 %v1184_v30, %v894_v0  ;;  %v1256_v40 = vmax.f32 %v1068_v25, 0.0  ;;  %v1258_v38 = vmax.f32 %v1181_v28, 0.0  ;;  %v914_v8 = vpop.permute.xlu0 %913  ;;  %v909_v50 = vpop.permute.xlu1 %908 }
 0x1ca   : > { %v1259_v51 = vmax.f32 %v1070_v61, 0.0  ;;  %v1261_v37 = vmax.f32 %v1183_v52, 0.0 }
 0x1cb   : > { %v1260_v58 = vmax.f32 %v1072_v42, 0.0  ;;  %v1262_v34 = vmax.f32 %v1185_v21, 0.0 }
 0x1cc   : > { %v1315_v15 = vpack.c.bf16 %v1259_v51, %v1255_v27  ;;  %v1317_v39 = vpack.c.bf16 %v1261_v37, %v1257_v29 }
 0x1cd   : > { %v1316_v33 = vpack.c.bf16 %v1260_v58, %v1256_v40  ;;  %v1318_v14 = vpack.c.bf16 %v1262_v34, %v1258_v38  ;;  %v1075_v31 = vpop.f32.mrb[8].mxu0  ;;  %v1188_v35 = vpop.f32.mrb[8].mxu1 }
 0x1ce   : > { %v1076_v19 = vadd.f32 %v1075_v31, %v899_v13  ;;  %v1189_v43 = vadd.f32 %v1188_v35, %v899_v13  ;;  %v1077_v44 = vpop.f32.mrb[9].mxu0  ;;  %v1190_v49 = vpop.f32.mrb[9].mxu1 }
 0x1cf   : > { %v1078_v2 = vadd.f32 %v1077_v44, %v899_v13  ;;  %v1191_v4 = vadd.f32 %v1190_v49, %v899_v13  ;;  %v1079_v3 = vpop.f32.mrb[10].mxu0  ;;  %v1192_v54 = vpop.f32.mrb[10].mxu1  ;;  %1670 = vmatprep.subr.bf16.mxu0 %v1316_v33  ;;  %2023 = vmatprep.subr.bf16.mxu1 %v1318_v14 }
 0x1d0   : > { %v1080_v11 = vadd.f32 %v1079_v3, %v904_v12  ;;  %v1193_v55 = vadd.f32 %v1192_v54, %v904_v12  ;;  %v1081_v56 = vpop.f32.mrb[11].mxu0  ;;  %v1194_v53 = vpop.f32.mrb[11].mxu1  ;;  %1671 = vmatpush1.bf16.msra.mxu0 %v1315_v15  ;;  %2024 = vmatpush1.bf16.msra.mxu1 %v1317_v39  ;;  %v1263_v20 = vmax.f32 %v1076_v19, 0.0  ;;  %v1265_v57 = vmax.f32 %v1189_v43, 0.0 }
 0x1d1   : > { %v1082_v32 = vadd.f32 %v1081_v56, %v904_v12  ;;  %v1195_v46 = vadd.f32 %v1194_v53, %v904_v12  ;;  %v1264_v63 = vmax.f32 %v1078_v2, 0.0  ;;  %v1266_v47 = vmax.f32 %v1191_v4, 0.0  ;;  %v924_v38 = vpop.permute.xlu0 %923  ;;  %v919_v58 = vpop.permute.xlu1 %918 }
 0x1d2   : > { %v1267_v62 = vmax.f32 %v1080_v11, 0.0  ;;  %v1269_v6 = vmax.f32 %v1193_v55, 0.0 }
 0x1d3   : > { %v1268_v7 = vmax.f32 %v1082_v32, 0.0  ;;  %v1270_v48 = vmax.f32 %v1195_v46, 0.0 }
 0x1d4   : > { %v1319_v9 = vpack.c.bf16 %v1267_v62, %v1263_v20  ;;  %v1321_v0 = vpack.c.bf16 %v1269_v6, %v1265_v57 }
 0x1d5   : > { %v1320_v10 = vpack.c.bf16 %v1268_v7, %v1264_v63  ;;  %v1322_v1 = vpack.c.bf16 %v1270_v48, %v1266_v47  ;;  %v1085_v16 = vpop.f32.mrb[12].mxu0  ;;  %v1198_v45 = vpop.f32.mrb[12].mxu1 }
 0x1d6   : > { %v1086_v17 = vadd.f32 %v1085_v16, %v909_v50  ;;  %v1199_v18 = vadd.f32 %v1198_v45, %v909_v50  ;;  %v1087_v22 = vpop.f32.mrb[13].mxu0  ;;  %v1200_v41 = vpop.f32.mrb[13].mxu1 }
 0x1d7   : > { %v1088_v36 = vadd.f32 %v1087_v22, %v909_v50  ;;  %v1201_v23 = vadd.f32 %v1200_v41, %v909_v50  ;;  %v1089_v24 = vpop.f32.mrb[14].mxu0  ;;  %v1202_v25 = vpop.f32.mrb[14].mxu1  ;;  %1672 = vmatprep.subr.bf16.mxu0 %v1320_v10  ;;  %2025 = vmatprep.subr.bf16.mxu1 %v1322_v1 }
 0x1d8   : > { %v1090_v28 = vadd.f32 %v1089_v24, %v914_v8  ;;  %v1203_v59 = vadd.f32 %v1202_v25, %v914_v8  ;;  %v1091_v60 = vpop.f32.mrb[15].mxu0  ;;  %v1204_v61 = vpop.f32.mrb[15].mxu1  ;;  %1673 = vmatpush1.bf16.msra.mxu0 %v1319_v9  ;;  %2026 = vmatpush1.bf16.msra.mxu1 %v1321_v0  ;;  %v1271_v30 = vmax.f32 %v1086_v17, 0.0  ;;  %v1273_v42 = vmax.f32 %v1199_v18, 0.0 }
 0x1d9   : > { %v1092_v52 = vadd.f32 %v1091_v60, %v914_v8  ;;  %v1205_v26 = vadd.f32 %v1204_v61, %v914_v8  ;;  %v1272_v29 = vmax.f32 %v1088_v36, 0.0  ;;  %v1274_v51 = vmax.f32 %v1201_v23, 0.0  ;;  %v934_v47 = vpop.permute.xlu0 %933  ;;  %v929_v7 = vpop.permute.xlu1 %928 }
 0x1da   : > { %v1275_v21 = vmax.f32 %v1090_v28, 0.0  ;;  %v1277_v27 = vmax.f32 %v1203_v59, 0.0 }
 0x1db   : > { %v1276_v37 = vmax.f32 %v1092_v52, 0.0  ;;  %v1278_v40 = vmax.f32 %v1205_v26, 0.0 }
 0x1dc   : > { %v1323_v34 = vpack.c.bf16 %v1275_v21, %v1271_v30  ;;  %v1325_v12 = vpack.c.bf16 %v1277_v27, %v1273_v42 }
 0x1dd   : > { %v1324_v13 = vpack.c.bf16 %v1276_v37, %v1272_v29  ;;  %v1326_v15 = vpack.c.bf16 %v1278_v40, %v1274_v51  ;;  %v1095_v39 = vpop.f32.mrb[16].mxu0  ;;  %v1208_v33 = vpop.f32.mrb[16].mxu1 }
 0x1de   : > { %v1096_v14 = vadd.f32 %v1095_v39, %v919_v58  ;;  %v1209_v31 = vadd.f32 %v1208_v33, %v919_v58  ;;  %v1097_v35 = vpop.f32.mrb[17].mxu0  ;;  %v1210_v19 = vpop.f32.mrb[17].mxu1 }
 0x1df   : > { %v1098_v43 = vadd.f32 %v1097_v35, %v919_v58  ;;  %v1211_v44 = vadd.f32 %v1210_v19, %v919_v58  ;;  %v1099_v49 = vpop.f32.mrb[18].mxu0  ;;  %v1212_v2 = vpop.f32.mrb[18].mxu1  ;;  %1674 = vmatprep.subr.bf16.mxu0 %v1324_v13  ;;  %2027 = vmatprep.subr.bf16.mxu1 %v1326_v15 }
 0x1e0   : > { %v1100_v4 = vadd.f32 %v1099_v49, %v924_v38  ;;  %v1213_v3 = vadd.f32 %v1212_v2, %v924_v38  ;;  %v1101_v54 = vpop.f32.mrb[19].mxu0  ;;  %v1214_v11 = vpop.f32.mrb[19].mxu1  ;;  %1675 = vmatpush1.bf16.msra.mxu0 %v1323_v34  ;;  %2028 = vmatpush1.bf16.msra.mxu1 %v1325_v12  ;;  %v1279_v53 = vmax.f32 %v1096_v14, 0.0  ;;  %v1281_v32 = vmax.f32 %v1209_v31, 0.0 }
 0x1e1   : > { %v1102_v55 = vadd.f32 %v1101_v54, %v924_v38  ;;  %v1215_v56 = vadd.f32 %v1214_v11, %v924_v38  ;;  %v1280_v57 = vmax.f32 %v1098_v43, 0.0  ;;  %v1282_v62 = vmax.f32 %v1211_v44, 0.0  ;;  %v944_v51 = vpop.permute.xlu0 %943  ;;  %v939_v37 = vpop.permute.xlu1 %938 }
 0x1e2   : > { %v1283_v46 = vmax.f32 %v1100_v4, 0.0  ;;  %v1285_v20 = vmax.f32 %v1213_v3, 0.0 }
 0x1e3   : > { %v1284_v6 = vmax.f32 %v1102_v55, 0.0  ;;  %v1286_v63 = vmax.f32 %v1215_v56, 0.0 }
 0x1e4   : > { %v1327_v48 = vpack.c.bf16 %v1283_v46, %v1279_v53  ;;  %v1329_v8 = vpack.c.bf16 %v1285_v20, %v1281_v32 }
 0x1e5   : > { %v1328_v50 = vpack.c.bf16 %v1284_v6, %v1280_v57  ;;  %v1330_v9 = vpack.c.bf16 %v1286_v63, %v1282_v62  ;;  %v1105_v0 = vpop.f32.mrb[20].mxu0  ;;  %v1218_v10 = vpop.f32.mrb[20].mxu1 }
 0x1e6   : > { %v1106_v1 = vadd.f32 %v1105_v0, %v929_v7  ;;  %v1219_v16 = vadd.f32 %v1218_v10, %v929_v7  ;;  %v1107_v45 = vpop.f32.mrb[21].mxu0  ;;  %v1220_v17 = vpop.f32.mrb[21].mxu1 }
 0x1e7   : > { %v1108_v18 = vadd.f32 %v1107_v45, %v929_v7  ;;  %v1221_v22 = vadd.f32 %v1220_v17, %v929_v7  ;;  %v1109_v41 = vpop.f32.mrb[22].mxu0  ;;  %v1222_v36 = vpop.f32.mrb[22].mxu1  ;;  %1676 = vmatprep.subr.bf16.mxu0 %v1328_v50  ;;  %2029 = vmatprep.subr.bf16.mxu1 %v1330_v9 }
 0x1e8   : > { %v1110_v23 = vadd.f32 %v1109_v41, %v934_v47  ;;  %v1223_v24 = vadd.f32 %v1222_v36, %v934_v47  ;;  %v1111_v25 = vpop.f32.mrb[23].mxu0  ;;  %v1224_v28 = vpop.f32.mrb[23].mxu1  ;;  %1677 = vmatpush1.bf16.msra.mxu0 %v1327_v48  ;;  %2030 = vmatpush1.bf16.msra.mxu1 %v1329_v8  ;;  %v1287_v61 = vmax.f32 %v1106_v1, 0.0  ;;  %v1289_v52 = vmax.f32 %v1219_v16, 0.0 }
 0x1e9   : > { %v1112_v59 = vadd.f32 %v1111_v25, %v934_v47  ;;  %v1225_v60 = vadd.f32 %v1224_v28, %v934_v47  ;;  %v1288_v42 = vmax.f32 %v1108_v18, 0.0  ;;  %v1290_v21 = vmax.f32 %v1221_v22, 0.0  ;;  %v954_v62 = vpop.permute.xlu0 %953  ;;  %v949_v6 = vpop.permute.xlu1 %948 }
 0x1ea   : > { %v1291_v26 = vmax.f32 %v1110_v23, 0.0  ;;  %v1293_v30 = vmax.f32 %v1223_v24, 0.0 }
 0x1eb   : > { %v1292_v27 = vmax.f32 %v1112_v59, 0.0  ;;  %v1294_v29 = vmax.f32 %v1225_v60, 0.0 }
 0x1ec   : > { %v1331_v40 = vpack.c.bf16 %v1291_v26, %v1287_v61  ;;  %v1333_v38 = vpack.c.bf16 %v1293_v30, %v1289_v52 }
 0x1ed   : > { %v1332_v58 = vpack.c.bf16 %v1292_v27, %v1288_v42  ;;  %v1334_v34 = vpack.c.bf16 %v1294_v29, %v1290_v21  ;;  %v1115_v12 = vpop.f32.mrb[24].mxu0  ;;  %v1228_v13 = vpop.f32.mrb[24].mxu1 }
 0x1ee   : > { %v1116_v15 = vadd.f32 %v1115_v12, %v939_v37  ;;  %v1229_v39 = vadd.f32 %v1228_v13, %v939_v37  ;;  %v1117_v33 = vpop.f32.mrb[25].mxu0  ;;  %v1230_v14 = vpop.f32.mrb[25].mxu1  ;;  %v3363_v12 = vld [vmem:[%s4835_s5 + $0x28] sm:$0xff]   ;;  %v3364_v13 = vld [vmem:[%s4835_s5 + $0x30] sm:$0xff]  }
 0x1ef   : > { %v1118_v31 = vadd.f32 %v1117_v33, %v939_v37  ;;  %v1231_v35 = vadd.f32 %v1230_v14, %v939_v37  ;;  %v1119_v19 = vpop.f32.mrb[26].mxu0  ;;  %v1232_v43 = vpop.f32.mrb[26].mxu1  ;;  %1678 = vmatprep.subr.bf16.mxu0 %v1332_v58  ;;  %2031 = vmatprep.subr.bf16.mxu1 %v1334_v34  ;;  %v3358_v37 = vld [vmem:[%s4835_s5] sm:$0xff]   ;;  %v3361_v58 = vld [vmem:[%s4835_s5 + $0x18] sm:$0xff]   ;;  %v3367_v33 = vld [vmem:[%s4835_s5 + $0x48] sm:$0xff]  }
 0x1f0   : > { %v1120_v44 = vadd.f32 %v1119_v19, %v944_v51  ;;  %v1233_v49 = vadd.f32 %v1232_v43, %v944_v51  ;;  %v1121_v2 = vpop.f32.mrb[27].mxu0  ;;  %v1234_v4 = vpop.f32.mrb[27].mxu1  ;;  %1679 = vmatpush1.bf16.msra.mxu0 %v1331_v40  ;;  %2032 = vmatpush1.bf16.msra.mxu1 %v1333_v38  ;;  %v1295_v11 = vmax.f32 %v1116_v15, 0.0  ;;  %v1297_v55 = vmax.f32 %v1229_v39, 0.0  ;;  %v3359_v40 = vld [vmem:[%s4835_s5 + $0x8] sm:$0xff]   ;;  %v3360_v38 = vld [vmem:[%s4835_s5 + $0x10] sm:$0xff]  }
 0x1f1   : > { %v1122_v3 = vadd.f32 %v1121_v2, %v944_v51  ;;  %v1235_v54 = vadd.f32 %v1234_v4, %v944_v51  ;;  %v1296_v32 = vmax.f32 %v1118_v31, 0.0  ;;  %v1298_v46 = vmax.f32 %v1231_v35, 0.0  ;;  %v3362_v34 = vld [vmem:[%s4835_s5 + $0x20] sm:$0xff]   ;;  %v3365_v15 = vld [vmem:[%s4835_s5 + $0x38] sm:$0xff]   ;;  %v3368_v14 = vld [vmem:[%s4835_s5 + $0x50] sm:$0xff]  }
 0x1f2   : > { %v1299_v56 = vmax.f32 %v1120_v44, 0.0  ;;  %v1301_v53 = vmax.f32 %v1233_v49, 0.0  ;;  %v3366_v39 = vld [vmem:[%s4835_s5 + $0x40] sm:$0xff]   ;;  %v3369_v31 = vld [vmem:[%s4835_s5 + $0x58] sm:$0xff]   ;;  %v3371_v19 = vld [vmem:[%s4835_s5 + $0x68] sm:$0xff]  }
 0x1f3   : > { %v1300_v20 = vmax.f32 %v1122_v3, 0.0  ;;  %v1302_v57 = vmax.f32 %v1235_v54, 0.0  ;;  %v3370_v35 = vld [vmem:[%s4835_s5 + $0x60] sm:$0xff]   ;;  %v3372_v43 = vld [vmem:[%s4835_s5 + $0x70] sm:$0xff]   ;;  %v3373_v44 = vld [vmem:[%s4835_s5 + $0x78] sm:$0xff]  }
 0x1f4   : > { %v1335_v63 = vpack.c.bf16 %v1299_v56, %v1295_v11  ;;  %v1337_v47 = vpack.c.bf16 %v1301_v53, %v1297_v55  ;;  %v3374_v49 = vld [vmem:[%s4835_s5 + $0x80] sm:$0xff]   ;;  %v3375_v2 = vld [vmem:[%s4835_s5 + $0x88] sm:$0xff]   ;;  %v3376_v4 = vld [vmem:[%s4835_s5 + $0x90] sm:$0xff]  }
 0x1f5   : > { %v1336_v7 = vpack.c.bf16 %v1300_v20, %v1296_v32  ;;  %v1338_v48 = vpack.c.bf16 %v1302_v57, %v1298_v46  ;;  %v1125_v8 = vpop.f32.mrb[28].mxu0  ;;  %v1238_v50 = vpop.f32.mrb[28].mxu1  ;;  %v3377_v3 = vld [vmem:[%s4835_s5 + $0x98] sm:$0xff]   ;;  %v3378_v54 = vld [vmem:[%s4835_s5 + $0xa0] sm:$0xff]   ;;  %v3379_v11 = vld [vmem:[%s4835_s5 + $0xa8] sm:$0xff]  }
 0x1f6   : > { %v1126_v9 = vadd.f32 %v1125_v8, %v949_v6  ;;  %v1239_v0 = vadd.f32 %v1238_v50, %v949_v6  ;;  %v1127_v10 = vpop.f32.mrb[29].mxu0  ;;  %v1240_v1 = vpop.f32.mrb[29].mxu1  ;;  %v3380_v55 = vld [vmem:[%s4835_s5 + $0xb0] sm:$0xff]   ;;  %v3381_v56 = vld [vmem:[%s4835_s5 + $0xb8] sm:$0xff]   ;;  %v3382_v53 = vld [vmem:[%s4835_s5 + $0xc0] sm:$0xff]  }
 0x1f7   : > { %v1128_v16 = vadd.f32 %v1127_v10, %v949_v6  ;;  %v1241_v45 = vadd.f32 %v1240_v1, %v949_v6  ;;  %v1129_v17 = vpop.f32.mrb[30].mxu0  ;;  %v1242_v18 = vpop.f32.mrb[30].mxu1  ;;  %1680 = vmatprep.subr.bf16.mxu0 %v1336_v7  ;;  %2033 = vmatprep.subr.bf16.mxu1 %v1338_v48  ;;  %v3383_v32 = vld [vmem:[%s4835_s5 + $0xc8] sm:$0xff]   ;;  %v3384_v46 = vld [vmem:[%s4835_s5 + $0xd0] sm:$0xff]  }
 0x1f8   : > { %v1130_v22 = vadd.f32 %v1129_v17, %v954_v62  ;;  %v1243_v41 = vadd.f32 %v1242_v18, %v954_v62  ;;  %v1131_v36 = vpop.f32.mrb[31].mxu0  ;;  %v1244_v23 = vpop.f32.mrb[31].mxu1  ;;  %1681 = vmatpush1.bf16.msra.mxu0 %v1335_v63  ;;  %2034 = vmatpush1.bf16.msra.mxu1 %v1337_v47  ;;  %v1303_v28 = vmax.f32 %v1126_v9, 0.0  ;;  %v1305_v59 = vmax.f32 %v1239_v0, 0.0  ;;  %v3385_v63 = vld [vmem:[%s4835_s5 + $0xd8] sm:$0xff]  }
 0x1f9   : > { %v1132_v24 = vadd.f32 %v1131_v36, %v954_v62  ;;  %v1245_v25 = vadd.f32 %v1244_v23, %v954_v62  ;;  %v1304_v52 = vmax.f32 %v1128_v16, 0.0  ;;  %v1306_v26 = vmax.f32 %v1241_v45, 0.0 }
 0x1fa   : > { %v1307_v60 = vmax.f32 %v1130_v22, 0.0  ;;  %v1309_v61 = vmax.f32 %v1243_v41, 0.0  ;;  %v3386_v41 = vld [vmem:[%s4835_s5 + $0xe0] sm:$0xff]  }
 0x1fb   : > { %v1308_v30 = vmax.f32 %v1132_v24, 0.0  ;;  %v1310_v42 = vmax.f32 %v1245_v25, 0.0 }
 0x1fc   : > { %v1339_v21 = vpack.c.bf16 %v1307_v60, %v1303_v28  ;;  %v1341_v27 = vpack.c.bf16 %v1309_v61, %v1305_v59 }
 0x1fd   : > { %v1340_v29 = vpack.c.bf16 %v1308_v30, %v1304_v52  ;;  %v1342_v51 = vpack.c.bf16 %v1310_v42, %v1306_v26 }
 0x1ff   : > { %1682 = vmatprep.subr.bf16.mxu0 %v1340_v29  ;;  %2035 = vmatprep.subr.bf16.mxu1 %v1342_v51  ;;  %v3387_v29 = vld [vmem:[%s4835_s5 + $0xe8] sm:$0xff]  }
 0x200   : > { %1683 = vmatpush1.bf16.msra.mxu0 %v1339_v21  ;;  %2036 = vmatpush1.bf16.msra.mxu1 %v1341_v27 }
 0x203   : > { %1701 = vmatmul.mubr.bf16.vlgmr.msra.gmra.mrb[32].mxu0 %v3358_v37  ;;  %2054 = vmatmul.mubr.bf16.vlgmr.msra.gmra.mrb[32].mxu1 %v3358_v37 }
 0x204   : > { %1710 = vmatprep.mubr.bf16.mxu0 %v3416_v5  ;;  %2063 = vmatprep.mubr.bf16.mxu1 %v3416_v5 }
 0x20b   : > { %1711 = vmatmul.mubr.bf16.gmra.mrb[36].mxu0 %v3359_v40  ;;  %2064 = vmatmul.mubr.bf16.gmra.mrb[36].mxu1 %v3359_v40 }
 0x20c   : > { %1720 = vmatprep.mubr.bf16.mxu0 %v3416_v5  ;;  %2073 = vmatprep.mubr.bf16.mxu1 %v3416_v5 }
 0x213   : > { %1721 = vmatmul.mubr.bf16.gmra.mrb[40].mxu0 %v3360_v38  ;;  %2074 = vmatmul.mubr.bf16.gmra.mrb[40].mxu1 %v3360_v38 }
 0x214   : > { %1730 = vmatprep.mubr.bf16.mxu0 %v3416_v5  ;;  %2083 = vmatprep.mubr.bf16.mxu1 %v3416_v5 }
 0x21b   : > { %1731 = vmatmul.mubr.bf16.gmra.mrb[44].mxu0 %v3361_v58  ;;  %2084 = vmatmul.mubr.bf16.gmra.mrb[44].mxu1 %v3361_v58 }
 0x21c   : > { %1740 = vmatprep.mubr.bf16.mxu0 %v3416_v5  ;;  %2093 = vmatprep.mubr.bf16.mxu1 %v3416_v5 }
 0x223   : > { %1741 = vmatmul.mubr.bf16.gmra.mrb[48].mxu0 %v3362_v34  ;;  %2094 = vmatmul.mubr.bf16.gmra.mrb[48].mxu1 %v3362_v34 }
 0x224   : > { %1750 = vmatprep.mubr.bf16.mxu0 %v3416_v5  ;;  %2103 = vmatprep.mubr.bf16.mxu1 %v3416_v5 }
 0x22b   : > { %1751 = vmatmul.mubr.bf16.gmra.mrb[52].mxu0 %v3363_v12  ;;  %2104 = vmatmul.mubr.bf16.gmra.mrb[52].mxu1 %v3363_v12 }
 0x22c   : > { %1760 = vmatprep.mubr.bf16.mxu0 %v3416_v5  ;;  %2113 = vmatprep.mubr.bf16.mxu1 %v3416_v5 }
 0x233   : > { %1761 = vmatmul.mubr.bf16.gmra.mrb[56].mxu0 %v3364_v13  ;;  %2114 = vmatmul.mubr.bf16.gmra.mrb[56].mxu1 %v3364_v13 }
 0x234   : > { %1770 = vmatprep.mubr.bf16.mxu0 %v3416_v5  ;;  %2123 = vmatprep.mubr.bf16.mxu1 %v3416_v5 }
 0x23b   : > { %1771 = vmatmul.mubr.bf16.gmra.mrb[60].mxu0 %v3365_v15  ;;  %2124 = vmatmul.mubr.bf16.gmra.mrb[60].mxu1 %v3365_v15 }
 0x23c   : > { %1780 = vmatprep.mubr.bf16.mxu0 %v3416_v5  ;;  %2133 = vmatprep.mubr.bf16.mxu1 %v3416_v5 }
 0x243   : > { %1781 = vmatmul.mubr.bf16.gmra.mrb[64].mxu0 %v3366_v39  ;;  %2134 = vmatmul.mubr.bf16.gmra.mrb[64].mxu1 %v3366_v39  ;;  %v3417_v39 = vmov -inf  }
 0x244   : > { %1790 = vmatprep.mubr.bf16.mxu0 %v3416_v5  ;;  %2143 = vmatprep.mubr.bf16.mxu1 %v3416_v5  ;;  %1348 = vst.msk [vmem:[%s4028_s19] sm:$0xff] %vm1347_vm1, %v3417_v39  ;;  %1349 = vst.msk [vmem:[%s4028_s19 + $0x8] sm:$0xff] %vm1347_vm1, %v3417_v39 }
 0x245   : > { %1350 = vst.msk [vmem:[%s4028_s19 + $0x10] sm:$0xff] %vm1347_vm1, %v3417_v39  ;;  %1351 = vst.msk [vmem:[%s4028_s19 + $0x18] sm:$0xff] %vm1347_vm1, %v3417_v39 }
 0x246   : > { %1352 = vst.msk [vmem:[%s4028_s19 + $0x20] sm:$0xff] %vm1347_vm1, %v3417_v39  ;;  %1353 = vst.msk [vmem:[%s4028_s19 + $0x28] sm:$0xff] %vm1347_vm1, %v3417_v39 }
 0x247   : > { %1354 = vst.msk [vmem:[%s4028_s19 + $0x30] sm:$0xff] %vm1347_vm1, %v3417_v39  ;;  %1355 = vst.msk [vmem:[%s4028_s19 + $0x38] sm:$0xff] %vm1347_vm1, %v3417_v39 }
 0x248   : > { %1356 = vst.msk [vmem:[%s4028_s19 + $0x40] sm:$0xff] %vm1347_vm1, %v3417_v39  ;;  %1357 = vst.msk [vmem:[%s4028_s19 + $0x48] sm:$0xff] %vm1347_vm1, %v3417_v39 }
 0x249   : > { %1358 = vst.msk [vmem:[%s4028_s19 + $0x50] sm:$0xff] %vm1347_vm1, %v3417_v39  ;;  %1359 = vst.msk [vmem:[%s4028_s19 + $0x58] sm:$0xff] %vm1347_vm1, %v3417_v39 }
 0x24a   : > { %1360 = vst.msk [vmem:[%s4028_s19 + $0x60] sm:$0xff] %vm1347_vm1, %v3417_v39  ;;  %1361 = vst.msk [vmem:[%s4028_s19 + $0x68] sm:$0xff] %vm1347_vm1, %v3417_v39 }
 0x24b   : > { %1791 = vmatmul.mubr.bf16.gmra.mrb[68].mxu0 %v3367_v33  ;;  %2144 = vmatmul.mubr.bf16.gmra.mrb[68].mxu1 %v3367_v33  ;;  %1362 = vst.msk [vmem:[%s4028_s19 + $0x70] sm:$0xff] %vm1347_vm1, %v3417_v39  ;;  %1363 = vst.msk [vmem:[%s4028_s19 + $0x78] sm:$0xff] %vm1347_vm1, %v3417_v39 }
 0x24c   : > { %1800 = vmatprep.mubr.bf16.mxu0 %v3416_v5  ;;  %2153 = vmatprep.mubr.bf16.mxu1 %v3416_v5  ;;  %1364 = vst.msk [vmem:[%s4028_s19 + $0x80] sm:$0xff] %vm1347_vm1, %v3417_v39  ;;  %1365 = vst.msk [vmem:[%s4028_s19 + $0x88] sm:$0xff] %vm1347_vm1, %v3417_v39 }
 0x24d   : > { %1366 = vst.msk [vmem:[%s4028_s19 + $0x90] sm:$0xff] %vm1347_vm1, %v3417_v39  ;;  %1367 = vst.msk [vmem:[%s4028_s19 + $0x98] sm:$0xff] %vm1347_vm1, %v3417_v39 }
 0x24e   : > { %1368 = vst.msk [vmem:[%s4028_s19 + $0xa0] sm:$0xff] %vm1347_vm1, %v3417_v39  ;;  %1369 = vst.msk [vmem:[%s4028_s19 + $0xa8] sm:$0xff] %vm1347_vm1, %v3417_v39 }
 0x24f   : > { %1370 = vst.msk [vmem:[%s4028_s19 + $0xb0] sm:$0xff] %vm1347_vm1, %v3417_v39  ;;  %1371 = vst.msk [vmem:[%s4028_s19 + $0xb8] sm:$0xff] %vm1347_vm1, %v3417_v39 }
 0x250   : > { %1372 = vst.msk [vmem:[%s4028_s19 + $0xc0] sm:$0xff] %vm1347_vm1, %v3417_v39  ;;  %1373 = vst.msk [vmem:[%s4028_s19 + $0xc8] sm:$0xff] %vm1347_vm1, %v3417_v39 }
 0x251   : > { %1374 = vst.msk [vmem:[%s4028_s19 + $0xd0] sm:$0xff] %vm1347_vm1, %v3417_v39  ;;  %1375 = vst.msk [vmem:[%s4028_s19 + $0xd8] sm:$0xff] %vm1347_vm1, %v3417_v39 }
 0x252   : > { %1376 = vst.msk [vmem:[%s4028_s19 + $0xe0] sm:$0xff] %vm1347_vm1, %v3417_v39  ;;  %1377 = vst.msk [vmem:[%s4028_s19 + $0xe8] sm:$0xff] %vm1347_vm1, %v3417_v39 }
 0x253   : > { %1801 = vmatmul.mubr.bf16.gmra.mrb[72].mxu0 %v3368_v14  ;;  %2154 = vmatmul.mubr.bf16.gmra.mrb[72].mxu1 %v3368_v14  ;;  %1378 = vst.msk [vmem:[%s4028_s19 + $0xf0] sm:$0xff] %vm1347_vm1, %v3417_v39  ;;  %1379 = vst.msk [vmem:[%s4028_s19 + $0xf8] sm:$0xff] %vm1347_vm1, %v3417_v39 }
 0x254   : > { %1810 = vmatprep.mubr.bf16.mxu0 %v3416_v5  ;;  %2163 = vmatprep.mubr.bf16.mxu1 %v3416_v5  ;;  %1380 = vst.msk [vmem:[%s4028_s19 + $0x100] sm:$0xff] %vm1347_vm1, %v3417_v39  ;;  %1381 = vst.msk [vmem:[%s4028_s19 + $0x108] sm:$0xff] %vm1347_vm1, %v3417_v39 }
 0x255   : > { %1382 = vst.msk [vmem:[%s4028_s19 + $0x110] sm:$0xff] %vm1347_vm1, %v3417_v39  ;;  %1383 = vst.msk [vmem:[%s4028_s19 + $0x118] sm:$0xff] %vm1347_vm1, %v3417_v39 }
 0x256   : > { %1384 = vst.msk [vmem:[%s4028_s19 + $0x120] sm:$0xff] %vm1347_vm1, %v3417_v39  ;;  %1385 = vst.msk [vmem:[%s4028_s19 + $0x128] sm:$0xff] %vm1347_vm1, %v3417_v39 }
 0x257   : > { %1386 = vst.msk [vmem:[%s4028_s19 + $0x130] sm:$0xff] %vm1347_vm1, %v3417_v39  ;;  %1387 = vst.msk [vmem:[%s4028_s19 + $0x138] sm:$0xff] %vm1347_vm1, %v3417_v39 }
 0x258   : > { %1388 = vst.msk [vmem:[%s4028_s19 + $0x140] sm:$0xff] %vm1347_vm1, %v3417_v39  ;;  %1389 = vst.msk [vmem:[%s4028_s19 + $0x148] sm:$0xff] %vm1347_vm1, %v3417_v39 }
 0x259   : > { %1390 = vst.msk [vmem:[%s4028_s19 + $0x150] sm:$0xff] %vm1347_vm1, %v3417_v39  ;;  %1391 = vst.msk [vmem:[%s4028_s19 + $0x158] sm:$0xff] %vm1347_vm1, %v3417_v39 }
 0x25a   : > { %1392 = vst.msk [vmem:[%s4028_s19 + $0x160] sm:$0xff] %vm1347_vm1, %v3417_v39  ;;  %1393 = vst.msk [vmem:[%s4028_s19 + $0x168] sm:$0xff] %vm1347_vm1, %v3417_v39 }
 0x25b   : > { %1811 = vmatmul.mubr.bf16.gmra.mrb[76].mxu0 %v3369_v31  ;;  %2164 = vmatmul.mubr.bf16.gmra.mrb[76].mxu1 %v3369_v31  ;;  %1394 = vst.msk [vmem:[%s4028_s19 + $0x170] sm:$0xff] %vm1347_vm1, %v3417_v39  ;;  %1395 = vst.msk [vmem:[%s4028_s19 + $0x178] sm:$0xff] %vm1347_vm1, %v3417_v39 }
 0x25c   : > { %1820 = vmatprep.mubr.bf16.mxu0 %v3416_v5  ;;  %2173 = vmatprep.mubr.bf16.mxu1 %v3416_v5  ;;  %1396 = vst.msk [vmem:[%s4028_s19 + $0x180] sm:$0xff] %vm1347_vm1, %v3417_v39  ;;  %1397 = vst.msk [vmem:[%s4028_s19 + $0x188] sm:$0xff] %vm1347_vm1, %v3417_v39 }
 0x25d   : > { %1398 = vst.msk [vmem:[%s4028_s19 + $0x190] sm:$0xff] %vm1347_vm1, %v3417_v39  ;;  %1399 = vst.msk [vmem:[%s4028_s19 + $0x198] sm:$0xff] %vm1347_vm1, %v3417_v39 }
 0x25e   : > { %1400 = vst.msk [vmem:[%s4028_s19 + $0x1a0] sm:$0xff] %vm1347_vm1, %v3417_v39  ;;  %1401 = vst.msk [vmem:[%s4028_s19 + $0x1a8] sm:$0xff] %vm1347_vm1, %v3417_v39 }
 0x25f   : > { %1402 = vst.msk [vmem:[%s4028_s19 + $0x1b0] sm:$0xff] %vm1347_vm1, %v3417_v39  ;;  %1403 = vst.msk [vmem:[%s4028_s19 + $0x1b8] sm:$0xff] %vm1347_vm1, %v3417_v39 }
 0x260   : > { %1404 = vst.msk [vmem:[%s4028_s19 + $0x1c0] sm:$0xff] %vm1347_vm1, %v3417_v39  ;;  %1405 = vst.msk [vmem:[%s4028_s19 + $0x1c8] sm:$0xff] %vm1347_vm1, %v3417_v39 }
 0x261   : > { %1406 = vst.msk [vmem:[%s4028_s19 + $0x1d0] sm:$0xff] %vm1347_vm1, %v3417_v39  ;;  %1407 = vst.msk [vmem:[%s4028_s19 + $0x1d8] sm:$0xff] %vm1347_vm1, %v3417_v39 }
 0x262   : > { %1408 = vst.msk [vmem:[%s4028_s19 + $0x1e0] sm:$0xff] %vm1347_vm1, %v3417_v39  ;;  %1409 = vst.msk [vmem:[%s4028_s19 + $0x1e8] sm:$0xff] %vm1347_vm1, %v3417_v39 }
 0x263   : > { %1821 = vmatmul.mubr.bf16.gmra.mrb[80].mxu0 %v3370_v35  ;;  %2174 = vmatmul.mubr.bf16.gmra.mrb[80].mxu1 %v3370_v35  ;;  %1410 = vst.msk [vmem:[%s4028_s19 + $0x1f0] sm:$0xff] %vm1347_vm1, %v3417_v39  ;;  %1411 = vst.msk [vmem:[%s4028_s19 + $0x1f8] sm:$0xff] %vm1347_vm1, %v3417_v39 }
 0x264   : > { %1830 = vmatprep.mubr.bf16.mxu0 %v3416_v5  ;;  %2183 = vmatprep.mubr.bf16.mxu1 %v3416_v5 }
 0x26b   : > { %1831 = vmatmul.mubr.bf16.gmra.mrb[84].mxu0 %v3371_v19  ;;  %2184 = vmatmul.mubr.bf16.gmra.mrb[84].mxu1 %v3371_v19 }
 0x26c   : > { %1840 = vmatprep.mubr.bf16.mxu0 %v3416_v5  ;;  %2193 = vmatprep.mubr.bf16.mxu1 %v3416_v5 }
 0x273   : > { %1841 = vmatmul.mubr.bf16.gmra.mrb[88].mxu0 %v3372_v43  ;;  %2194 = vmatmul.mubr.bf16.gmra.mrb[88].mxu1 %v3372_v43  ;;  %v3388_v43 = vld [vmem:[%s4835_s5 + $0xf0] sm:$0xff]  }
 0x274   : > { %1850 = vmatprep.mubr.bf16.mxu0 %v3416_v5  ;;  %2203 = vmatprep.mubr.bf16.mxu1 %v3416_v5 }
 0x27b   : > { %1851 = vmatmul.mubr.bf16.gmra.mrb[92].mxu0 %v3373_v44  ;;  %2204 = vmatmul.mubr.bf16.gmra.mrb[92].mxu1 %v3373_v44 }
 0x27c   : > { %1860 = vmatprep.mubr.bf16.mxu0 %v3416_v5  ;;  %2213 = vmatprep.mubr.bf16.mxu1 %v3416_v5 }
 0x283   : > { %1861 = vmatmul.mubr.bf16.gmra.mrb[96].mxu0 %v3374_v49  ;;  %2214 = vmatmul.mubr.bf16.gmra.mrb[96].mxu1 %v3374_v49 }
 0x284   : > { %1870 = vmatprep.mubr.bf16.mxu0 %v3416_v5  ;;  %2223 = vmatprep.mubr.bf16.mxu1 %v3416_v5 }
 0x28b   : > { %1871 = vmatmul.mubr.bf16.gmra.mrb[100].mxu0 %v3375_v2  ;;  %2224 = vmatmul.mubr.bf16.gmra.mrb[100].mxu1 %v3375_v2 }
 0x28c   : > { %1880 = vmatprep.mubr.bf16.mxu0 %v3416_v5  ;;  %2233 = vmatprep.mubr.bf16.mxu1 %v3416_v5 }
 0x293   : > { %1881 = vmatmul.mubr.bf16.gmra.mrb[104].mxu0 %v3376_v4  ;;  %2234 = vmatmul.mubr.bf16.gmra.mrb[104].mxu1 %v3376_v4 }
 0x294   : > { %1890 = vmatprep.mubr.bf16.mxu0 %v3416_v5  ;;  %2243 = vmatprep.mubr.bf16.mxu1 %v3416_v5 }
 0x29b   : > { %1891 = vmatmul.mubr.bf16.gmra.mrb[108].mxu0 %v3377_v3  ;;  %2244 = vmatmul.mubr.bf16.gmra.mrb[108].mxu1 %v3377_v3 }
 0x29c   : > { %1900 = vmatprep.mubr.bf16.mxu0 %v3416_v5  ;;  %2253 = vmatprep.mubr.bf16.mxu1 %v3416_v5 }
 0x2a3   : > { %1901 = vmatmul.mubr.bf16.gmra.mrb[112].mxu0 %v3378_v54  ;;  %2254 = vmatmul.mubr.bf16.gmra.mrb[112].mxu1 %v3378_v54 }
 0x2a4   : > { %1910 = vmatprep.mubr.bf16.mxu0 %v3416_v5  ;;  %2263 = vmatprep.mubr.bf16.mxu1 %v3416_v5 }
 0x2ab   : > { %1911 = vmatmul.mubr.bf16.gmra.mrb[116].mxu0 %v3379_v11  ;;  %2264 = vmatmul.mubr.bf16.gmra.mrb[116].mxu1 %v3379_v11 }
 0x2ac   : > { %1920 = vmatprep.mubr.bf16.mxu0 %v3416_v5  ;;  %2273 = vmatprep.mubr.bf16.mxu1 %v3416_v5 }
 0x2b3   : > { %1921 = vmatmul.mubr.bf16.gmra.mrb[120].mxu0 %v3380_v55  ;;  %2274 = vmatmul.mubr.bf16.gmra.mrb[120].mxu1 %v3380_v55 }
 0x2b4   : > { %1930 = vmatprep.mubr.bf16.mxu0 %v3416_v5  ;;  %2283 = vmatprep.mubr.bf16.mxu1 %v3416_v5 }
 0x2bb   : > { %1931 = vmatmul.mubr.bf16.gmra.mrb[124].mxu0 %v3381_v56  ;;  %2284 = vmatmul.mubr.bf16.gmra.mrb[124].mxu1 %v3381_v56 }
 0x2bc   : > { %1940 = vmatprep.mubr.bf16.mxu0 %v3416_v5  ;;  %2293 = vmatprep.mubr.bf16.mxu1 %v3416_v5 }
 0x2c3   : > { %1941 = vmatmul.mubr.bf16.gmra.mrb[128].mxu0 %v3382_v53  ;;  %2294 = vmatmul.mubr.bf16.gmra.mrb[128].mxu1 %v3382_v53 }
 0x2c4   : > { %1950 = vmatprep.mubr.bf16.mxu0 %v3416_v5  ;;  %2303 = vmatprep.mubr.bf16.mxu1 %v3416_v5 }
 0x2cb   : > { %1951 = vmatmul.mubr.bf16.gmra.mrb[132].mxu0 %v3383_v32  ;;  %2304 = vmatmul.mubr.bf16.gmra.mrb[132].mxu1 %v3383_v32 }
 0x2cc   : > { %1960 = vmatprep.mubr.bf16.mxu0 %v3416_v5  ;;  %2313 = vmatprep.mubr.bf16.mxu1 %v3416_v5 }
 0x2d3   : > { %1961 = vmatmul.mubr.bf16.gmra.mrb[136].mxu0 %v3384_v46  ;;  %2314 = vmatmul.mubr.bf16.gmra.mrb[136].mxu1 %v3384_v46 }
 0x2d4   : > { %1970 = vmatprep.mubr.bf16.mxu0 %v3416_v5  ;;  %2323 = vmatprep.mubr.bf16.mxu1 %v3416_v5 }
 0x2d6   : > { %v1702_v20 = vpop.f32.mrb[32].mxu0  ;;  %v2055_v57 = vpop.f32.mrb[32].mxu1 }
 0x2d7   : > { %v1704_v62 = vpop.f32.mrb[33].mxu0  ;;  %v2057_v6 = vpop.f32.mrb[33].mxu1 }
 0x2d8   : > { %v2374_v47 = vmax.f32 %v1702_v20, %v1704_v62  ;;  %v1706_v7 = vpop.f32.mrb[34].mxu0  ;;  %v2059_v48 = vpop.f32.mrb[34].mxu1  ;;  %v3389_v62 = vld [vmem:[%s4835_s5 + $0xf8] sm:$0xff]  }
 0x2d9   : > { %v1708_v8 = vpop.f32.mrb[35].mxu0  ;;  %v2061_v50 = vpop.f32.mrb[35].mxu1 }
 0x2da   : > { %v2379_v9 = vmax.f32 %v1706_v7, %v1708_v8  ;;  %v2375_v0 = vmax.f32 %v2374_v47, %v2055_v57 }
 0x2db   : > { %1971 = vmatmul.mubr.bf16.gmra.mrb[140].mxu0 %v3385_v63  ;;  %2324 = vmatmul.mubr.bf16.gmra.mrb[140].mxu1 %v3385_v63 }
 0x2dc   : > { %v2376_v10 = vmax.f32 %v2375_v0, %v2057_v6  ;;  %v2380_v1 = vmax.f32 %v2379_v9, %v2059_v48  ;;  %1980 = vmatprep.mubr.bf16.mxu0 %v3416_v5  ;;  %2333 = vmatprep.mubr.bf16.mxu1 %v3416_v5 }
 0x2de   : > { %v2381_v16 = vmax.f32 %v2380_v1, %v2061_v50  ;;  %v1712_v45 = vpop.f32.mrb[36].mxu0  ;;  %2377 = vmax.xlane.f32.xlu1 %v2376_v10  ;;  %v2065_v17 = vpop.f32.mrb[36].mxu1 }
 0x2df   : > { %v1714_v18 = vpop.f32.mrb[37].mxu0  ;;  %v2067_v22 = vpop.f32.mrb[37].mxu1 }
 0x2e0   : > { %v2384_v36 = vmax.f32 %v1712_v45, %v1714_v18  ;;  %2382 = vmax.xlane.f32.xlu0 %v2381_v16  ;;  %v1716_v23 = vpop.f32.mrb[38].mxu0  ;;  %v2069_v24 = vpop.f32.mrb[38].mxu1 }
 0x2e1   : > { %v1718_v25 = vpop.f32.mrb[39].mxu0  ;;  %v2071_v28 = vpop.f32.mrb[39].mxu1 }
 0x2e2   : > { %v2389_v59 = vmax.f32 %v1716_v23, %v1718_v25  ;;  %v2385_v60 = vmax.f32 %v2384_v36, %v2065_v17 }
 0x2e3   : > { %1981 = vmatmul.mubr.bf16.gmra.mrb[144].mxu0 %v3386_v41  ;;  %2334 = vmatmul.mubr.bf16.gmra.mrb[144].mxu1 %v3386_v41 }
 0x2e4   : > { %v2386_v61 = vmax.f32 %v2385_v60, %v2067_v22  ;;  %v2390_v52 = vmax.f32 %v2389_v59, %v2069_v24  ;;  %1990 = vmatprep.mubr.bf16.mxu0 %v3416_v5  ;;  %2343 = vmatprep.mubr.bf16.mxu1 %v3416_v5 }
 0x2e6   : > { %v2391_v26 = vmax.f32 %v2390_v52, %v2071_v28  ;;  %v1722_v30 = vpop.f32.mrb[40].mxu0  ;;  %2387 = vmax.xlane.f32.xlu0 %v2386_v61  ;;  %v2075_v42 = vpop.f32.mrb[40].mxu1 }
 0x2e7   : > { %v1724_v21 = vpop.f32.mrb[41].mxu0  ;;  %v4020_v27 = vpop.f32.mrb[41].mxu1 }
 0x2e8   : > { %v2394_v51 = vmax.f32 %v1722_v30, %v1724_v21  ;;  %2392 = vmax.xlane.f32.xlu1 %v2391_v26  ;;  %v1726_v37 = vpop.f32.mrb[42].mxu0  ;;  %v2079_v40 = vpop.f32.mrb[42].mxu1 }
 0x2e9   : > { %v1728_v38 = vpop.f32.mrb[43].mxu0  ;;  %v4030_v58 = vpop.f32.mrb[43].mxu1 }
 0x2ea   : > { %v2399_v34 = vmax.f32 %v1726_v37, %v1728_v38  ;;  %v4032_v12 = vmax.f32 %v2394_v51, %v2075_v42 }
 0x2eb   : > { %1991 = vmatmul.mubr.bf16.gmra.mrb[148].mxu0 %v3387_v29  ;;  %2344 = vmatmul.mubr.bf16.gmra.mrb[148].mxu1 %v3387_v29 }
 0x2ec   : > { %v2396_v13 = vmax.f32 %v4032_v12, %v4020_v27  ;;  %v4036_v15 = vmax.f32 %v2399_v34, %v2079_v40  ;;  %2000 = vmatprep.mubr.bf16.mxu0 %v3416_v5  ;;  %2353 = vmatprep.mubr.bf16.mxu1 %v3416_v5 }
 0x2ee   : > { %v2401_v33 = vmax.f32 %v4036_v15, %v4030_v58  ;;  %v1732_v14 = vpop.f32.mrb[44].mxu0  ;;  %2397 = vmax.xlane.f32.xlu0 %v2396_v13  ;;  %v2085_v31 = vpop.f32.mrb[44].mxu1 }
 0x2ef   : > { %v1734_v35 = vpop.f32.mrb[45].mxu0  ;;  %v2087_v19 = vpop.f32.mrb[45].mxu1 }
 0x2f0   : > { %v2404_v44 = vmax.f32 %v1732_v14, %v1734_v35  ;;  %2402 = vmax.xlane.f32.xlu1 %v2401_v33  ;;  %v1736_v49 = vpop.f32.mrb[46].mxu0  ;;  %v2089_v2 = vpop.f32.mrb[46].mxu1 }
 0x2f1   : > { %v1738_v4 = vpop.f32.mrb[47].mxu0  ;;  %v2091_v3 = vpop.f32.mrb[47].mxu1 }
 0x2f2   : > { %v2409_v54 = vmax.f32 %v1736_v49, %v1738_v4  ;;  %v2405_v11 = vmax.f32 %v2404_v44, %v2085_v31 }
 0x2f3   : > { %2001 = vmatmul.mubr.bf16.gmra.mrb[152].mxu0 %v3388_v43  ;;  %2354 = vmatmul.mubr.bf16.gmra.mrb[152].mxu1 %v3388_v43 }
 0x2f4   : > { %v2406_v55 = vmax.f32 %v2405_v11, %v2087_v19  ;;  %v2410_v56 = vmax.f32 %v2409_v54, %v2089_v2  ;;  %2010 = vmatprep.mubr.bf16.mxu0 %v3416_v5  ;;  %2363 = vmatprep.mubr.bf16.mxu1 %v3416_v5 }
 0x2f6   : > { %v2411_v53 = vmax.f32 %v2410_v56, %v2091_v3  ;;  %v1742_v32 = vpop.f32.mrb[48].mxu0  ;;  %2407 = vmax.xlane.f32.xlu0 %v2406_v55  ;;  %v2095_v46 = vpop.f32.mrb[48].mxu1 }
 0x2f7   : > { %v1744_v20 = vpop.f32.mrb[49].mxu0  ;;  %v2097_v57 = vpop.f32.mrb[49].mxu1 }
 0x2f8   : > { %v2414_v6 = vmax.f32 %v1742_v32, %v1744_v20  ;;  %2412 = vmax.xlane.f32.xlu1 %v2411_v53  ;;  %v1746_v63 = vpop.f32.mrb[50].mxu0  ;;  %v2099_v47 = vpop.f32.mrb[50].mxu1 }
 0x2f9   : > { %v1748_v7 = vpop.f32.mrb[51].mxu0  ;;  %v2101_v48 = vpop.f32.mrb[51].mxu1 }
 0x2fa   : > { %v2419_v8 = vmax.f32 %v1746_v63, %v1748_v7  ;;  %v2415_v50 = vmax.f32 %v2414_v6, %v2095_v46 }
 0x2fb   : > { %2011 = vmatmul.mubr.bf16.gmra.mrb[156].mxu0 %v3389_v62  ;;  %2364 = vmatmul.mubr.bf16.gmra.mrb[156].mxu1 %v3389_v62 }
 0x2fc   : > { %v2416_v5 = vmax.f32 %v2415_v50, %v2097_v57  ;;  %v2420_v9 = vmax.f32 %v2419_v8, %v2099_v47 }
 0x2fe   : > { %v2421_v0 = vmax.f32 %v2420_v9, %v2101_v48  ;;  %v1752_v10 = vpop.f32.mrb[52].mxu0  ;;  %2417 = vmax.xlane.f32.xlu0 %v2416_v5  ;;  %v2105_v1 = vpop.f32.mrb[52].mxu1 }
 0x2ff   : > { %v1754_v16 = vpop.f32.mrb[53].mxu0  ;;  %v2107_v45 = vpop.f32.mrb[53].mxu1 }
 0x300   : > { %v2424_v17 = vmax.f32 %v1752_v10, %v1754_v16  ;;  %2422 = vmax.xlane.f32.xlu1 %v2421_v0  ;;  %v1756_v18 = vpop.f32.mrb[54].mxu0  ;;  %v2109_v22 = vpop.f32.mrb[54].mxu1 }
 0x301   : > { %v1758_v41 = vpop.f32.mrb[55].mxu0  ;;  %v2111_v36 = vpop.f32.mrb[55].mxu1 }
 0x302   : > { %v2429_v23 = vmax.f32 %v1756_v18, %v1758_v41  ;;  %v2425_v24 = vmax.f32 %v2424_v17, %v2105_v1 }
 0x304   : > { %v2426_v25 = vmax.f32 %v2425_v24, %v2107_v45  ;;  %v2430_v28 = vmax.f32 %v2429_v23, %v2109_v22 }
 0x306   : > { %v2431_v59 = vmax.f32 %v2430_v28, %v2111_v36  ;;  %v1762_v60 = vpop.f32.mrb[56].mxu0  ;;  %2427 = vmax.xlane.f32.xlu0 %v2426_v25  ;;  %v2115_v61 = vpop.f32.mrb[56].mxu1 }
 0x307   : > { %v1764_v52 = vpop.f32.mrb[57].mxu0  ;;  %v2117_v26 = vpop.f32.mrb[57].mxu1 }
 0x308   : > { %v2434_v30 = vmax.f32 %v1762_v60, %v1764_v52  ;;  %2432 = vmax.xlane.f32.xlu1 %v2431_v59  ;;  %v1766_v42 = vpop.f32.mrb[58].mxu0  ;;  %v2119_v21 = vpop.f32.mrb[58].mxu1 }
 0x309   : > { %v1768_v27 = vpop.f32.mrb[59].mxu0  ;;  %v2121_v29 = vpop.f32.mrb[59].mxu1 }
 0x30a   : > { %v2439_v51 = vmax.f32 %v1766_v42, %v1768_v27  ;;  %v2435_v37 = vmax.f32 %v2434_v30, %v2115_v61 }
 0x30c   : > { %v2436_v40 = vmax.f32 %v2435_v37, %v2117_v26  ;;  %v2440_v38 = vmax.f32 %v2439_v51, %v2119_v21 }
 0x30e   : > { %v2441_v58 = vmax.f32 %v2440_v38, %v2121_v29  ;;  %v1772_v34 = vpop.f32.mrb[60].mxu0  ;;  %2437 = vmax.xlane.f32.xlu0 %v2436_v40  ;;  %v2125_v12 = vpop.f32.mrb[60].mxu1 }
 0x30f   : > { %v1774_v13 = vpop.f32.mrb[61].mxu0  ;;  %v2127_v15 = vpop.f32.mrb[61].mxu1 }
 0x310   : > { %v2444_v39 = vmax.f32 %v1772_v34, %v1774_v13  ;;  %2442 = vmax.xlane.f32.xlu1 %v2441_v58  ;;  %v1776_v33 = vpop.f32.mrb[62].mxu0  ;;  %v2129_v14 = vpop.f32.mrb[62].mxu1 }
 0x311   : > { %v1778_v31 = vpop.f32.mrb[63].mxu0  ;;  %v2131_v35 = vpop.f32.mrb[63].mxu1 }
 0x312   : > { %v2449_v19 = vmax.f32 %v1776_v33, %v1778_v31  ;;  %v2445_v43 = vmax.f32 %v2444_v39, %v2125_v12 }
 0x314   : > { %v2446_v44 = vmax.f32 %v2445_v43, %v2127_v15  ;;  %v2450_v49 = vmax.f32 %v2449_v19, %v2129_v14 }
 0x316   : > { %v2451_v2 = vmax.f32 %v2450_v49, %v2131_v35  ;;  %v1782_v4 = vpop.f32.mrb[64].mxu0  ;;  %2447 = vmax.xlane.f32.xlu0 %v2446_v44  ;;  %v2135_v3 = vpop.f32.mrb[64].mxu1 }
 0x317   : > { %v1784_v54 = vpop.f32.mrb[65].mxu0  ;;  %v2137_v11 = vpop.f32.mrb[65].mxu1 }
 0x318   : > { %v2454_v55 = vmax.f32 %v1782_v4, %v1784_v54  ;;  %2452 = vmax.xlane.f32.xlu1 %v2451_v2  ;;  %v1786_v56 = vpop.f32.mrb[66].mxu0  ;;  %v2139_v53 = vpop.f32.mrb[66].mxu1 }
 0x319   : > { %v1788_v32 = vpop.f32.mrb[67].mxu0  ;;  %v2141_v46 = vpop.f32.mrb[67].mxu1 }
 0x31a   : > { %v2459_v20 = vmax.f32 %v1786_v56, %v1788_v32  ;;  %v2455_v57 = vmax.f32 %v2454_v55, %v2135_v3 }
 0x31c   : > { %v2456_v62 = vmax.f32 %v2455_v57, %v2137_v11  ;;  %v2460_v6 = vmax.f32 %v2459_v20, %v2139_v53 }
 0x31e   : > { %v2461_v63 = vmax.f32 %v2460_v6, %v2141_v46  ;;  %v1792_v47 = vpop.f32.mrb[68].mxu0  ;;  %2457 = vmax.xlane.f32.xlu0 %v2456_v62  ;;  %v2145_v7 = vpop.f32.mrb[68].mxu1 }
 0x31f   : > { %v1794_v48 = vpop.f32.mrb[69].mxu0  ;;  %v2147_v8 = vpop.f32.mrb[69].mxu1 }
 0x320   : > { %v2464_v50 = vmax.f32 %v1792_v47, %v1794_v48  ;;  %2462 = vmax.xlane.f32.xlu1 %v2461_v63  ;;  %v1796_v5 = vpop.f32.mrb[70].mxu0  ;;  %v2149_v9 = vpop.f32.mrb[70].mxu1 }
 0x321   : > { %v1798_v0 = vpop.f32.mrb[71].mxu0  ;;  %v2151_v10 = vpop.f32.mrb[71].mxu1 }
 0x322   : > { %v2469_v1 = vmax.f32 %v1796_v5, %v1798_v0  ;;  %v2465_v16 = vmax.f32 %v2464_v50, %v2145_v7 }
 0x324   : > { %v2466_v45 = vmax.f32 %v2465_v16, %v2147_v8  ;;  %v2470_v17 = vmax.f32 %v2469_v1, %v2149_v9 }
 0x326   : > { %v2471_v18 = vmax.f32 %v2470_v17, %v2151_v10  ;;  %v1802_v22 = vpop.f32.mrb[72].mxu0  ;;  %2467 = vmax.xlane.f32.xlu0 %v2466_v45  ;;  %v2155_v41 = vpop.f32.mrb[72].mxu1 }
 0x327   : > { %v1804_v36 = vpop.f32.mrb[73].mxu0  ;;  %v2157_v23 = vpop.f32.mrb[73].mxu1 }
 0x328   : > { %v2474_v24 = vmax.f32 %v1802_v22, %v1804_v36  ;;  %2472 = vmax.xlane.f32.xlu1 %v2471_v18  ;;  %v1806_v25 = vpop.f32.mrb[74].mxu0  ;;  %v2159_v28 = vpop.f32.mrb[74].mxu1 }
 0x329   : > { %v1808_v59 = vpop.f32.mrb[75].mxu0  ;;  %v2161_v60 = vpop.f32.mrb[75].mxu1 }
 0x32a   : > { %v2479_v61 = vmax.f32 %v1806_v25, %v1808_v59  ;;  %v2475_v52 = vmax.f32 %v2474_v24, %v2155_v41 }
 0x32c   : > { %v2476_v26 = vmax.f32 %v2475_v52, %v2157_v23  ;;  %v2480_v30 = vmax.f32 %v2479_v61, %v2159_v28 }
 0x32e   : > { %v2481_v42 = vmax.f32 %v2480_v30, %v2161_v60  ;;  %v1812_v21 = vpop.f32.mrb[76].mxu0  ;;  %2477 = vmax.xlane.f32.xlu0 %v2476_v26  ;;  %v2165_v27 = vpop.f32.mrb[76].mxu1 }
 0x32f   : > { %v1814_v29 = vpop.f32.mrb[77].mxu0  ;;  %v2167_v51 = vpop.f32.mrb[77].mxu1 }
 0x330   : > { %v2484_v37 = vmax.f32 %v1812_v21, %v1814_v29  ;;  %2482 = vmax.xlane.f32.xlu1 %v2481_v42  ;;  %v1816_v40 = vpop.f32.mrb[78].mxu0  ;;  %v2169_v38 = vpop.f32.mrb[78].mxu1 }
 0x331   : > { %v1818_v58 = vpop.f32.mrb[79].mxu0  ;;  %v2171_v34 = vpop.f32.mrb[79].mxu1 }
 0x332   : > { %v2489_v12 = vmax.f32 %v1816_v40, %v1818_v58  ;;  %v2485_v13 = vmax.f32 %v2484_v37, %v2165_v27 }
 0x334   : > { %v2486_v15 = vmax.f32 %v2485_v13, %v2167_v51  ;;  %v2490_v39 = vmax.f32 %v2489_v12, %v2169_v38 }
 0x336   : > { %v2491_v33 = vmax.f32 %v2490_v39, %v2171_v34  ;;  %v1822_v14 = vpop.f32.mrb[80].mxu0  ;;  %2487 = vmax.xlane.f32.xlu0 %v2486_v15  ;;  %v2175_v31 = vpop.f32.mrb[80].mxu1 }
 0x337   : > { %v1824_v35 = vpop.f32.mrb[81].mxu0  ;;  %v2177_v19 = vpop.f32.mrb[81].mxu1 }
 0x338   : > { %v2494_v43 = vmax.f32 %v1822_v14, %v1824_v35  ;;  %2492 = vmax.xlane.f32.xlu1 %v2491_v33  ;;  %v1826_v44 = vpop.f32.mrb[82].mxu0  ;;  %v2179_v49 = vpop.f32.mrb[82].mxu1 }
 0x339   : > { %v1828_v2 = vpop.f32.mrb[83].mxu0  ;;  %v2181_v4 = vpop.f32.mrb[83].mxu1 }
 0x33a   : > { %v2499_v3 = vmax.f32 %v1826_v44, %v1828_v2  ;;  %v2495_v54 = vmax.f32 %v2494_v43, %v2175_v31 }
 0x33c   : > { %v2496_v11 = vmax.f32 %v2495_v54, %v2177_v19  ;;  %v2500_v55 = vmax.f32 %v2499_v3, %v2179_v49 }
 0x33e   : > { %v2501_v56 = vmax.f32 %v2500_v55, %v2181_v4  ;;  %v1832_v53 = vpop.f32.mrb[84].mxu0  ;;  %2497 = vmax.xlane.f32.xlu0 %v2496_v11  ;;  %v2185_v32 = vpop.f32.mrb[84].mxu1 }
 0x33f   : > { %v1834_v46 = vpop.f32.mrb[85].mxu0  ;;  %v2187_v20 = vpop.f32.mrb[85].mxu1 }
 0x340   : > { %v2504_v57 = vmax.f32 %v1832_v53, %v1834_v46  ;;  %2502 = vmax.xlane.f32.xlu1 %v2501_v56  ;;  %v1836_v62 = vpop.f32.mrb[86].mxu0  ;;  %v2189_v6 = vpop.f32.mrb[86].mxu1 }
 0x341   : > { %v1838_v63 = vpop.f32.mrb[87].mxu0  ;;  %v2191_v47 = vpop.f32.mrb[87].mxu1 }
 0x342   : > { %v2509_v7 = vmax.f32 %v1836_v62, %v1838_v63  ;;  %v2505_v48 = vmax.f32 %v2504_v57, %v2185_v32 }
 0x344   : > { %v2506_v8 = vmax.f32 %v2505_v48, %v2187_v20  ;;  %v2510_v50 = vmax.f32 %v2509_v7, %v2189_v6 }
 0x346   : > { %v2511_v5 = vmax.f32 %v2510_v50, %v2191_v47  ;;  %v1842_v9 = vpop.f32.mrb[88].mxu0  ;;  %2507 = vmax.xlane.f32.xlu0 %v2506_v8  ;;  %v2195_v0 = vpop.f32.mrb[88].mxu1 }
 0x347   : > { %v1844_v10 = vpop.f32.mrb[89].mxu0  ;;  %v2197_v1 = vpop.f32.mrb[89].mxu1 }
 0x348   : > { %v2514_v16 = vmax.f32 %v1842_v9, %v1844_v10  ;;  %2512 = vmax.xlane.f32.xlu1 %v2511_v5  ;;  %v1846_v45 = vpop.f32.mrb[90].mxu0  ;;  %v2199_v17 = vpop.f32.mrb[90].mxu1 }
 0x349   : > { %v1848_v18 = vpop.f32.mrb[91].mxu0  ;;  %v2201_v22 = vpop.f32.mrb[91].mxu1 }
 0x34a   : > { %v2519_v41 = vmax.f32 %v1846_v45, %v1848_v18  ;;  %v2515_v36 = vmax.f32 %v2514_v16, %v2195_v0  ;;  %v2694_v0 = vld [vmem:[%s4028_s19] sm:$0xff]  ;;  %v2695_v45 = vld [vmem:[%s4028_s19 + $0x8] sm:$0xff] }
 0x34c   : > { %v2516_v23 = vmax.f32 %v2515_v36, %v2197_v1  ;;  %v2520_v24 = vmax.f32 %v2519_v41, %v2199_v17 }
 0x34e   : > { %v2521_v25 = vmax.f32 %v2520_v24, %v2201_v22  ;;  %v1852_v28 = vpop.f32.mrb[92].mxu0  ;;  %2517 = vmax.xlane.f32.xlu0 %v2516_v23  ;;  %v2205_v59 = vpop.f32.mrb[92].mxu1 }
 0x34f   : > { %v1854_v60 = vpop.f32.mrb[93].mxu0  ;;  %v2207_v61 = vpop.f32.mrb[93].mxu1 }
 0x350   : > { %v2524_v52 = vmax.f32 %v1852_v28, %v1854_v60  ;;  %2522 = vmax.xlane.f32.xlu1 %v2521_v25  ;;  %v1856_v26 = vpop.f32.mrb[94].mxu0  ;;  %v2209_v30 = vpop.f32.mrb[94].mxu1 }
 0x351   : > { %v1858_v42 = vpop.f32.mrb[95].mxu0  ;;  %v2211_v21 = vpop.f32.mrb[95].mxu1 }
 0x352   : > { %v2529_v27 = vmax.f32 %v1856_v26, %v1858_v42  ;;  %v2525_v29 = vmax.f32 %v2524_v52, %v2205_v59  ;;  %v2696_v42 = vld [vmem:[%s4028_s19 + $0x10] sm:$0xff] }
 0x354   : > { %v2526_v51 = vmax.f32 %v2525_v29, %v2207_v61  ;;  %v2530_v37 = vmax.f32 %v2529_v27, %v2209_v30  ;;  %v2954_v29 = vld [vmem:[%s4836_s6] sm:$0xff] }
 0x356   : > { %v2531_v40 = vmax.f32 %v2530_v37, %v2211_v21  ;;  %v1862_v38 = vpop.f32.mrb[96].mxu0  ;;  %2527 = vmax.xlane.f32.xlu0 %v2526_v51  ;;  %v2215_v58 = vpop.f32.mrb[96].mxu1  ;;  %v2697_v37 = vld [vmem:[%s4028_s19 + $0x18] sm:$0xff] }
 0x357   : > { %v1864_v34 = vpop.f32.mrb[97].mxu0  ;;  %v2217_v12 = vpop.f32.mrb[97].mxu1 }
 0x358   : > { %v2534_v13 = vmax.f32 %v1862_v38, %v1864_v34  ;;  %2532 = vmax.xlane.f32.xlu1 %v2531_v40  ;;  %v1866_v15 = vpop.f32.mrb[98].mxu0  ;;  %v2219_v39 = vpop.f32.mrb[98].mxu1 }
 0x359   : > { %v1868_v33 = vpop.f32.mrb[99].mxu0  ;;  %v2221_v14 = vpop.f32.mrb[99].mxu1 }
 0x35a   : > { %v2539_v31 = vmax.f32 %v1866_v15, %v1868_v33  ;;  %v2535_v35 = vmax.f32 %v2534_v13, %v2215_v58 }
 0x35c   : > { %v2536_v19 = vmax.f32 %v2535_v35, %v2217_v12  ;;  %v2540_v43 = vmax.f32 %v2539_v31, %v2219_v39  ;;  %v2955_v12 = vld [vmem:[%s4836_s6 + $0x8] sm:$0xff] }
 0x35e   : > { %v2541_v44 = vmax.f32 %v2540_v43, %v2221_v14  ;;  %v1872_v49 = vpop.f32.mrb[100].mxu0  ;;  %2537 = vmax.xlane.f32.xlu0 %v2536_v19  ;;  %v2225_v2 = vpop.f32.mrb[100].mxu1 }
 0x35f   : > { %v1874_v4 = vpop.f32.mrb[101].mxu0  ;;  %v2227_v3 = vpop.f32.mrb[101].mxu1 }
 0x360   : > { %v2544_v54 = vmax.f32 %v1872_v49, %v1874_v4  ;;  %2542 = vmax.xlane.f32.xlu1 %v2541_v44  ;;  %v1876_v11 = vpop.f32.mrb[102].mxu0  ;;  %v2229_v55 = vpop.f32.mrb[102].mxu1 }
 0x361   : > { %v1878_v56 = vpop.f32.mrb[103].mxu0  ;;  %v2231_v53 = vpop.f32.mrb[103].mxu1 }
 0x362   : > { %v2549_v32 = vmax.f32 %v1876_v11, %v1878_v56  ;;  %v2545_v46 = vmax.f32 %v2544_v54, %v2225_v2  ;;  %v2698_v11 = vld [vmem:[%s4028_s19 + $0x20] sm:$0xff] }
 0x364   : > { %v2546_v20 = vmax.f32 %v2545_v46, %v2227_v3  ;;  %v2550_v57 = vmax.f32 %v2549_v32, %v2229_v55  ;;  %v2699_v46 = vld [vmem:[%s4028_s19 + $0x28] sm:$0xff] }
 0x366   : > { %v2551_v62 = vmax.f32 %v2550_v57, %v2231_v53  ;;  %v1882_v6 = vpop.f32.mrb[104].mxu0  ;;  %2547 = vmax.xlane.f32.xlu0 %v2546_v20  ;;  %v2235_v63 = vpop.f32.mrb[104].mxu1  ;;  %v2956_v53 = vld [vmem:[%s4836_s6 + $0x10] sm:$0xff] }
 0x367   : > { %v1884_v47 = vpop.f32.mrb[105].mxu0  ;;  %v2237_v7 = vpop.f32.mrb[105].mxu1 }
 0x368   : > { %v2554_v48 = vmax.f32 %v1882_v6, %v1884_v47  ;;  %2552 = vmax.xlane.f32.xlu1 %v2551_v62  ;;  %v1886_v8 = vpop.f32.mrb[106].mxu0  ;;  %v2239_v50 = vpop.f32.mrb[106].mxu1 }
 0x369   : > { %v1888_v5 = vpop.f32.mrb[107].mxu0  ;;  %v2241_v9 = vpop.f32.mrb[107].mxu1 }
 0x36a   : > { %v2559_v10 = vmax.f32 %v1886_v8, %v1888_v5  ;;  %v2555_v1 = vmax.f32 %v2554_v48, %v2235_v63  ;;  %v2957_v63 = vld [vmem:[%s4836_s6 + $0x18] sm:$0xff] }
 0x36b   : > { %v2378_v16 = vpop.xlane.xlu1 %2377 }
 0x36c   : > { %v2556_v17 = vmax.f32 %v2555_v1, %v2237_v7  ;;  %v2560_v18 = vmax.f32 %v2559_v10, %v2239_v50  ;;  %v2758_v22 = vmax.f32 %v2694_v0, %v2378_v16 }
 0x36d   : > { %v2383_v41 = vpop.xlane.xlu0 %2382 }
 0x36e   : > { %v2561_v36 = vmax.f32 %v2560_v18, %v2241_v9  ;;  %2823 = vst.msk [vmem:[%s4028_s19] sm:$0xff] %vm1347_vm1, %v2758_v22  ;;  %v2759_v23 = vmax.f32 %v2695_v45, %v2383_v41  ;;  %v1892_v24 = vpop.f32.mrb[108].mxu0  ;;  %2557 = vmax.xlane.f32.xlu0 %v2556_v17  ;;  %v2245_v25 = vpop.f32.mrb[108].mxu1  ;;  %v2700_v41 = vld [vmem:[%s4028_s19 + $0x30] sm:$0xff] }
 0x36f   : > { %v1894_v28 = vpop.f32.mrb[109].mxu0  ;;  %v2247_v59 = vpop.f32.mrb[109].mxu1 }
 0x370   : > { %2824 = vst.msk [vmem:[%s4028_s19 + $0x8] sm:$0xff] %vm1347_vm1, %v2759_v23  ;;  %v2564_v60 = vmax.f32 %v1892_v24, %v1894_v28  ;;  %2562 = vmax.xlane.f32.xlu1 %v2561_v36  ;;  %v1896_v61 = vpop.f32.mrb[110].mxu0  ;;  %v2249_v52 = vpop.f32.mrb[110].mxu1  ;;  %v2958_v24 = vld [vmem:[%s4836_s6 + $0x20] sm:$0xff]  ;;  %v2701_v28 = vld [vmem:[%s4028_s19 + $0x38] sm:$0xff] }
 0x371   : > { %v1898_v26 = vpop.f32.mrb[111].mxu0  ;;  %v2251_v30 = vpop.f32.mrb[111].mxu1 }
 0x372   : > { %v2569_v21 = vmax.f32 %v1896_v61, %v1898_v26  ;;  %v2565_v27 = vmax.f32 %v2564_v60, %v2245_v25  ;;  %v2959_v26 = vld [vmem:[%s4836_s6 + $0x28] sm:$0xff] }
 0x373   : > { %v2388_v51 = vpop.xlane.xlu0 %2387 }
 0x374   : > { %v2566_v40 = vmax.f32 %v2565_v27, %v2247_v59  ;;  %v2570_v38 = vmax.f32 %v2569_v21, %v2249_v52  ;;  %v2760_v58 = vmax.f32 %v2696_v42, %v2388_v51 }
 0x375   : > { %v2890_v34 = vld [vmem:[%s4028_s19] sm:$0xff]  ;;  %v2393_v13 = vpop.xlane.xlu1 %2392 }
 0x376   : > { %v3018_v15 = vadd.f32 %v2954_v29, %v2890_v34  ;;  %v2571_v39 = vmax.f32 %v2570_v38, %v2251_v30  ;;  %2825 = vst.msk [vmem:[%s4028_s19 + $0x10] sm:$0xff] %vm1347_vm1, %v2760_v58  ;;  %v2761_v33 = vmax.f32 %v2697_v37, %v2393_v13  ;;  %v1902_v14 = vpop.f32.mrb[112].mxu0  ;;  %2567 = vmax.xlane.f32.xlu0 %v2566_v40  ;;  %v2255_v31 = vpop.f32.mrb[112].mxu1 }
 0x377   : > { %v2891_v35 = vld [vmem:[%s4028_s19 + $0x8] sm:$0xff]  ;;  %v1904_v19 = vpop.f32.mrb[113].mxu0  ;;  %v2257_v43 = vpop.f32.mrb[113].mxu1 }
 0x378   : > { %3082 = vst.msk [vmem:[%s4028_s19] sm:$0xff] %vm1347_vm1, %v3018_v15  ;;  %v3019_v44 = vadd.f32 %v2955_v12, %v2891_v35  ;;  %2826 = vst.msk [vmem:[%s4028_s19 + $0x18] sm:$0xff] %vm1347_vm1, %v2761_v33  ;;  %v2574_v49 = vmax.f32 %v1902_v14, %v1904_v19  ;;  %2572 = vmax.xlane.f32.xlu1 %v2571_v39  ;;  %v1906_v2 = vpop.f32.mrb[114].mxu0  ;;  %v2259_v4 = vpop.f32.mrb[114].mxu1  ;;  %v2702_v33 = vld [vmem:[%s4028_s19 + $0x40] sm:$0xff]  ;;  %v2960_v35 = vld [vmem:[%s4836_s6 + $0x30] sm:$0xff] }
 0x379   : > { %v1908_v3 = vpop.f32.mrb[115].mxu0  ;;  %v2261_v54 = vpop.f32.mrb[115].mxu1 }
 0x37a   : > { %3083 = vst.msk [vmem:[%s4028_s19 + $0x8] sm:$0xff] %vm1347_vm1, %v3019_v44  ;;  %v2579_v55 = vmax.f32 %v1906_v2, %v1908_v3  ;;  %v2575_v56 = vmax.f32 %v2574_v49, %v2255_v31  ;;  %v2961_v3 = vld [vmem:[%s4836_s6 + $0x38] sm:$0xff] }
 0x37b   : > { %v2398_v32 = vpop.xlane.xlu0 %2397 }
 0x37c   : > { %v2576_v20 = vmax.f32 %v2575_v56, %v2257_v43  ;;  %v2580_v57 = vmax.f32 %v2579_v55, %v2259_v4  ;;  %v2762_v62 = vmax.f32 %v2698_v11, %v2398_v32  ;;  %v2703_v43 = vld [vmem:[%s4028_s19 + $0x48] sm:$0xff] }
 0x37d   : > { %v2892_v6 = vld [vmem:[%s4028_s19 + $0x10] sm:$0xff]  ;;  %v2403_v47 = vpop.xlane.xlu1 %2402 }
 0x37e   : > { %v3020_v7 = vadd.f32 %v2956_v53, %v2892_v6  ;;  %v2581_v48 = vmax.f32 %v2580_v57, %v2261_v54  ;;  %2827 = vst.msk [vmem:[%s4028_s19 + $0x20] sm:$0xff] %vm1347_vm1, %v2762_v62  ;;  %v2763_v8 = vmax.f32 %v2699_v46, %v2403_v47  ;;  %v1912_v50 = vpop.f32.mrb[116].mxu0  ;;  %2577 = vmax.xlane.f32.xlu0 %v2576_v20  ;;  %v2265_v5 = vpop.f32.mrb[116].mxu1 }
 0x37f   : > { %v2893_v9 = vld [vmem:[%s4028_s19 + $0x18] sm:$0xff]  ;;  %v1914_v0 = vpop.f32.mrb[117].mxu0  ;;  %v2267_v10 = vpop.f32.mrb[117].mxu1 }
 0x380   : > { %3084 = vst.msk [vmem:[%s4028_s19 + $0x10] sm:$0xff] %vm1347_vm1, %v3020_v7  ;;  %v3021_v1 = vadd.f32 %v2957_v63, %v2893_v9  ;;  %2828 = vst.msk [vmem:[%s4028_s19 + $0x28] sm:$0xff] %vm1347_vm1, %v2763_v8  ;;  %v2584_v16 = vmax.f32 %v1912_v50, %v1914_v0  ;;  %2582 = vmax.xlane.f32.xlu1 %v2581_v48  ;;  %v1916_v45 = vpop.f32.mrb[118].mxu0  ;;  %v2269_v17 = vpop.f32.mrb[118].mxu1  ;;  %v2704_v8 = vld [vmem:[%s4028_s19 + $0x50] sm:$0xff]  ;;  %v2962_v9 = vld [vmem:[%s4836_s6 + $0x40] sm:$0xff] }
 0x381   : > { %v1918_v18 = vpop.f32.mrb[119].mxu0  ;;  %v2271_v22 = vpop.f32.mrb[119].mxu1 }
 0x382   : > { %3085 = vst.msk [vmem:[%s4028_s19 + $0x18] sm:$0xff] %vm1347_vm1, %v3021_v1  ;;  %v2589_v36 = vmax.f32 %v1916_v45, %v1918_v18  ;;  %v2585_v23 = vmax.f32 %v2584_v16, %v2265_v5  ;;  %v2963_v18 = vld [vmem:[%s4836_s6 + $0x48] sm:$0xff] }
 0x383   : > { %v2408_v25 = vpop.xlane.xlu0 %2407 }
 0x384   : > { %v2586_v59 = vmax.f32 %v2585_v23, %v2267_v10  ;;  %v2590_v60 = vmax.f32 %v2589_v36, %v2269_v17  ;;  %v2764_v61 = vmax.f32 %v2700_v41, %v2408_v25  ;;  %v2705_v10 = vld [vmem:[%s4028_s19 + $0x58] sm:$0xff] }
 0x385   : > { %v2894_v52 = vld [vmem:[%s4028_s19 + $0x20] sm:$0xff]  ;;  %v2413_v30 = vpop.xlane.xlu1 %2412 }
 0x386   : > { %v3022_v42 = vadd.f32 %v2958_v24, %v2894_v52  ;;  %v2591_v21 = vmax.f32 %v2590_v60, %v2271_v22  ;;  %2829 = vst.msk [vmem:[%s4028_s19 + $0x30] sm:$0xff] %vm1347_vm1, %v2764_v61  ;;  %v2765_v27 = vmax.f32 %v2701_v28, %v2413_v30  ;;  %v1922_v29 = vpop.f32.mrb[120].mxu0  ;;  %2587 = vmax.xlane.f32.xlu0 %v2586_v59  ;;  %v2275_v51 = vpop.f32.mrb[120].mxu1 }
 0x387   : > { %v2895_v37 = vld [vmem:[%s4028_s19 + $0x28] sm:$0xff]  ;;  %v1924_v40 = vpop.f32.mrb[121].mxu0  ;;  %v2277_v38 = vpop.f32.mrb[121].mxu1 }
 0x388   : > { %3086 = vst.msk [vmem:[%s4028_s19 + $0x20] sm:$0xff] %vm1347_vm1, %v3022_v42  ;;  %v3023_v58 = vadd.f32 %v2959_v26, %v2895_v37  ;;  %2830 = vst.msk [vmem:[%s4028_s19 + $0x38] sm:$0xff] %vm1347_vm1, %v2765_v27  ;;  %v2594_v34 = vmax.f32 %v1922_v29, %v1924_v40  ;;  %2592 = vmax.xlane.f32.xlu1 %v2591_v21  ;;  %v1926_v12 = vpop.f32.mrb[122].mxu0  ;;  %v2279_v13 = vpop.f32.mrb[122].mxu1  ;;  %v2706_v27 = vld [vmem:[%s4028_s19 + $0x60] sm:$0xff]  ;;  %v2964_v37 = vld [vmem:[%s4836_s6 + $0x50] sm:$0xff] }
 0x389   : > { %v1928_v15 = vpop.f32.mrb[123].mxu0  ;;  %v2281_v39 = vpop.f32.mrb[123].mxu1 }
 0x38a   : > { %3087 = vst.msk [vmem:[%s4028_s19 + $0x28] sm:$0xff] %vm1347_vm1, %v3023_v58  ;;  %v2599_v14 = vmax.f32 %v1926_v12, %v1928_v15  ;;  %v2595_v31 = vmax.f32 %v2594_v34, %v2275_v51  ;;  %v2965_v15 = vld [vmem:[%s4836_s6 + $0x58] sm:$0xff] }
 0x38b   : > { %v2418_v19 = vpop.xlane.xlu0 %2417 }
 0x38c   : > { %v2596_v44 = vmax.f32 %v2595_v31, %v2277_v38  ;;  %v2600_v49 = vmax.f32 %v2599_v14, %v2279_v13  ;;  %v2766_v2 = vmax.f32 %v2702_v33, %v2418_v19  ;;  %v2707_v38 = vld [vmem:[%s4028_s19 + $0x68] sm:$0xff] }
 0x38d   : > { %v2896_v4 = vld [vmem:[%s4028_s19 + $0x30] sm:$0xff]  ;;  %v2423_v54 = vpop.xlane.xlu1 %2422 }
 0x38e   : > { %v3024_v11 = vadd.f32 %v2960_v35, %v2896_v4  ;;  %v2601_v55 = vmax.f32 %v2600_v49, %v2281_v39  ;;  %2831 = vst.msk [vmem:[%s4028_s19 + $0x40] sm:$0xff] %vm1347_vm1, %v2766_v2  ;;  %v2767_v56 = vmax.f32 %v2703_v43, %v2423_v54  ;;  %v1932_v53 = vpop.f32.mrb[124].mxu0  ;;  %2597 = vmax.xlane.f32.xlu0 %v2596_v44  ;;  %v2285_v32 = vpop.f32.mrb[124].mxu1 }
 0x38f   : > { %v2897_v46 = vld [vmem:[%s4028_s19 + $0x38] sm:$0xff]  ;;  %v1934_v20 = vpop.f32.mrb[125].mxu0  ;;  %v2287_v57 = vpop.f32.mrb[125].mxu1 }
 0x390   : > { %3088 = vst.msk [vmem:[%s4028_s19 + $0x30] sm:$0xff] %vm1347_vm1, %v3024_v11  ;;  %v3025_v62 = vadd.f32 %v2961_v3, %v2897_v46  ;;  %2832 = vst.msk [vmem:[%s4028_s19 + $0x48] sm:$0xff] %vm1347_vm1, %v2767_v56  ;;  %v2604_v6 = vmax.f32 %v1932_v53, %v1934_v20  ;;  %2602 = vmax.xlane.f32.xlu1 %v2601_v55  ;;  %v1936_v63 = vpop.f32.mrb[126].mxu0  ;;  %v2289_v47 = vpop.f32.mrb[126].mxu1  ;;  %v2708_v56 = vld [vmem:[%s4028_s19 + $0x70] sm:$0xff]  ;;  %v2966_v46 = vld [vmem:[%s4836_s6 + $0x60] sm:$0xff] }
 0x391   : > { %v1938_v7 = vpop.f32.mrb[127].mxu0  ;;  %v2291_v48 = vpop.f32.mrb[127].mxu1 }
 0x392   : > { %3089 = vst.msk [vmem:[%s4028_s19 + $0x38] sm:$0xff] %vm1347_vm1, %v3025_v62  ;;  %v2609_v50 = vmax.f32 %v1936_v63, %v1938_v7  ;;  %v2605_v5 = vmax.f32 %v2604_v6, %v2285_v32  ;;  %v2967_v7 = vld [vmem:[%s4836_s6 + $0x68] sm:$0xff] }
 0x393   : > { %v2428_v0 = vpop.xlane.xlu0 %2427 }
 0x394   : > { %v2606_v1 = vmax.f32 %v2605_v5, %v2287_v57  ;;  %v2610_v16 = vmax.f32 %v2609_v50, %v2289_v47  ;;  %v2768_v45 = vmax.f32 %v2704_v8, %v2428_v0  ;;  %v2709_v57 = vld [vmem:[%s4028_s19 + $0x78] sm:$0xff] }
 0x395   : > { %v2898_v17 = vld [vmem:[%s4028_s19 + $0x40] sm:$0xff]  ;;  %v2433_v22 = vpop.xlane.xlu1 %2432 }
 0x396   : > { %v3026_v41 = vadd.f32 %v2962_v9, %v2898_v17  ;;  %v2611_v36 = vmax.f32 %v2610_v16, %v2291_v48  ;;  %2833 = vst.msk [vmem:[%s4028_s19 + $0x50] sm:$0xff] %vm1347_vm1, %v2768_v45  ;;  %v2769_v23 = vmax.f32 %v2705_v10, %v2433_v22  ;;  %v1942_v24 = vpop.f32.mrb[128].mxu0  ;;  %2607 = vmax.xlane.f32.xlu0 %v2606_v1  ;;  %v2295_v25 = vpop.f32.mrb[128].mxu1 }
 0x397   : > { %v2899_v28 = vld [vmem:[%s4028_s19 + $0x48] sm:$0xff]  ;;  %v1944_v59 = vpop.f32.mrb[129].mxu0  ;;  %v2297_v60 = vpop.f32.mrb[129].mxu1 }
 0x398   : > { %3090 = vst.msk [vmem:[%s4028_s19 + $0x40] sm:$0xff] %vm1347_vm1, %v3026_v41  ;;  %v3027_v61 = vadd.f32 %v2963_v18, %v2899_v28  ;;  %2834 = vst.msk [vmem:[%s4028_s19 + $0x58] sm:$0xff] %vm1347_vm1, %v2769_v23  ;;  %v2614_v52 = vmax.f32 %v1942_v24, %v1944_v59  ;;  %2612 = vmax.xlane.f32.xlu1 %v2611_v36  ;;  %v1946_v26 = vpop.f32.mrb[130].mxu0  ;;  %v2299_v30 = vpop.f32.mrb[130].mxu1  ;;  %v2710_v23 = vld [vmem:[%s4028_s19 + $0x80] sm:$0xff]  ;;  %v2968_v28 = vld [vmem:[%s4836_s6 + $0x70] sm:$0xff] }
 0x399   : > { %v1948_v42 = vpop.f32.mrb[131].mxu0  ;;  %v2301_v21 = vpop.f32.mrb[131].mxu1 }
 0x39a   : > { %3091 = vst.msk [vmem:[%s4028_s19 + $0x48] sm:$0xff] %vm1347_vm1, %v3027_v61  ;;  %v2619_v29 = vmax.f32 %v1946_v26, %v1948_v42  ;;  %v2615_v51 = vmax.f32 %v2614_v52, %v2295_v25  ;;  %v2969_v42 = vld [vmem:[%s4836_s6 + $0x78] sm:$0xff] }
 0x39b   : > { %v2438_v40 = vpop.xlane.xlu0 %2437 }
 0x39c   : > { %v2616_v58 = vmax.f32 %v2615_v51, %v2297_v60  ;;  %v2620_v34 = vmax.f32 %v2619_v29, %v2299_v30  ;;  %v2770_v12 = vmax.f32 %v2706_v27, %v2438_v40  ;;  %v2711_v60 = vld [vmem:[%s4028_s19 + $0x88] sm:$0xff] }
 0x39d   : > { %v2900_v13 = vld [vmem:[%s4028_s19 + $0x50] sm:$0xff]  ;;  %v2443_v39 = vpop.xlane.xlu1 %2442 }
 0x39e   : > { %v3028_v33 = vadd.f32 %v2964_v37, %v2900_v13  ;;  %v2621_v14 = vmax.f32 %v2620_v34, %v2301_v21  ;;  %2835 = vst.msk [vmem:[%s4028_s19 + $0x60] sm:$0xff] %vm1347_vm1, %v2770_v12  ;;  %v2771_v31 = vmax.f32 %v2707_v38, %v2443_v39  ;;  %v1952_v35 = vpop.f32.mrb[132].mxu0  ;;  %2617 = vmax.xlane.f32.xlu0 %v2616_v58  ;;  %v2305_v19 = vpop.f32.mrb[132].mxu1 }
 0x39f   : > { %v2901_v43 = vld [vmem:[%s4028_s19 + $0x58] sm:$0xff]  ;;  %v1954_v44 = vpop.f32.mrb[133].mxu0  ;;  %v2307_v49 = vpop.f32.mrb[133].mxu1 }
 0x3a0   : > { %3092 = vst.msk [vmem:[%s4028_s19 + $0x50] sm:$0xff] %vm1347_vm1, %v3028_v33  ;;  %v3029_v2 = vadd.f32 %v2965_v15, %v2901_v43  ;;  %2836 = vst.msk [vmem:[%s4028_s19 + $0x68] sm:$0xff] %vm1347_vm1, %v2771_v31  ;;  %v2624_v4 = vmax.f32 %v1952_v35, %v1954_v44  ;;  %2622 = vmax.xlane.f32.xlu1 %v2621_v14  ;;  %v1956_v3 = vpop.f32.mrb[134].mxu0  ;;  %v2309_v54 = vpop.f32.mrb[134].mxu1  ;;  %v2712_v31 = vld [vmem:[%s4028_s19 + $0x90] sm:$0xff]  ;;  %v2970_v43 = vld [vmem:[%s4836_s6 + $0x80] sm:$0xff] }
 0x3a1   : > { %v1958_v11 = vpop.f32.mrb[135].mxu0  ;;  %v2311_v55 = vpop.f32.mrb[135].mxu1 }
 0x3a2   : > { %3093 = vst.msk [vmem:[%s4028_s19 + $0x58] sm:$0xff] %vm1347_vm1, %v3029_v2  ;;  %v2629_v53 = vmax.f32 %v1956_v3, %v1958_v11  ;;  %v2625_v32 = vmax.f32 %v2624_v4, %v2305_v19  ;;  %v2971_v11 = vld [vmem:[%s4836_s6 + $0x88] sm:$0xff] }
 0x3a3   : > { %v2448_v20 = vpop.xlane.xlu0 %2447 }
 0x3a4   : > { %v2626_v62 = vmax.f32 %v2625_v32, %v2307_v49  ;;  %v2630_v6 = vmax.f32 %v2629_v53, %v2309_v54  ;;  %v2772_v63 = vmax.f32 %v2708_v56, %v2448_v20  ;;  %v2713_v49 = vld [vmem:[%s4028_s19 + $0x98] sm:$0xff] }
 0x3a5   : > { %v2902_v47 = vld [vmem:[%s4028_s19 + $0x60] sm:$0xff]  ;;  %v2453_v48 = vpop.xlane.xlu1 %2452 }
 0x3a6   : > { %v3030_v8 = vadd.f32 %v2966_v46, %v2902_v47  ;;  %v2631_v50 = vmax.f32 %v2630_v6, %v2311_v55  ;;  %2837 = vst.msk [vmem:[%s4028_s19 + $0x70] sm:$0xff] %vm1347_vm1, %v2772_v63  ;;  %v2773_v5 = vmax.f32 %v2709_v57, %v2453_v48  ;;  %v1962_v9 = vpop.f32.mrb[136].mxu0  ;;  %2627 = vmax.xlane.f32.xlu0 %v2626_v62  ;;  %v2315_v0 = vpop.f32.mrb[136].mxu1 }
 0x3a7   : > { %v2903_v10 = vld [vmem:[%s4028_s19 + $0x68] sm:$0xff]  ;;  %v1964_v1 = vpop.f32.mrb[137].mxu0  ;;  %v2317_v16 = vpop.f32.mrb[137].mxu1 }
 0x3a8   : > { %3094 = vst.msk [vmem:[%s4028_s19 + $0x60] sm:$0xff] %vm1347_vm1, %v3030_v8  ;;  %v3031_v45 = vadd.f32 %v2967_v7, %v2903_v10  ;;  %2838 = vst.msk [vmem:[%s4028_s19 + $0x78] sm:$0xff] %vm1347_vm1, %v2773_v5  ;;  %v2634_v17 = vmax.f32 %v1962_v9, %v1964_v1  ;;  %2632 = vmax.xlane.f32.xlu1 %v2631_v50  ;;  %v1966_v18 = vpop.f32.mrb[138].mxu0  ;;  %v2319_v22 = vpop.f32.mrb[138].mxu1  ;;  %v2714_v5 = vld [vmem:[%s4028_s19 + $0xa0] sm:$0xff]  ;;  %v2972_v10 = vld [vmem:[%s4836_s6 + $0x90] sm:$0xff] }
 0x3a9   : > { %v1968_v41 = vpop.f32.mrb[139].mxu0  ;;  %v2321_v36 = vpop.f32.mrb[139].mxu1 }
 0x3aa   : > { %3095 = vst.msk [vmem:[%s4028_s19 + $0x68] sm:$0xff] %vm1347_vm1, %v3031_v45  ;;  %v2639_v24 = vmax.f32 %v1966_v18, %v1968_v41  ;;  %v2635_v25 = vmax.f32 %v2634_v17, %v2315_v0  ;;  %v2973_v41 = vld [vmem:[%s4836_s6 + $0x98] sm:$0xff] }
 0x3ab   : > { %v2458_v59 = vpop.xlane.xlu0 %2457 }
 0x3ac   : > { %v2636_v61 = vmax.f32 %v2635_v25, %v2317_v16  ;;  %v2640_v52 = vmax.f32 %v2639_v24, %v2319_v22  ;;  %v2774_v26 = vmax.f32 %v2710_v23, %v2458_v59  ;;  %v2715_v16 = vld [vmem:[%s4028_s19 + $0xa8] sm:$0xff] }
 0x3ad   : > { %v2904_v30 = vld [vmem:[%s4028_s19 + $0x70] sm:$0xff]  ;;  %v2463_v21 = vpop.xlane.xlu1 %2462 }
 0x3ae   : > { %v3032_v27 = vadd.f32 %v2968_v28, %v2904_v30  ;;  %v2641_v29 = vmax.f32 %v2640_v52, %v2321_v36  ;;  %2839 = vst.msk [vmem:[%s4028_s19 + $0x80] sm:$0xff] %vm1347_vm1, %v2774_v26  ;;  %v2775_v51 = vmax.f32 %v2711_v60, %v2463_v21  ;;  %v1972_v37 = vpop.f32.mrb[140].mxu0  ;;  %2637 = vmax.xlane.f32.xlu0 %v2636_v61  ;;  %v2325_v40 = vpop.f32.mrb[140].mxu1 }
 0x3af   : > { %v2905_v38 = vld [vmem:[%s4028_s19 + $0x78] sm:$0xff]  ;;  %v1974_v58 = vpop.f32.mrb[141].mxu0  ;;  %v2327_v34 = vpop.f32.mrb[141].mxu1 }
 0x3b0   : > { %3096 = vst.msk [vmem:[%s4028_s19 + $0x70] sm:$0xff] %vm1347_vm1, %v3032_v27  ;;  %v3033_v12 = vadd.f32 %v2969_v42, %v2905_v38  ;;  %2840 = vst.msk [vmem:[%s4028_s19 + $0x88] sm:$0xff] %vm1347_vm1, %v2775_v51  ;;  %v2644_v13 = vmax.f32 %v1972_v37, %v1974_v58  ;;  %2642 = vmax.xlane.f32.xlu1 %v2641_v29  ;;  %v1976_v15 = vpop.f32.mrb[142].mxu0  ;;  %v2329_v39 = vpop.f32.mrb[142].mxu1  ;;  %v2716_v51 = vld [vmem:[%s4028_s19 + $0xb0] sm:$0xff]  ;;  %v2974_v38 = vld [vmem:[%s4836_s6 + $0xa0] sm:$0xff] }
 0x3b1   : > { %v1978_v33 = vpop.f32.mrb[143].mxu0  ;;  %v2331_v14 = vpop.f32.mrb[143].mxu1 }
 0x3b2   : > { %3097 = vst.msk [vmem:[%s4028_s19 + $0x78] sm:$0xff] %vm1347_vm1, %v3033_v12  ;;  %v2649_v35 = vmax.f32 %v1976_v15, %v1978_v33  ;;  %v2645_v19 = vmax.f32 %v2644_v13, %v2325_v40  ;;  %v2975_v33 = vld [vmem:[%s4836_s6 + $0xa8] sm:$0xff] }
 0x3b3   : > { %v2468_v44 = vpop.xlane.xlu0 %2467 }
 0x3b4   : > { %v2646_v2 = vmax.f32 %v2645_v19, %v2327_v34  ;;  %v2650_v4 = vmax.f32 %v2649_v35, %v2329_v39  ;;  %v2776_v3 = vmax.f32 %v2712_v31, %v2468_v44  ;;  %v2717_v34 = vld [vmem:[%s4028_s19 + $0xb8] sm:$0xff] }
 0x3b5   : > { %v2906_v54 = vld [vmem:[%s4028_s19 + $0x80] sm:$0xff]  ;;  %v2473_v55 = vpop.xlane.xlu1 %2472 }
 0x3b6   : > { %v3034_v56 = vadd.f32 %v2970_v43, %v2906_v54  ;;  %v2651_v53 = vmax.f32 %v2650_v4, %v2331_v14  ;;  %2841 = vst.msk [vmem:[%s4028_s19 + $0x90] sm:$0xff] %vm1347_vm1, %v2776_v3  ;;  %v2777_v32 = vmax.f32 %v2713_v49, %v2473_v55  ;;  %v1982_v46 = vpop.f32.mrb[144].mxu0  ;;  %2647 = vmax.xlane.f32.xlu0 %v2646_v2  ;;  %v2335_v20 = vpop.f32.mrb[144].mxu1 }
 0x3b7   : > { %v2907_v57 = vld [vmem:[%s4028_s19 + $0x88] sm:$0xff]  ;;  %v1984_v62 = vpop.f32.mrb[145].mxu0  ;;  %v2337_v6 = vpop.f32.mrb[145].mxu1 }
 0x3b8   : > { %3098 = vst.msk [vmem:[%s4028_s19 + $0x80] sm:$0xff] %vm1347_vm1, %v3034_v56  ;;  %v3035_v63 = vadd.f32 %v2971_v11, %v2907_v57  ;;  %2842 = vst.msk [vmem:[%s4028_s19 + $0x98] sm:$0xff] %vm1347_vm1, %v2777_v32  ;;  %v2654_v47 = vmax.f32 %v1982_v46, %v1984_v62  ;;  %2652 = vmax.xlane.f32.xlu1 %v2651_v53  ;;  %v1986_v7 = vpop.f32.mrb[146].mxu0  ;;  %v2339_v48 = vpop.f32.mrb[146].mxu1  ;;  %v2718_v32 = vld [vmem:[%s4028_s19 + $0xc0] sm:$0xff]  ;;  %v2976_v57 = vld [vmem:[%s4836_s6 + $0xb0] sm:$0xff] }
 0x3b9   : > { %v1988_v8 = vpop.f32.mrb[147].mxu0  ;;  %v2341_v50 = vpop.f32.mrb[147].mxu1 }
 0x3ba   : > { %3099 = vst.msk [vmem:[%s4028_s19 + $0x88] sm:$0xff] %vm1347_vm1, %v3035_v63  ;;  %v2659_v9 = vmax.f32 %v1986_v7, %v1988_v8  ;;  %v2655_v0 = vmax.f32 %v2654_v47, %v2335_v20  ;;  %v2977_v8 = vld [vmem:[%s4836_s6 + $0xb8] sm:$0xff] }
 0x3bb   : > { %v2478_v1 = vpop.xlane.xlu0 %2477 }
 0x3bc   : > { %v2656_v45 = vmax.f32 %v2655_v0, %v2337_v6  ;;  %v2660_v17 = vmax.f32 %v2659_v9, %v2339_v48  ;;  %v2778_v18 = vmax.f32 %v2714_v5, %v2478_v1  ;;  %v2719_v6 = vld [vmem:[%s4028_s19 + $0xc8] sm:$0xff] }
 0x3bd   : > { %v2908_v22 = vld [vmem:[%s4028_s19 + $0x90] sm:$0xff]  ;;  %v2483_v36 = vpop.xlane.xlu1 %2482 }
 0x3be   : > { %v3036_v23 = vadd.f32 %v2972_v10, %v2908_v22  ;;  %v2661_v24 = vmax.f32 %v2660_v17, %v2341_v50  ;;  %2843 = vst.msk [vmem:[%s4028_s19 + $0xa0] sm:$0xff] %vm1347_vm1, %v2778_v18  ;;  %v2779_v25 = vmax.f32 %v2715_v16, %v2483_v36  ;;  %v1992_v28 = vpop.f32.mrb[148].mxu0  ;;  %2657 = vmax.xlane.f32.xlu0 %v2656_v45  ;;  %v2345_v59 = vpop.f32.mrb[148].mxu1 }
 0x3bf   : > { %v2909_v60 = vld [vmem:[%s4028_s19 + $0x98] sm:$0xff]  ;;  %v1994_v61 = vpop.f32.mrb[149].mxu0  ;;  %v2347_v52 = vpop.f32.mrb[149].mxu1 }
 0x3c0   : > { %3100 = vst.msk [vmem:[%s4028_s19 + $0x90] sm:$0xff] %vm1347_vm1, %v3036_v23  ;;  %v3037_v26 = vadd.f32 %v2973_v41, %v2909_v60  ;;  %2844 = vst.msk [vmem:[%s4028_s19 + $0xa8] sm:$0xff] %vm1347_vm1, %v2779_v25  ;;  %v2664_v30 = vmax.f32 %v1992_v28, %v1994_v61  ;;  %2662 = vmax.xlane.f32.xlu1 %v2661_v24  ;;  %v1996_v42 = vpop.f32.mrb[150].mxu0  ;;  %v2349_v21 = vpop.f32.mrb[150].mxu1  ;;  %v2720_v25 = vld [vmem:[%s4028_s19 + $0xd0] sm:$0xff]  ;;  %v2978_v60 = vld [vmem:[%s4836_s6 + $0xc0] sm:$0xff] }
 0x3c1   : > { %v1998_v27 = vpop.f32.mrb[151].mxu0  ;;  %v2351_v29 = vpop.f32.mrb[151].mxu1 }
 0x3c2   : > { %3101 = vst.msk [vmem:[%s4028_s19 + $0x98] sm:$0xff] %vm1347_vm1, %v3037_v26  ;;  %v2669_v37 = vmax.f32 %v1996_v42, %v1998_v27  ;;  %v2665_v40 = vmax.f32 %v2664_v30, %v2345_v59  ;;  %v2979_v27 = vld [vmem:[%s4836_s6 + $0xc8] sm:$0xff] }
 0x3c3   : > { %v2488_v58 = vpop.xlane.xlu0 %2487 }
 0x3c4   : > { %v2666_v12 = vmax.f32 %v2665_v40, %v2347_v52  ;;  %v2670_v13 = vmax.f32 %v2669_v37, %v2349_v21  ;;  %v2780_v15 = vmax.f32 %v2716_v51, %v2488_v58  ;;  %v2721_v52 = vld [vmem:[%s4028_s19 + $0xd8] sm:$0xff] }
 0x3c5   : > { %v2910_v39 = vld [vmem:[%s4028_s19 + $0xa0] sm:$0xff]  ;;  %v2493_v14 = vpop.xlane.xlu1 %2492 }
 0x3c6   : > { %v3038_v31 = vadd.f32 %v2974_v38, %v2910_v39  ;;  %v2671_v35 = vmax.f32 %v2670_v13, %v2351_v29  ;;  %2845 = vst.msk [vmem:[%s4028_s19 + $0xb0] sm:$0xff] %vm1347_vm1, %v2780_v15  ;;  %v2781_v19 = vmax.f32 %v2717_v34, %v2493_v14  ;;  %v2002_v43 = vpop.f32.mrb[152].mxu0  ;;  %2667 = vmax.xlane.f32.xlu0 %v2666_v12  ;;  %v2355_v44 = vpop.f32.mrb[152].mxu1  ;;  %v2722_v34 = vld [vmem:[%s4028_s19 + $0xe0] sm:$0xff]  ;;  %v2980_v12 = vld [vmem:[%s4836_s6 + $0xd0] sm:$0xff]  ;;  %v2723_v15 = vld [vmem:[%s4028_s19 + $0xe8] sm:$0xff] }
 0x3c7   : > { %v2911_v49 = vld [vmem:[%s4028_s19 + $0xa8] sm:$0xff]  ;;  %v2004_v2 = vpop.f32.mrb[153].mxu0  ;;  %v2357_v4 = vpop.f32.mrb[153].mxu1  ;;  %v2981_v14 = vld [vmem:[%s4836_s6 + $0xd8] sm:$0xff] }
 0x3c8   : > { %3102 = vst.msk [vmem:[%s4028_s19 + $0xa0] sm:$0xff] %vm1347_vm1, %v3038_v31  ;;  %v3039_v3 = vadd.f32 %v2975_v33, %v2911_v49  ;;  %2846 = vst.msk [vmem:[%s4028_s19 + $0xb8] sm:$0xff] %vm1347_vm1, %v2781_v19  ;;  %v2674_v54 = vmax.f32 %v2002_v43, %v2004_v2  ;;  %2672 = vmax.xlane.f32.xlu1 %v2671_v35  ;;  %v2006_v11 = vpop.f32.mrb[154].mxu0  ;;  %v2359_v55 = vpop.f32.mrb[154].mxu1  ;;  %v2724_v49 = vld [vmem:[%s4028_s19 + $0xf0] sm:$0xff]  ;;  %v2982_v2 = vld [vmem:[%s4836_s6 + $0xe0] sm:$0xff] }
 0x3c9   : > { %v2008_v56 = vpop.f32.mrb[155].mxu0  ;;  %v2361_v53 = vpop.f32.mrb[155].mxu1 }
 0x3ca   : > { %3103 = vst.msk [vmem:[%s4028_s19 + $0xa8] sm:$0xff] %vm1347_vm1, %v3039_v3  ;;  %v2679_v46 = vmax.f32 %v2006_v11, %v2008_v56  ;;  %v2675_v20 = vmax.f32 %v2674_v54, %v2355_v44  ;;  %v2725_v3 = vld [vmem:[%s4028_s19 + $0xf8] sm:$0xff] }
 0x3cb   : > { %v2498_v62 = vpop.xlane.xlu0 %2497 }
 0x3cc   : > { %v2676_v63 = vmax.f32 %v2675_v20, %v2357_v4  ;;  %v2680_v47 = vmax.f32 %v2679_v46, %v2359_v55  ;;  %v2782_v7 = vmax.f32 %v2718_v32, %v2498_v62  ;;  %v2983_v55 = vld [vmem:[%s4836_s6 + $0xe8] sm:$0xff]  ;;  %v2984_v62 = vld [vmem:[%s4836_s6 + $0xf0] sm:$0xff] }
 0x3cd   : > { %v2912_v48 = vld [vmem:[%s4028_s19 + $0xb0] sm:$0xff]  ;;  %v2503_v50 = vpop.xlane.xlu1 %2502 }
 0x3ce   : > { %v3040_v5 = vadd.f32 %v2976_v57, %v2912_v48  ;;  %v2681_v9 = vmax.f32 %v2680_v47, %v2361_v53  ;;  %2847 = vst.msk [vmem:[%s4028_s19 + $0xc0] sm:$0xff] %vm1347_vm1, %v2782_v7  ;;  %v2783_v0 = vmax.f32 %v2719_v6, %v2503_v50  ;;  %v2012_v10 = vpop.f32.mrb[156].mxu0  ;;  %2677 = vmax.xlane.f32.xlu0 %v2676_v63  ;;  %v2365_v1 = vpop.f32.mrb[156].mxu1  ;;  %v2726_v57 = vld [vmem:[%s4028_s19 + $0x100] sm:$0xff]  ;;  %v2727_v63 = vld [vmem:[%s4028_s19 + $0x108] sm:$0xff]  ;;  %v2985_v48 = vld [vmem:[%s4836_s6 + $0xf8] sm:$0xff] }
 0x3cf   : > { %v2913_v16 = vld [vmem:[%s4028_s19 + $0xb8] sm:$0xff]  ;;  %v2014_v45 = vpop.f32.mrb[157].mxu0  ;;  %v2367_v17 = vpop.f32.mrb[157].mxu1 }
 0x3d0   : > { %3104 = vst.msk [vmem:[%s4028_s19 + $0xb0] sm:$0xff] %vm1347_vm1, %v3040_v5  ;;  %v3041_v18 = vadd.f32 %v2977_v8, %v2913_v16  ;;  %2848 = vst.msk [vmem:[%s4028_s19 + $0xc8] sm:$0xff] %vm1347_vm1, %v2783_v0  ;;  %v2684_v22 = vmax.f32 %v2012_v10, %v2014_v45  ;;  %2682 = vmax.xlane.f32.xlu1 %v2681_v9  ;;  %v2016_v41 = vpop.f32.mrb[158].mxu0  ;;  %v2369_v36 = vpop.f32.mrb[158].mxu1  ;;  %v2728_v10 = vld [vmem:[%s4028_s19 + $0x110] sm:$0xff]  ;;  %v2729_v45 = vld [vmem:[%s4028_s19 + $0x118] sm:$0xff] }
 0x3d1   : > { %v2018_v23 = vpop.f32.mrb[159].mxu0  ;;  %v2371_v24 = vpop.f32.mrb[159].mxu1 }
 0x3d2   : > { %3105 = vst.msk [vmem:[%s4028_s19 + $0xb8] sm:$0xff] %vm1347_vm1, %v3041_v18  ;;  %v2689_v28 = vmax.f32 %v2016_v41, %v2018_v23  ;;  %v2685_v59 = vmax.f32 %v2684_v22, %v2365_v1  ;;  %v2986_v1 = vld [vmem:[%s4836_s6 + $0x100] sm:$0xff]  ;;  %v2987_v22 = vld [vmem:[%s4836_s6 + $0x108] sm:$0xff] }
 0x3d3   : > { %v2508_v61 = vpop.xlane.xlu0 %2507 }
 0x3d4   : > { %v2686_v26 = vmax.f32 %v2685_v59, %v2367_v17  ;;  %v2690_v30 = vmax.f32 %v2689_v28, %v2369_v36  ;;  %v2784_v42 = vmax.f32 %v2720_v25, %v2508_v61  ;;  %v2730_v28 = vld [vmem:[%s4028_s19 + $0x120] sm:$0xff]  ;;  %v2988_v59 = vld [vmem:[%s4836_s6 + $0x110] sm:$0xff]  ;;  %v2731_v61 = vld [vmem:[%s4028_s19 + $0x128] sm:$0xff] }
 0x3d5   : > { %v2914_v21 = vld [vmem:[%s4028_s19 + $0xc0] sm:$0xff]  ;;  %v2513_v29 = vpop.xlane.xlu1 %2512 }
 0x3d6   : > { %v3042_v51 = vadd.f32 %v2978_v60, %v2914_v21  ;;  %v2691_v37 = vmax.f32 %v2690_v30, %v2371_v24  ;;  %2849 = vst.msk [vmem:[%s4028_s19 + $0xd0] sm:$0xff] %vm1347_vm1, %v2784_v42  ;;  %v2785_v40 = vmax.f32 %v2721_v52, %v2513_v29  ;;  %2687 = vmax.xlane.f32.xlu0 %v2686_v26  ;;  %v2989_v30 = vld [vmem:[%s4836_s6 + $0x118] sm:$0xff] }
 0x3d7   : > { %v2915_v38 = vld [vmem:[%s4028_s19 + $0xc8] sm:$0xff] }
 0x3d8   : > { %3106 = vst.msk [vmem:[%s4028_s19 + $0xc0] sm:$0xff] %vm1347_vm1, %v3042_v51  ;;  %v3043_v58 = vadd.f32 %v2979_v27, %v2915_v38  ;;  %2850 = vst.msk [vmem:[%s4028_s19 + $0xd8] sm:$0xff] %vm1347_vm1, %v2785_v40  ;;  %2692 = vmax.xlane.f32.xlu1 %v2691_v37  ;;  %v2732_v37 = vld [vmem:[%s4028_s19 + $0x130] sm:$0xff]  ;;  %v2990_v40 = vld [vmem:[%s4836_s6 + $0x120] sm:$0xff] }
 0x3da   : > { %3107 = vst.msk [vmem:[%s4028_s19 + $0xc8] sm:$0xff] %vm1347_vm1, %v3043_v58  ;;  %v2733_v58 = vld [vmem:[%s4028_s19 + $0x138] sm:$0xff] }
 0x3db   : > { %v2518_v13 = vpop.xlane.xlu0 %2517 }
 0x3dc   : > { %v2786_v39 = vmax.f32 %v2722_v34, %v2518_v13  ;;  %v2991_v13 = vld [vmem:[%s4836_s6 + $0x128] sm:$0xff] }
 0x3dd   : > { %v2916_v33 = vld [vmem:[%s4028_s19 + $0xd0] sm:$0xff]  ;;  %v2523_v31 = vpop.xlane.xlu1 %2522 }
 0x3de   : > { %v3044_v35 = vadd.f32 %v2980_v12, %v2916_v33  ;;  %2851 = vst.msk [vmem:[%s4028_s19 + $0xe0] sm:$0xff] %vm1347_vm1, %v2786_v39  ;;  %v2787_v19 = vmax.f32 %v2723_v15, %v2523_v31 }
 0x3df   : > { %v2917_v43 = vld [vmem:[%s4028_s19 + $0xd8] sm:$0xff] }
 0x3e0   : > { %3108 = vst.msk [vmem:[%s4028_s19 + $0xd0] sm:$0xff] %vm1347_vm1, %v3044_v35  ;;  %v3045_v44 = vadd.f32 %v2981_v14, %v2917_v43  ;;  %2852 = vst.msk [vmem:[%s4028_s19 + $0xe8] sm:$0xff] %vm1347_vm1, %v2787_v19  ;;  %v2734_v35 = vld [vmem:[%s4028_s19 + $0x140] sm:$0xff]  ;;  %v2992_v19 = vld [vmem:[%s4836_s6 + $0x130] sm:$0xff] }
 0x3e2   : > { %3109 = vst.msk [vmem:[%s4028_s19 + $0xd8] sm:$0xff] %vm1347_vm1, %v3045_v44  ;;  %v2735_v44 = vld [vmem:[%s4028_s19 + $0x148] sm:$0xff] }
 0x3e3   : > { %v2528_v4 = vpop.xlane.xlu0 %2527 }
 0x3e4   : > { %v2788_v54 = vmax.f32 %v2724_v49, %v2528_v4  ;;  %v2993_v4 = vld [vmem:[%s4836_s6 + $0x138] sm:$0xff] }
 0x3e5   : > { %v2918_v11 = vld [vmem:[%s4028_s19 + $0xe0] sm:$0xff]  ;;  %v2533_v56 = vpop.xlane.xlu1 %2532 }
 0x3e6   : > { %v3046_v53 = vadd.f32 %v2982_v2, %v2918_v11  ;;  %2853 = vst.msk [vmem:[%s4028_s19 + $0xf0] sm:$0xff] %vm1347_vm1, %v2788_v54  ;;  %v2789_v32 = vmax.f32 %v2725_v3, %v2533_v56 }
 0x3e7   : > { %v2919_v46 = vld [vmem:[%s4028_s19 + $0xe8] sm:$0xff] }
 0x3e8   : > { %3110 = vst.msk [vmem:[%s4028_s19 + $0xe0] sm:$0xff] %vm1347_vm1, %v3046_v53  ;;  %v3047_v20 = vadd.f32 %v2983_v55, %v2919_v46  ;;  %2854 = vst.msk [vmem:[%s4028_s19 + $0xf8] sm:$0xff] %vm1347_vm1, %v2789_v32  ;;  %v2736_v53 = vld [vmem:[%s4028_s19 + $0x150] sm:$0xff]  ;;  %v2994_v32 = vld [vmem:[%s4836_s6 + $0x140] sm:$0xff] }
 0x3ea   : > { %3111 = vst.msk [vmem:[%s4028_s19 + $0xe8] sm:$0xff] %vm1347_vm1, %v3047_v20  ;;  %v2737_v20 = vld [vmem:[%s4028_s19 + $0x158] sm:$0xff] }
 0x3eb   : > { %v2538_v6 = vpop.xlane.xlu0 %2537 }
 0x3ec   : > { %v2790_v47 = vmax.f32 %v2726_v57, %v2538_v6  ;;  %v2995_v6 = vld [vmem:[%s4836_s6 + $0x148] sm:$0xff] }
 0x3ed   : > { %v2920_v7 = vld [vmem:[%s4028_s19 + $0xf0] sm:$0xff]  ;;  %v2543_v8 = vpop.xlane.xlu1 %2542 }
 0x3ee   : > { %v3048_v50 = vadd.f32 %v2984_v62, %v2920_v7  ;;  %2855 = vst.msk [vmem:[%s4028_s19 + $0x100] sm:$0xff] %vm1347_vm1, %v2790_v47  ;;  %v2791_v5 = vmax.f32 %v2727_v63, %v2543_v8 }
 0x3ef   : > { %v2921_v9 = vld [vmem:[%s4028_s19 + $0xf8] sm:$0xff] }
 0x3f0   : > { %3112 = vst.msk [vmem:[%s4028_s19 + $0xf0] sm:$0xff] %vm1347_vm1, %v3048_v50  ;;  %v3049_v0 = vadd.f32 %v2985_v48, %v2921_v9  ;;  %2856 = vst.msk [vmem:[%s4028_s19 + $0x108] sm:$0xff] %vm1347_vm1, %v2791_v5  ;;  %v2738_v50 = vld [vmem:[%s4028_s19 + $0x160] sm:$0xff]  ;;  %v2996_v5 = vld [vmem:[%s4836_s6 + $0x150] sm:$0xff] }
 0x3f2   : > { %3113 = vst.msk [vmem:[%s4028_s19 + $0xf8] sm:$0xff] %vm1347_vm1, %v3049_v0  ;;  %v2739_v0 = vld [vmem:[%s4028_s19 + $0x168] sm:$0xff] }
 0x3f3   : > { %v2548_v16 = vpop.xlane.xlu0 %2547 }
 0x3f4   : > { %v2792_v17 = vmax.f32 %v2728_v10, %v2548_v16  ;;  %v2997_v16 = vld [vmem:[%s4836_s6 + $0x158] sm:$0xff] }
 0x3f5   : > { %v2922_v18 = vld [vmem:[%s4028_s19 + $0x100] sm:$0xff]  ;;  %v2553_v41 = vpop.xlane.xlu1 %2552 }
 0x3f6   : > { %v3050_v36 = vadd.f32 %v2986_v1, %v2922_v18  ;;  %2857 = vst.msk [vmem:[%s4028_s19 + $0x110] sm:$0xff] %vm1347_vm1, %v2792_v17  ;;  %v2793_v23 = vmax.f32 %v2729_v45, %v2553_v41 }
 0x3f7   : > { %v2923_v24 = vld [vmem:[%s4028_s19 + $0x108] sm:$0xff] }
 0x3f8   : > { %3114 = vst.msk [vmem:[%s4028_s19 + $0x100] sm:$0xff] %vm1347_vm1, %v3050_v36  ;;  %v3051_v25 = vadd.f32 %v2987_v22, %v2923_v24  ;;  %2858 = vst.msk [vmem:[%s4028_s19 + $0x118] sm:$0xff] %vm1347_vm1, %v2793_v23  ;;  %v2740_v36 = vld [vmem:[%s4028_s19 + $0x170] sm:$0xff]  ;;  %v2998_v23 = vld [vmem:[%s4836_s6 + $0x160] sm:$0xff] }
 0x3fa   : > { %3115 = vst.msk [vmem:[%s4028_s19 + $0x108] sm:$0xff] %vm1347_vm1, %v3051_v25  ;;  %v2741_v25 = vld [vmem:[%s4028_s19 + $0x178] sm:$0xff] }
 0x3fb   : > { %v2558_v60 = vpop.xlane.xlu0 %2557 }
 0x3fc   : > { %v2794_v52 = vmax.f32 %v2730_v28, %v2558_v60  ;;  %v2999_v60 = vld [vmem:[%s4836_s6 + $0x168] sm:$0xff] }
 0x3fd   : > { %v2924_v26 = vld [vmem:[%s4028_s19 + $0x110] sm:$0xff]  ;;  %v2563_v42 = vpop.xlane.xlu1 %2562 }
 0x3fe   : > { %v3052_v21 = vadd.f32 %v2988_v59, %v2924_v26  ;;  %2859 = vst.msk [vmem:[%s4028_s19 + $0x120] sm:$0xff] %vm1347_vm1, %v2794_v52  ;;  %v2795_v27 = vmax.f32 %v2731_v61, %v2563_v42 }
 0x3ff   : > { %v2925_v29 = vld [vmem:[%s4028_s19 + $0x118] sm:$0xff] }
 0x400   : > { %3116 = vst.msk [vmem:[%s4028_s19 + $0x110] sm:$0xff] %vm1347_vm1, %v3052_v21  ;;  %v3053_v51 = vadd.f32 %v2989_v30, %v2925_v29  ;;  %2860 = vst.msk [vmem:[%s4028_s19 + $0x128] sm:$0xff] %vm1347_vm1, %v2795_v27  ;;  %v2742_v21 = vld [vmem:[%s4028_s19 + $0x180] sm:$0xff]  ;;  %v3000_v27 = vld [vmem:[%s4836_s6 + $0x170] sm:$0xff] }
 0x402   : > { %3117 = vst.msk [vmem:[%s4028_s19 + $0x118] sm:$0xff] %vm1347_vm1, %v3053_v51  ;;  %v2743_v51 = vld [vmem:[%s4028_s19 + $0x188] sm:$0xff] }
 0x403   : > { %v2568_v38 = vpop.xlane.xlu0 %2567 }
 0x404   : > { %v2796_v34 = vmax.f32 %v2732_v37, %v2568_v38  ;;  %v3001_v38 = vld [vmem:[%s4836_s6 + $0x178] sm:$0xff] }
 0x405   : > { %v2926_v12 = vld [vmem:[%s4028_s19 + $0x120] sm:$0xff]  ;;  %v2573_v15 = vpop.xlane.xlu1 %2572 }
 0x406   : > { %v3054_v39 = vadd.f32 %v2990_v40, %v2926_v12  ;;  %2861 = vst.msk [vmem:[%s4028_s19 + $0x130] sm:$0xff] %vm1347_vm1, %v2796_v34  ;;  %v2797_v33 = vmax.f32 %v2733_v58, %v2573_v15 }
 0x407   : > { %v2927_v14 = vld [vmem:[%s4028_s19 + $0x128] sm:$0xff] }
 0x408   : > { %3118 = vst.msk [vmem:[%s4028_s19 + $0x120] sm:$0xff] %vm1347_vm1, %v3054_v39  ;;  %v3055_v31 = vadd.f32 %v2991_v13, %v2927_v14  ;;  %2862 = vst.msk [vmem:[%s4028_s19 + $0x138] sm:$0xff] %vm1347_vm1, %v2797_v33  ;;  %v2744_v39 = vld [vmem:[%s4028_s19 + $0x190] sm:$0xff]  ;;  %v3002_v33 = vld [vmem:[%s4836_s6 + $0x180] sm:$0xff] }
 0x40a   : > { %3119 = vst.msk [vmem:[%s4028_s19 + $0x128] sm:$0xff] %vm1347_vm1, %v3055_v31  ;;  %v2745_v31 = vld [vmem:[%s4028_s19 + $0x198] sm:$0xff] }
 0x40b   : > { %v2578_v43 = vpop.xlane.xlu0 %2577 }
 0x40c   : > { %v2798_v49 = vmax.f32 %v2734_v35, %v2578_v43  ;;  %v3003_v43 = vld [vmem:[%s4836_s6 + $0x188] sm:$0xff] }
 0x40d   : > { %v2928_v2 = vld [vmem:[%s4028_s19 + $0x130] sm:$0xff]  ;;  %v2583_v3 = vpop.xlane.xlu1 %2582 }
 0x40e   : > { %v3056_v54 = vadd.f32 %v2992_v19, %v2928_v2  ;;  %2863 = vst.msk [vmem:[%s4028_s19 + $0x140] sm:$0xff] %vm1347_vm1, %v2798_v49  ;;  %v2799_v11 = vmax.f32 %v2735_v44, %v2583_v3 }
 0x40f   : > { %v2929_v55 = vld [vmem:[%s4028_s19 + $0x138] sm:$0xff] }
 0x410   : > { %3120 = vst.msk [vmem:[%s4028_s19 + $0x130] sm:$0xff] %vm1347_vm1, %v3056_v54  ;;  %v3057_v56 = vadd.f32 %v2993_v4, %v2929_v55  ;;  %2864 = vst.msk [vmem:[%s4028_s19 + $0x148] sm:$0xff] %vm1347_vm1, %v2799_v11  ;;  %v2746_v54 = vld [vmem:[%s4028_s19 + $0x1a0] sm:$0xff]  ;;  %v3004_v11 = vld [vmem:[%s4836_s6 + $0x190] sm:$0xff] }
 0x412   : > { %3121 = vst.msk [vmem:[%s4028_s19 + $0x138] sm:$0xff] %vm1347_vm1, %v3057_v56  ;;  %v2747_v56 = vld [vmem:[%s4028_s19 + $0x1a8] sm:$0xff] }
 0x413   : > { %v2588_v46 = vpop.xlane.xlu0 %2587 }
 0x414   : > { %v2800_v57 = vmax.f32 %v2736_v53, %v2588_v46  ;;  %v3005_v46 = vld [vmem:[%s4836_s6 + $0x198] sm:$0xff] }
 0x415   : > { %v2930_v62 = vld [vmem:[%s4028_s19 + $0x140] sm:$0xff]  ;;  %v2593_v63 = vpop.xlane.xlu1 %2592 }
 0x416   : > { %v3058_v47 = vadd.f32 %v2994_v32, %v2930_v62  ;;  %2865 = vst.msk [vmem:[%s4028_s19 + $0x150] sm:$0xff] %vm1347_vm1, %v2800_v57  ;;  %v2801_v7 = vmax.f32 %v2737_v20, %v2593_v63 }
 0x417   : > { %v2931_v48 = vld [vmem:[%s4028_s19 + $0x148] sm:$0xff] }
 0x418   : > { %3122 = vst.msk [vmem:[%s4028_s19 + $0x140] sm:$0xff] %vm1347_vm1, %v3058_v47  ;;  %v3059_v8 = vadd.f32 %v2995_v6, %v2931_v48  ;;  %2866 = vst.msk [vmem:[%s4028_s19 + $0x158] sm:$0xff] %vm1347_vm1, %v2801_v7  ;;  %v2748_v47 = vld [vmem:[%s4028_s19 + $0x1b0] sm:$0xff]  ;;  %v3006_v7 = vld [vmem:[%s4836_s6 + $0x1a0] sm:$0xff] }
 0x41a   : > { %3123 = vst.msk [vmem:[%s4028_s19 + $0x148] sm:$0xff] %vm1347_vm1, %v3059_v8  ;;  %v2749_v8 = vld [vmem:[%s4028_s19 + $0x1b8] sm:$0xff] }
 0x41b   : > { %v2598_v9 = vpop.xlane.xlu0 %2597 }
 0x41c   : > { %v2802_v10 = vmax.f32 %v2738_v50, %v2598_v9  ;;  %v3007_v9 = vld [vmem:[%s4836_s6 + $0x1a8] sm:$0xff] }
 0x41d   : > { %v2932_v1 = vld [vmem:[%s4028_s19 + $0x150] sm:$0xff]  ;;  %v2603_v45 = vpop.xlane.xlu1 %2602 }
 0x41e   : > { %v3060_v17 = vadd.f32 %v2996_v5, %v2932_v1  ;;  %2867 = vst.msk [vmem:[%s4028_s19 + $0x160] sm:$0xff] %vm1347_vm1, %v2802_v10  ;;  %v2803_v18 = vmax.f32 %v2739_v0, %v2603_v45 }
 0x41f   : > { %v2933_v22 = vld [vmem:[%s4028_s19 + $0x158] sm:$0xff] }
 0x420   : > { %3124 = vst.msk [vmem:[%s4028_s19 + $0x150] sm:$0xff] %vm1347_vm1, %v3060_v17  ;;  %v3061_v41 = vadd.f32 %v2997_v16, %v2933_v22  ;;  %2868 = vst.msk [vmem:[%s4028_s19 + $0x168] sm:$0xff] %vm1347_vm1, %v2803_v18  ;;  %v2750_v17 = vld [vmem:[%s4028_s19 + $0x1c0] sm:$0xff]  ;;  %v3008_v18 = vld [vmem:[%s4836_s6 + $0x1b0] sm:$0xff] }
 0x422   : > { %3125 = vst.msk [vmem:[%s4028_s19 + $0x158] sm:$0xff] %vm1347_vm1, %v3061_v41  ;;  %v2751_v41 = vld [vmem:[%s4028_s19 + $0x1c8] sm:$0xff] }
 0x423   : > { %v2608_v24 = vpop.xlane.xlu0 %2607 }
 0x424   : > { %v2804_v28 = vmax.f32 %v2740_v36, %v2608_v24  ;;  %v3009_v24 = vld [vmem:[%s4836_s6 + $0x1b8] sm:$0xff] }
 0x425   : > { %v2934_v59 = vld [vmem:[%s4028_s19 + $0x160] sm:$0xff]  ;;  %v2613_v61 = vpop.xlane.xlu1 %2612 }
 0x426   : > { %v3062_v52 = vadd.f32 %v2998_v23, %v2934_v59  ;;  %2869 = vst.msk [vmem:[%s4028_s19 + $0x170] sm:$0xff] %vm1347_vm1, %v2804_v28  ;;  %v2805_v26 = vmax.f32 %v2741_v25, %v2613_v61 }
 0x427   : > { %v2935_v30 = vld [vmem:[%s4028_s19 + $0x168] sm:$0xff] }
 0x428   : > { %3126 = vst.msk [vmem:[%s4028_s19 + $0x160] sm:$0xff] %vm1347_vm1, %v3062_v52  ;;  %v3063_v42 = vadd.f32 %v2999_v60, %v2935_v30  ;;  %2870 = vst.msk [vmem:[%s4028_s19 + $0x178] sm:$0xff] %vm1347_vm1, %v2805_v26  ;;  %v2752_v52 = vld [vmem:[%s4028_s19 + $0x1d0] sm:$0xff]  ;;  %v3010_v26 = vld [vmem:[%s4836_s6 + $0x1c0] sm:$0xff] }
 0x42a   : > { %3127 = vst.msk [vmem:[%s4028_s19 + $0x168] sm:$0xff] %vm1347_vm1, %v3063_v42  ;;  %v2753_v42 = vld [vmem:[%s4028_s19 + $0x1d8] sm:$0xff] }
 0x42b   : > { %v2618_v29 = vpop.xlane.xlu0 %2617 }
 0x42c   : > { %v2806_v37 = vmax.f32 %v2742_v21, %v2618_v29  ;;  %v3011_v29 = vld [vmem:[%s4836_s6 + $0x1c8] sm:$0xff] }
 0x42d   : > { %v2936_v40 = vld [vmem:[%s4028_s19 + $0x170] sm:$0xff]  ;;  %v2623_v58 = vpop.xlane.xlu1 %2622 }
 0x42e   : > { %v3064_v34 = vadd.f32 %v3000_v27, %v2936_v40  ;;  %2871 = vst.msk [vmem:[%s4028_s19 + $0x180] sm:$0xff] %vm1347_vm1, %v2806_v37  ;;  %v2807_v12 = vmax.f32 %v2743_v51, %v2623_v58 }
 0x42f   : > { %v2937_v13 = vld [vmem:[%s4028_s19 + $0x178] sm:$0xff] }
 0x430   : > { %3128 = vst.msk [vmem:[%s4028_s19 + $0x170] sm:$0xff] %vm1347_vm1, %v3064_v34  ;;  %v3065_v15 = vadd.f32 %v3001_v38, %v2937_v13  ;;  %2872 = vst.msk [vmem:[%s4028_s19 + $0x188] sm:$0xff] %vm1347_vm1, %v2807_v12  ;;  %v2754_v34 = vld [vmem:[%s4028_s19 + $0x1e0] sm:$0xff]  ;;  %v3012_v12 = vld [vmem:[%s4836_s6 + $0x1d0] sm:$0xff] }
 0x432   : > { %3129 = vst.msk [vmem:[%s4028_s19 + $0x178] sm:$0xff] %vm1347_vm1, %v3065_v15  ;;  %v2755_v15 = vld [vmem:[%s4028_s19 + $0x1e8] sm:$0xff] }
 0x433   : > { %v2628_v14 = vpop.xlane.xlu0 %2627 }
 0x434   : > { %v2808_v35 = vmax.f32 %v2744_v39, %v2628_v14  ;;  %v3013_v14 = vld [vmem:[%s4836_s6 + $0x1d8] sm:$0xff] }
 0x435   : > { %v2938_v19 = vld [vmem:[%s4028_s19 + $0x180] sm:$0xff]  ;;  %v2633_v44 = vpop.xlane.xlu1 %2632 }
 0x436   : > { %v3066_v49 = vadd.f32 %v3002_v33, %v2938_v19  ;;  %2873 = vst.msk [vmem:[%s4028_s19 + $0x190] sm:$0xff] %vm1347_vm1, %v2808_v35  ;;  %v2809_v2 = vmax.f32 %v2745_v31, %v2633_v44 }
 0x437   : > { %v2939_v4 = vld [vmem:[%s4028_s19 + $0x188] sm:$0xff] }
 0x438   : > { %3130 = vst.msk [vmem:[%s4028_s19 + $0x180] sm:$0xff] %vm1347_vm1, %v3066_v49  ;;  %v3067_v3 = vadd.f32 %v3003_v43, %v2939_v4  ;;  %2874 = vst.msk [vmem:[%s4028_s19 + $0x198] sm:$0xff] %vm1347_vm1, %v2809_v2  ;;  %v2756_v49 = vld [vmem:[%s4028_s19 + $0x1f0] sm:$0xff]  ;;  %v3014_v2 = vld [vmem:[%s4836_s6 + $0x1e0] sm:$0xff] }
 0x43a   : > { %3131 = vst.msk [vmem:[%s4028_s19 + $0x188] sm:$0xff] %vm1347_vm1, %v3067_v3  ;;  %v2757_v3 = vld [vmem:[%s4028_s19 + $0x1f8] sm:$0xff] }
 0x43b   : > { %v2638_v55 = vpop.xlane.xlu0 %2637 }
 0x43c   : > { %v2810_v53 = vmax.f32 %v2746_v54, %v2638_v55  ;;  %v3015_v55 = vld [vmem:[%s4836_s6 + $0x1e8] sm:$0xff] }
 0x43d   : > { %v2940_v32 = vld [vmem:[%s4028_s19 + $0x190] sm:$0xff]  ;;  %v2643_v20 = vpop.xlane.xlu1 %2642 }
 0x43e   : > { %v3068_v57 = vadd.f32 %v3004_v11, %v2940_v32  ;;  %2875 = vst.msk [vmem:[%s4028_s19 + $0x1a0] sm:$0xff] %vm1347_vm1, %v2810_v53  ;;  %v2811_v62 = vmax.f32 %v2747_v56, %v2643_v20 }
 0x43f   : > { %v2941_v6 = vld [vmem:[%s4028_s19 + $0x198] sm:$0xff] }
 0x440   : > { %3132 = vst.msk [vmem:[%s4028_s19 + $0x190] sm:$0xff] %vm1347_vm1, %v3068_v57  ;;  %v3069_v63 = vadd.f32 %v3005_v46, %v2941_v6  ;;  %2876 = vst.msk [vmem:[%s4028_s19 + $0x1a8] sm:$0xff] %vm1347_vm1, %v2811_v62  ;;  %v3016_v57 = vld [vmem:[%s4836_s6 + $0x1f0] sm:$0xff]  ;;  %v3017_v6 = vld [vmem:[%s4836_s6 + $0x1f8] sm:$0xff] }
 0x442   : > { %3133 = vst.msk [vmem:[%s4028_s19 + $0x198] sm:$0xff] %vm1347_vm1, %v3069_v63 }
 0x443   : > { %v2648_v48 = vpop.xlane.xlu0 %2647 }
 0x444   : > { %v2812_v50 = vmax.f32 %v2748_v47, %v2648_v48 }
 0x445   : > { %v2942_v5 = vld [vmem:[%s4028_s19 + $0x1a0] sm:$0xff]  ;;  %v2653_v0 = vpop.xlane.xlu1 %2652 }
 0x446   : > { %v3070_v10 = vadd.f32 %v3006_v7, %v2942_v5  ;;  %2877 = vst.msk [vmem:[%s4028_s19 + $0x1b0] sm:$0xff] %vm1347_vm1, %v2812_v50  ;;  %v2813_v1 = vmax.f32 %v2749_v8, %v2653_v0 }
 0x447   : > { %v2943_v16 = vld [vmem:[%s4028_s19 + $0x1a8] sm:$0xff] }
 0x448   : > { %3134 = vst.msk [vmem:[%s4028_s19 + $0x1a0] sm:$0xff] %vm1347_vm1, %v3070_v10  ;;  %v3071_v45 = vadd.f32 %v3007_v9, %v2943_v16  ;;  %2878 = vst.msk [vmem:[%s4028_s19 + $0x1b8] sm:$0xff] %vm1347_vm1, %v2813_v1 }
 0x44a   : > { %3135 = vst.msk [vmem:[%s4028_s19 + $0x1a8] sm:$0xff] %vm1347_vm1, %v3071_v45 }
 0x44b   : > { %v2658_v22 = vpop.xlane.xlu0 %2657 }
 0x44c   : > { %v2814_v36 = vmax.f32 %v2750_v17, %v2658_v22 }
 0x44d   : > { %v2944_v23 = vld [vmem:[%s4028_s19 + $0x1b0] sm:$0xff]  ;;  %v2663_v25 = vpop.xlane.xlu1 %2662 }
 0x44e   : > { %v3072_v28 = vadd.f32 %v3008_v18, %v2944_v23  ;;  %2879 = vst.msk [vmem:[%s4028_s19 + $0x1c0] sm:$0xff] %vm1347_vm1, %v2814_v36  ;;  %v2815_v59 = vmax.f32 %v2751_v41, %v2663_v25 }
 0x44f   : > { %v2945_v60 = vld [vmem:[%s4028_s19 + $0x1b8] sm:$0xff] }
 0x450   : > { %3136 = vst.msk [vmem:[%s4028_s19 + $0x1b0] sm:$0xff] %vm1347_vm1, %v3072_v28  ;;  %v3073_v61 = vadd.f32 %v3009_v24, %v2945_v60  ;;  %2880 = vst.msk [vmem:[%s4028_s19 + $0x1c8] sm:$0xff] %vm1347_vm1, %v2815_v59 }
 0x452   : > { %3137 = vst.msk [vmem:[%s4028_s19 + $0x1b8] sm:$0xff] %vm1347_vm1, %v3073_v61 }
 0x453   : > { %v2668_v30 = vpop.xlane.xlu0 %2667 }
 0x454   : > { %v2816_v21 = vmax.f32 %v2752_v52, %v2668_v30 }
 0x455   : > { %v2946_v27 = vld [vmem:[%s4028_s19 + $0x1c0] sm:$0xff]  ;;  %v2673_v51 = vpop.xlane.xlu1 %2672 }
 0x456   : > { %v3074_v37 = vadd.f32 %v3010_v26, %v2946_v27  ;;  %2881 = vst.msk [vmem:[%s4028_s19 + $0x1d0] sm:$0xff] %vm1347_vm1, %v2816_v21  ;;  %v2817_v40 = vmax.f32 %v2753_v42, %v2673_v51 }
 0x457   : > { %v2947_v38 = vld [vmem:[%s4028_s19 + $0x1c8] sm:$0xff] }
 0x458   : > { %3138 = vst.msk [vmem:[%s4028_s19 + $0x1c0] sm:$0xff] %vm1347_vm1, %v3074_v37  ;;  %v3075_v58 = vadd.f32 %v3011_v29, %v2947_v38  ;;  %2882 = vst.msk [vmem:[%s4028_s19 + $0x1d8] sm:$0xff] %vm1347_vm1, %v2817_v40 }
 0x45a   : > { %3139 = vst.msk [vmem:[%s4028_s19 + $0x1c8] sm:$0xff] %vm1347_vm1, %v3075_v58 }
 0x45b   : > { %v2678_v13 = vpop.xlane.xlu0 %2677 }
 0x45c   : > { %v2818_v39 = vmax.f32 %v2754_v34, %v2678_v13 }
 0x45d   : > { %v2948_v33 = vld [vmem:[%s4028_s19 + $0x1d0] sm:$0xff]  ;;  %v2683_v31 = vpop.xlane.xlu1 %2682 }
 0x45e   : > { %v3076_v35 = vadd.f32 %v3012_v12, %v2948_v33  ;;  %2883 = vst.msk [vmem:[%s4028_s19 + $0x1e0] sm:$0xff] %vm1347_vm1, %v2818_v39  ;;  %v2819_v19 = vmax.f32 %v2755_v15, %v2683_v31 }
 0x45f   : > { %v2949_v43 = vld [vmem:[%s4028_s19 + $0x1d8] sm:$0xff] }
 0x460   : > { %3140 = vst.msk [vmem:[%s4028_s19 + $0x1d0] sm:$0xff] %vm1347_vm1, %v3076_v35  ;;  %v3077_v44 = vadd.f32 %v3013_v14, %v2949_v43  ;;  %2884 = vst.msk [vmem:[%s4028_s19 + $0x1e8] sm:$0xff] %vm1347_vm1, %v2819_v19 }
 0x462   : > { %3141 = vst.msk [vmem:[%s4028_s19 + $0x1d8] sm:$0xff] %vm1347_vm1, %v3077_v44 }
 0x463   : > { %v2688_v4 = vpop.xlane.xlu0 %2687 }
 0x464   : > { %v2820_v54 = vmax.f32 %v2756_v49, %v2688_v4 }
 0x465   : > { %v2950_v11 = vld [vmem:[%s4028_s19 + $0x1e0] sm:$0xff]  ;;  %v2693_v56 = vpop.xlane.xlu1 %2692 }
 0x466   : > { %v3078_v53 = vadd.f32 %v3014_v2, %v2950_v11  ;;  %2885 = vst.msk [vmem:[%s4028_s19 + $0x1f0] sm:$0xff] %vm1347_vm1, %v2820_v54  ;;  %v2821_v32 = vmax.f32 %v2757_v3, %v2693_v56 }
 0x467   : > { %v2951_v46 = vld [vmem:[%s4028_s19 + $0x1e8] sm:$0xff] }
 0x468   : > { %3142 = vst.msk [vmem:[%s4028_s19 + $0x1e0] sm:$0xff] %vm1347_vm1, %v3078_v53  ;;  %v3079_v20 = vadd.f32 %v3015_v55, %v2951_v46  ;;  %2886 = vst.msk [vmem:[%s4028_s19 + $0x1f8] sm:$0xff] %vm1347_vm1, %v2821_v32 }
 0x46a   : > { %3143 = vst.msk [vmem:[%s4028_s19 + $0x1e8] sm:$0xff] %vm1347_vm1, %v3079_v20 }
 0x46d   : > { %v2952_v62 = vld [vmem:[%s4028_s19 + $0x1f0] sm:$0xff] }
 0x46e   : > { %v3080_v63 = vadd.f32 %v3016_v57, %v2952_v62 }
 0x46f   : > { %v2953_v47 = vld [vmem:[%s4028_s19 + $0x1f8] sm:$0xff] }
 0x470   : > { %3144 = vst.msk [vmem:[%s4028_s19 + $0x1f0] sm:$0xff] %vm1347_vm1, %v3080_v63  ;;  %v3081_v7 = vadd.f32 %v3017_v6, %v2953_v47 }
 0x472   : > { %3145 = vst.msk [vmem:[%s4028_s19 + $0x1f8] sm:$0xff] %vm1347_vm1, %v3081_v7 }
 0x473 PF: > { %s17_s26 = sadd.s32 1, %s3412_s26   ;;  %s4838_s24 = smov %s3408_s25 }
 0x474   : > { %p14_p5 = scmp.ge.s32.totalorder %s17_s26, 4   ;;  %s4839_s25 = smov %s4841_s27 }
 0x476   :  { %16 = sbr.rel (!%p14_p5) target bundleno = 2 (0x2), region = 86 }

</bundles_post_ra>
